<compile_context>
chip_gen: v7x
topology: tpu7x:2x2x1
jax: 0.10.0
libtpu: 0.0.40
codegen_flags: <defaults>
</compile_context>

<pallas_src>
import jax
import jax.numpy as jnp
from jax.experimental import pallas as pl
from jax.experimental.pallas import tpu as pltpu

LANE = 128
W_OFF = 8  # sublane-aligned column offset of the image interior inside the scratch slab


def _round_up(x, m):
    return (x + m - 1) // m * m


# ------------------------------ fused ConvBlock kernel ------------------------------

def _make_conv_block_kernel(H, W, k, pad, nb_layers, Cpad):
    Hh, Wh = H // 2, W // 2

    def kernel(x_ref, w_ref, b_ref, scale_ref, shift_ref, sel_ref, o_ref, act_ref):
        cdtype = act_ref.dtype

        # Zero the padded activation slab (spatial halo + padded channels), then place
        # this image's (channel-padded) input in the interior.  Interior column offset
        # W_OFF is sublane-aligned, so the full-lane stores below are unmasked.
        act_ref[...] = jnp.zeros_like(act_ref)
        act_ref[pad:pad + H, W_OFF:W_OFF + W, :] = x_ref[0]

        acc = None
        for layer in range(nb_layers):
            # k*k full-image matmuls (H*W, Cpad) x (Cpad, Cpad) on the MXU, f32 accumulation.
            acc = jnp.zeros((H * W, Cpad), jnp.float32)
            for dy in range(k):
                for dx in range(k):
                    c0 = W_OFF - pad + dx
                    patch = act_ref[dy:dy + H, c0:c0 + W, :]          # (H, W, Cpad)
                    acc = acc + jnp.dot(patch.reshape(H * W, Cpad),
                                        w_ref[layer, dy, dx],
                                        preferred_element_type=jnp.float32)
            # bias + ReLU once per layer (hoisted out of any row loop)
            acc = jnp.maximum(acc + b_ref[layer], 0.0)
            # TODO(synk): nn.Dropout after every 2nd conv is identity (eval mode only).
            if layer < nb_layers - 1:
                act_ref[pad:pad + H, W_OFF:W_OFF + W, :] = (
                    acc.reshape(H, W, Cpad).astype(cdtype))

        # Eval-mode BatchNorm2d folded to scale/shift (f32 elementwise).
        y = acc * scale_ref[...] + shift_ref[...]                      # (H*W, Cpad)

        # 2x2 MaxPool, stride 2.
        # H direction: layout-free leading-dim split + elementwise max.
        y4 = y.reshape(Hh, 2, W, Cpad)
        rm = jnp.maximum(y4[:, 0], y4[:, 1]).reshape(Hh * W, Cpad)     # (Hh*W, Cpad)
        # W direction: two 0/1 selection matmuls (even / odd columns) on the MXU.
        pooled = jnp.maximum(
            jnp.dot(sel_ref[0], rm, preferred_element_type=jnp.float32),
            jnp.dot(sel_ref[1], rm, preferred_element_type=jnp.float32))
        o_ref[0] = pooled.astype(o_ref.dtype)                          # lane-dense store

    return kernel


def conv_block_forward(x_nchw, params, k_size, compute_dtype=jnp.float32):
    """Fused ConvBlock forward (eval semantics). x_nchw: (N, Cin, H, W) like PyTorch."""
    N, Cin, H, W = x_nchw.shape
    k = k_size
    pad = (k - 1) // 2
    assert k % 2 == 1, "assumes default 'same' padding (odd kernel size)"
    assert H % 2 == 0 and W % 2 == 0, "MaxPool2d(2,2) assumes even H, W"
    assert W % 8 == 0, "W must be a multiple of 8 (sublane tiling)"
    assert pad <= W_OFF

    convs = params["convs"]
    nb_layers = len(convs)
    Cout = convs[0][0].shape[3]
    Cpad = _round_up(max(Cin, Cout, LANE), LANE)   # lane-dense channel count (>=128)
    Hh, Wh = H // 2, W // 2

    # Pack + zero-pad conv weights/biases so every layer is one lane-dense
    # (H*W, Cpad) x (Cpad, Cpad) accumulation; padded channels stay exactly 0.
    w_stack = jnp.zeros((nb_layers, k, k, Cpad, Cpad), compute_dtype)
    b_stack = jnp.zeros((nb_layers, 1, Cpad), jnp.float32)
    for l, (w, b) in enumerate(convs):
        cin_l, cout_l = w.shape[2], w.shape[3]
        w_stack = w_stack.at[l, :, :, :cin_l, :cout_l].set(w.astype(compute_dtype))
        b_stack = b_stack.at[l, 0, :cout_l].set(b.reshape(-1).astype(jnp.float32))

    scale = jnp.zeros((1, Cpad), jnp.float32).at[0, :Cout].set(params["bn_scale"].reshape(-1))
    shift = jnp.zeros((1, Cpad), jnp.float32).at[0, :Cout].set(params["bn_shift"].reshape(-1))

    # 0/1 selection matrices for the W direction of the 2x2 maxpool (even / odd columns).
    a = jnp.arange(Hh * Wh)
    base = (a // Wh) * W + 2 * (a % Wh)
    cols = jnp.arange(Hh * W)
    sel = jnp.stack([
        (cols[None, :] == base[:, None]).astype(jnp.float32),
        (cols[None, :] == (base + 1)[:, None]).astype(jnp.float32),
    ])                                                                  # (2, Hh*Wh, Hh*W)

    # NCHW -> NHWC; channel-pad to Cpad so the input DMA and in-kernel loads are lane-dense.
    x = jnp.transpose(x_nchw, (0, 2, 3, 1)).astype(compute_dtype)
    x = jnp.pad(x, ((0, 0), (0, 0), (0, 0), (0, Cpad - Cin)))

    kernel = _make_conv_block_kernel(H, W, k, pad, nb_layers, Cpad)
    scratch_shape = (H + 2 * pad, W_OFF + W + pad, Cpad)                # padded activation slab

    out = pl.pallas_call(
        kernel,
        out_shape=jax.ShapeDtypeStruct((N, Hh * Wh, Cpad), x_nchw.dtype),
        grid=(N,),
        in_specs=[
            pl.BlockSpec((1, H, W, Cpad), lambda n: (n, 0, 0, 0)),
            pl.BlockSpec((nb_layers, k, k, Cpad, Cpad), lambda n: (0, 0, 0, 0, 0)),
            pl.BlockSpec((nb_layers, 1, Cpad), lambda n: (0, 0, 0)),
            pl.BlockSpec((1, Cpad), lambda n: (0, 0)),
            pl.BlockSpec((1, Cpad), lambda n: (0, 0)),
            pl.BlockSpec((2, Hh * Wh, Hh * W), lambda n: (0, 0, 0)),
        ],
        out_specs=pl.BlockSpec((1, Hh * Wh, Cpad), lambda n: (n, 0, 0)),
        scratch_shapes=[pltpu.VMEM(scratch_shape, compute_dtype)],
        compiler_params=pltpu.CompilerParams(
            dimension_semantics=("parallel",),        # >=2 grid entries feed both v7x TCs
            vmem_limit_bytes=32 * 1024 * 1024,
        ),
    )(x, w_stack, b_stack, scale, shift, sel)

    out = out.reshape(N, Hh, Wh, Cpad)[..., :Cout]    # drop channel padding (tiny, lazy XLA)
    return jnp.transpose(out, (0, 3, 1, 2))           # NHWC -> NCHW


# ----------------------------------- params init -----------------------------------

def init_conv_block_params(key, in_features, out_features, k_size, nb_layers):
    params = {"convs": []}
    cin = in_features
    for _ in range(nb_layers):
        key, kw, kb = jax.random.split(key, 3)
        fan_in = cin * k_size * k_size
        w = jax.random.normal(kw, (k_size, k_size, cin, out_features), jnp.float32) / jnp.sqrt(fan_in)
        b = 0.1 * jax.random.normal(kb, (1, out_features), jnp.float32)
        params["convs"].append((w, b))
        cin = out_features
    # BatchNorm2d(out_features): deterministic eval-mode params / running stats, folded.
    C = out_features
    gamma = 1.0 + 0.1 * jnp.arange(C, dtype=jnp.float32)
    beta = 0.02 * jnp.arange(C, dtype=jnp.float32)
    mean = 0.01 * jnp.arange(C, dtype=jnp.float32)
    var = 1.0 + 0.05 * jnp.arange(C, dtype=jnp.float32)
    eps = 1e-5
    scale = gamma / jnp.sqrt(var + eps)
    shift = beta - mean * scale
    params["bn_scale"] = scale[None, :]
    params["bn_shift"] = shift[None, :]
    return params


# --------------------------------- pure-JAX reference ---------------------------------

def reference_forward(x_nchw, params, k_size):
    padding = (k_size - 1) // 2
    y = jnp.transpose(x_nchw, (0, 2, 3, 1))
    for (w, b) in params["convs"]:
        y = jax.lax.conv_general_dilated(
            y, w, window_strides=(1, 1),
            padding=[(padding, padding), (padding, padding)],
            dimension_numbers=("NHWC", "HWIO", "NHWC"),
            precision=jax.lax.Precision.HIGHEST)
        y = jnp.maximum(y + b[0][None, None, None, :], 0.0)
    y = y * params["bn_scale"][0] + params["bn_shift"][0]
    y = jax.lax.reduce_window(y, -jnp.inf, jax.lax.max,
                              (1, 2, 2, 1), (1, 2, 2, 1), "VALID")
    return jnp.transpose(y, (0, 3, 1, 2))


if __name__ == "__main__":
    N, CIN, H, W = 2, 4, 16, 16
    COUT, K, NB_LAYERS = 8, 3, 2

    key = jax.random.PRNGKey(0)
    key, kx = jax.random.split(key)
    x = jax.random.normal(kx, (N, CIN, H, W), jnp.float32)     # NCHW like PyTorch
    params = init_conv_block_params(key, CIN, COUT, K, NB_LAYERS)

    ref = reference_forward(x, params, K)

    # f32 path (exact numerics check)
    out = jax.block_until_ready(conv_block_forward(x, params, K))
    assert out.shape == (N, COUT, H // 2, W // 2), out.shape
    assert jnp.allclose(out, ref, atol=1e-4, rtol=1e-4), float(jnp.max(jnp.abs(out - ref)))

    # bf16 MXU path (recommended on v6e/v7x): same kernel, bf16 activations/weights,
    # f32 accumulation — checked against the f32 reference with a loose tolerance.
    out_bf16 = jax.block_until_ready(
        conv_block_forward(x, params, K, compute_dtype=jnp.bfloat16))
    assert jnp.allclose(out_bf16, ref, atol=1e-1, rtol=1e-1), \
        float(jnp.max(jnp.abs(out_bf16 - ref)))

    print("KERNEL_OK")
</pallas_src>

<mosaic_0001>
module attributes {stable_mosaic.version = 11 : i64} {
  func.func @kernel(%arg0: i32, %arg1: memref<1x16x16x128xf32, #tpu.memory_space<vmem>>, %arg2: memref<2x3x3x128x128xf32, #tpu.memory_space<vmem>>, %arg3: memref<2x1x128xf32, #tpu.memory_space<vmem>>, %arg4: memref<1x128xf32, #tpu.memory_space<vmem>>, %arg5: memref<1x128xf32, #tpu.memory_space<vmem>>, %arg6: memref<2x64x128xf32, #tpu.memory_space<vmem>>, %arg7: memref<1x64x128xf32, #tpu.memory_space<vmem>>, %arg8: memref<18x25x128xf32, #tpu.memory_space<vmem>>) attributes {dimension_semantics = [#tpu.dimension_semantics<parallel>], iteration_bounds = array<i64: 2>, scalar_prefetch = 0 : i64, scratch_operands = 1 : i64, tpu.core_type = #tpu.core_type<tc>, window_params = [{transform_indices = @transform_0, window_bounds = array<i64: 1, 16, 16, 128>}, {pipeline_mode = #tpu.pipeline_mode<synchronous>, transform_indices = @transform_1, window_bounds = array<i64: 2, 3, 3, 128, 128>}, {pipeline_mode = #tpu.pipeline_mode<synchronous>, transform_indices = @transform_2, window_bounds = array<i64: 2, 1, 128>}, {pipeline_mode = #tpu.pipeline_mode<synchronous>, transform_indices = @transform_3, window_bounds = array<i64: 1, 128>}, {pipeline_mode = #tpu.pipeline_mode<synchronous>, transform_indices = @transform_4, window_bounds = array<i64: 1, 128>}, {pipeline_mode = #tpu.pipeline_mode<synchronous>, transform_indices = @transform_5, window_bounds = array<i64: 2, 64, 128>}, {transform_indices = @transform_6, window_bounds = array<i64: 1, 64, 128>}]} {
    %cst = arith.constant 0.000000e+00 : f32
    %0 = vector.broadcast %cst : f32 to vector<18x25x128xf32>
    %c0 = arith.constant 0 : index
    %c0_0 = arith.constant 0 : index
    %c0_1 = arith.constant 0 : index
    %1 = vector.load %arg8[%c0, %c0_0, %c0_1] : memref<18x25x128xf32, #tpu.memory_space<vmem>>, vector<18x25x128xf32>
    tpu.vector_store %arg8[%c0, %c0_0, %c0_1], %0 {strides = array<i32>} : memref<18x25x128xf32, #tpu.memory_space<vmem>>, vector<18x25x128xf32>,
    %c0_2 = arith.constant 0 : index
    %c0_3 = arith.constant 0 : index
    %c0_4 = arith.constant 0 : index
    %c0_5 = arith.constant 0 : index
    %2 = vector.load %arg1[%c0_2, %c0_3, %c0_4, %c0_5] : memref<1x16x16x128xf32, #tpu.memory_space<vmem>>, vector<1x16x16x128xf32>
    %3 = vector.shape_cast %2 : vector<1x16x16x128xf32> to vector<16x16x128xf32>
    %c1 = arith.constant 1 : index
    %c8 = arith.constant 8 : index
    %c0_6 = arith.constant 0 : index
    %4 = vector.load %arg8[%c1, %c8, %c0_6] : memref<18x25x128xf32, #tpu.memory_space<vmem>>, vector<16x16x128xf32>
    tpu.vector_store %arg8[%c1, %c8, %c0_6], %3 {strides = array<i32>} : memref<18x25x128xf32, #tpu.memory_space<vmem>>, vector<16x16x128xf32>,
    %cst_7 = arith.constant 0.000000e+00 : f32
    %5 = vector.broadcast %cst_7 : f32 to vector<256x128xf32>
    %c0_8 = arith.constant 0 : index
    %c7 = arith.constant 7 : index
    %c0_9 = arith.constant 0 : index
    %6 = vector.load %arg8[%c0_8, %c7, %c0_9] : memref<18x25x128xf32, #tpu.memory_space<vmem>>, vector<16x16x128xf32>
    %7 = vector.shape_cast %6 : vector<16x16x128xf32> to vector<256x128xf32>
    %c0_10 = arith.constant 0 : index
    %c0_11 = arith.constant 0 : index
    %c0_12 = arith.constant 0 : index
    %c0_13 = arith.constant 0 : index
    %c0_14 = arith.constant 0 : index
    %8 = vector.load %arg2[%c0_10, %c0_11, %c0_12, %c0_13, %c0_14] : memref<2x3x3x128x128xf32, #tpu.memory_space<vmem>>, vector<1x1x1x128x128xf32>
    %9 = vector.shape_cast %8 : vector<1x1x1x128x128xf32> to vector<128x128xf32>
    %cst_15 = arith.constant dense<0.000000e+00> : vector<256x128xf32>
    %10 = tpu.matmul %7, %9, %cst_15 {dimension_numbers = #tpu.dot_dimension_numbers<[1], [0], [0], [1], [0, 0, 1, 1], [], []>} : vector<256x128xf32>, vector<128x128xf32>, vector<256x128xf32> -> vector<256x128xf32>
    %11 = arith.addf %5, %10 : vector<256x128xf32>
    %c0_16 = arith.constant 0 : index
    %c8_17 = arith.constant 8 : index
    %c0_18 = arith.constant 0 : index
    %12 = vector.load %arg8[%c0_16, %c8_17, %c0_18] : memref<18x25x128xf32, #tpu.memory_space<vmem>>, vector<16x16x128xf32>
    %13 = vector.shape_cast %12 : vector<16x16x128xf32> to vector<256x128xf32>
    %c0_19 = arith.constant 0 : index
    %c0_20 = arith.constant 0 : index
    %c1_21 = arith.constant 1 : index
    %c0_22 = arith.constant 0 : index
    %c0_23 = arith.constant 0 : index
    %14 = vector.load %arg2[%c0_19, %c0_20, %c1_21, %c0_22, %c0_23] : memref<2x3x3x128x128xf32, #tpu.memory_space<vmem>>, vector<1x1x1x128x128xf32>
    %15 = vector.shape_cast %14 : vector<1x1x1x128x128xf32> to vector<128x128xf32>
    %cst_24 = arith.constant dense<0.000000e+00> : vector<256x128xf32>
    %16 = tpu.matmul %13, %15, %cst_24 {dimension_numbers = #tpu.dot_dimension_numbers<[1], [0], [0], [1], [0, 0, 1, 1], [], []>} : vector<256x128xf32>, vector<128x128xf32>, vector<256x128xf32> -> vector<256x128xf32>
    %17 = arith.addf %11, %16 : vector<256x128xf32>
    %c0_25 = arith.constant 0 : index
    %c9 = arith.constant 9 : index
    %c0_26 = arith.constant 0 : index
    %18 = vector.load %arg8[%c0_25, %c9, %c0_26] : memref<18x25x128xf32, #tpu.memory_space<vmem>>, vector<16x16x128xf32>
    %19 = vector.shape_cast %18 : vector<16x16x128xf32> to vector<256x128xf32>
    %c0_27 = arith.constant 0 : index
    %c0_28 = arith.constant 0 : index
    %c2 = arith.constant 2 : index
    %c0_29 = arith.constant 0 : index
    %c0_30 = arith.constant 0 : index
    %20 = vector.load %arg2[%c0_27, %c0_28, %c2, %c0_29, %c0_30] : memref<2x3x3x128x128xf32, #tpu.memory_space<vmem>>, vector<1x1x1x128x128xf32>
    %21 = vector.shape_cast %20 : vector<1x1x1x128x128xf32> to vector<128x128xf32>
    %cst_31 = arith.constant dense<0.000000e+00> : vector<256x128xf32>
    %22 = tpu.matmul %19, %21, %cst_31 {dimension_numbers = #tpu.dot_dimension_numbers<[1], [0], [0], [1], [0, 0, 1, 1], [], []>} : vector<256x128xf32>, vector<128x128xf32>, vector<256x128xf32> -> vector<256x128xf32>
    %23 = arith.addf %17, %22 : vector<256x128xf32>
    %c1_32 = arith.constant 1 : index
    %c7_33 = arith.constant 7 : index
    %c0_34 = arith.constant 0 : index
    %24 = vector.load %arg8[%c1_32, %c7_33, %c0_34] : memref<18x25x128xf32, #tpu.memory_space<vmem>>, vector<16x16x128xf32>
    %25 = vector.shape_cast %24 : vector<16x16x128xf32> to vector<256x128xf32>
    %c0_35 = arith.constant 0 : index
    %c1_36 = arith.constant 1 : index
    %c0_37 = arith.constant 0 : index
    %c0_38 = arith.constant 0 : index
    %c0_39 = arith.constant 0 : index
    %26 = vector.load %arg2[%c0_35, %c1_36, %c0_37, %c0_38, %c0_39] : memref<2x3x3x128x128xf32, #tpu.memory_space<vmem>>, vector<1x1x1x128x128xf32>
    %27 = vector.shape_cast %26 : vector<1x1x1x128x128xf32> to vector<128x128xf32>
    %cst_40 = arith.constant dense<0.000000e+00> : vector<256x128xf32>
    %28 = tpu.matmul %25, %27, %cst_40 {dimension_numbers = #tpu.dot_dimension_numbers<[1], [0], [0], [1], [0, 0, 1, 1], [], []>} : vector<256x128xf32>, vector<128x128xf32>, vector<256x128xf32> -> vector<256x128xf32>
    %29 = arith.addf %23, %28 : vector<256x128xf32>
    %c1_41 = arith.constant 1 : index
    %c8_42 = arith.constant 8 : index
    %c0_43 = arith.constant 0 : index
    %30 = vector.load %arg8[%c1_41, %c8_42, %c0_43] : memref<18x25x128xf32, #tpu.memory_space<vmem>>, vector<16x16x128xf32>
    %31 = vector.shape_cast %30 : vector<16x16x128xf32> to vector<256x128xf32>
    %c0_44 = arith.constant 0 : index
    %c1_45 = arith.constant 1 : index
    %c1_46 = arith.constant 1 : index
    %c0_47 = arith.constant 0 : index
    %c0_48 = arith.constant 0 : index
    %32 = vector.load %arg2[%c0_44, %c1_45, %c1_46, %c0_47, %c0_48] : memref<2x3x3x128x128xf32, #tpu.memory_space<vmem>>, vector<1x1x1x128x128xf32>
    %33 = vector.shape_cast %32 : vector<1x1x1x128x128xf32> to vector<128x128xf32>
    %cst_49 = arith.constant dense<0.000000e+00> : vector<256x128xf32>
    %34 = tpu.matmul %31, %33, %cst_49 {dimension_numbers = #tpu.dot_dimension_numbers<[1], [0], [0], [1], [0, 0, 1, 1], [], []>} : vector<256x128xf32>, vector<128x128xf32>, vector<256x128xf32> -> vector<256x128xf32>
    %35 = arith.addf %29, %34 : vector<256x128xf32>
    %c1_50 = arith.constant 1 : index
    %c9_51 = arith.constant 9 : index
    %c0_52 = arith.constant 0 : index
    %36 = vector.load %arg8[%c1_50, %c9_51, %c0_52] : memref<18x25x128xf32, #tpu.memory_space<vmem>>, vector<16x16x128xf32>
    %37 = vector.shape_cast %36 : vector<16x16x128xf32> to vector<256x128xf32>
    %c0_53 = arith.constant 0 : index
    %c1_54 = arith.constant 1 : index
    %c2_55 = arith.constant 2 : index
    %c0_56 = arith.constant 0 : index
    %c0_57 = arith.constant 0 : index
    %38 = vector.load %arg2[%c0_53, %c1_54, %c2_55, %c0_56, %c0_57] : memref<2x3x3x128x128xf32, #tpu.memory_space<vmem>>, vector<1x1x1x128x128xf32>
    %39 = vector.shape_cast %38 : vector<1x1x1x128x128xf32> to vector<128x128xf32>
    %cst_58 = arith.constant dense<0.000000e+00> : vector<256x128xf32>
    %40 = tpu.matmul %37, %39, %cst_58 {dimension_numbers = #tpu.dot_dimension_numbers<[1], [0], [0], [1], [0, 0, 1, 1], [], []>} : vector<256x128xf32>, vector<128x128xf32>, vector<256x128xf32> -> vector<256x128xf32>
    %41 = arith.addf %35, %40 : vector<256x128xf32>
    %c2_59 = arith.constant 2 : index
    %c7_60 = arith.constant 7 : index
    %c0_61 = arith.constant 0 : index
    %42 = vector.load %arg8[%c2_59, %c7_60, %c0_61] : memref<18x25x128xf32, #tpu.memory_space<vmem>>, vector<16x16x128xf32>
    %43 = vector.shape_cast %42 : vector<16x16x128xf32> to vector<256x128xf32>
    %c0_62 = arith.constant 0 : index
    %c2_63 = arith.constant 2 : index
    %c0_64 = arith.constant 0 : index
    %c0_65 = arith.constant 0 : index
    %c0_66 = arith.constant 0 : index
    %44 = vector.load %arg2[%c0_62, %c2_63, %c0_64, %c0_65, %c0_66] : memref<2x3x3x128x128xf32, #tpu.memory_space<vmem>>, vector<1x1x1x128x128xf32>
    %45 = vector.shape_cast %44 : vector<1x1x1x128x128xf32> to vector<128x128xf32>
    %cst_67 = arith.constant dense<0.000000e+00> : vector<256x128xf32>
    %46 = tpu.matmul %43, %45, %cst_67 {dimension_numbers = #tpu.dot_dimension_numbers<[1], [0], [0], [1], [0, 0, 1, 1], [], []>} : vector<256x128xf32>, vector<128x128xf32>, vector<256x128xf32> -> vector<256x128xf32>
    %47 = arith.addf %41, %46 : vector<256x128xf32>
    %c2_68 = arith.constant 2 : index
    %c8_69 = arith.constant 8 : index
    %c0_70 = arith.constant 0 : index
    %48 = vector.load %arg8[%c2_68, %c8_69, %c0_70] : memref<18x25x128xf32, #tpu.memory_space<vmem>>, vector<16x16x128xf32>
    %49 = vector.shape_cast %48 : vector<16x16x128xf32> to vector<256x128xf32>
    %c0_71 = arith.constant 0 : index
    %c2_72 = arith.constant 2 : index
    %c1_73 = arith.constant 1 : index
    %c0_74 = arith.constant 0 : index
    %c0_75 = arith.constant 0 : index
    %50 = vector.load %arg2[%c0_71, %c2_72, %c1_73, %c0_74, %c0_75] : memref<2x3x3x128x128xf32, #tpu.memory_space<vmem>>, vector<1x1x1x128x128xf32>
    %51 = vector.shape_cast %50 : vector<1x1x1x128x128xf32> to vector<128x128xf32>
    %cst_76 = arith.constant dense<0.000000e+00> : vector<256x128xf32>
    %52 = tpu.matmul %49, %51, %cst_76 {dimension_numbers = #tpu.dot_dimension_numbers<[1], [0], [0], [1], [0, 0, 1, 1], [], []>} : vector<256x128xf32>, vector<128x128xf32>, vector<256x128xf32> -> vector<256x128xf32>
    %53 = arith.addf %47, %52 : vector<256x128xf32>
    %c2_77 = arith.constant 2 : index
    %c9_78 = arith.constant 9 : index
    %c0_79 = arith.constant 0 : index
    %54 = vector.load %arg8[%c2_77, %c9_78, %c0_79] : memref<18x25x128xf32, #tpu.memory_space<vmem>>, vector<16x16x128xf32>
    %55 = vector.shape_cast %54 : vector<16x16x128xf32> to vector<256x128xf32>
    %c0_80 = arith.constant 0 : index
    %c2_81 = arith.constant 2 : index
    %c2_82 = arith.constant 2 : index
    %c0_83 = arith.constant 0 : index
    %c0_84 = arith.constant 0 : index
    %56 = vector.load %arg2[%c0_80, %c2_81, %c2_82, %c0_83, %c0_84] : memref<2x3x3x128x128xf32, #tpu.memory_space<vmem>>, vector<1x1x1x128x128xf32>
    %57 = vector.shape_cast %56 : vector<1x1x1x128x128xf32> to vector<128x128xf32>
    %cst_85 = arith.constant dense<0.000000e+00> : vector<256x128xf32>
    %58 = tpu.matmul %55, %57, %cst_85 {dimension_numbers = #tpu.dot_dimension_numbers<[1], [0], [0], [1], [0, 0, 1, 1], [], []>} : vector<256x128xf32>, vector<128x128xf32>, vector<256x128xf32> -> vector<256x128xf32>
    %59 = arith.addf %53, %58 : vector<256x128xf32>
    %c0_86 = arith.constant 0 : index
    %c0_87 = arith.constant 0 : index
    %c0_88 = arith.constant 0 : index
    %60 = vector.load %arg3[%c0_86, %c0_87, %c0_88] : memref<2x1x128xf32, #tpu.memory_space<vmem>>, vector<1x1x128xf32>
    %61 = vector.shape_cast %60 : vector<1x1x128xf32> to vector<1x128xf32>
    %62 = vector.broadcast %61 : vector<1x128xf32> to vector<256x128xf32>
    %63 = arith.addf %59, %62 : vector<256x128xf32>
    %cst_89 = arith.constant 0.000000e+00 : f32
    %64 = vector.broadcast %cst_89 : f32 to vector<256x128xf32>
    %65 = arith.maximumf %63, %64 : vector<256x128xf32>
    %66 = vector.shape_cast %65 : vector<256x128xf32> to vector<16x16x128xf32>
    %c1_90 = arith.constant 1 : index
    %c8_91 = arith.constant 8 : index
    %c0_92 = arith.constant 0 : index
    %67 = vector.load %arg8[%c1_90, %c8_91, %c0_92] : memref<18x25x128xf32, #tpu.memory_space<vmem>>, vector<16x16x128xf32>
    tpu.vector_store %arg8[%c1_90, %c8_91, %c0_92], %66 {strides = array<i32>} : memref<18x25x128xf32, #tpu.memory_space<vmem>>, vector<16x16x128xf32>,
    %cst_93 = arith.constant 0.000000e+00 : f32
    %68 = vector.broadcast %cst_93 : f32 to vector<256x128xf32>
    %c0_94 = arith.constant 0 : index
    %c7_95 = arith.constant 7 : index
    %c0_96 = arith.constant 0 : index
    %69 = vector.load %arg8[%c0_94, %c7_95, %c0_96] : memref<18x25x128xf32, #tpu.memory_space<vmem>>, vector<16x16x128xf32>
    %70 = vector.shape_cast %69 : vector<16x16x128xf32> to vector<256x128xf32>
    %c1_97 = arith.constant 1 : index
    %c0_98 = arith.constant 0 : index
    %c0_99 = arith.constant 0 : index
    %c0_100 = arith.constant 0 : index
    %c0_101 = arith.constant 0 : index
    %71 = vector.load %arg2[%c1_97, %c0_98, %c0_99, %c0_100, %c0_101] : memref<2x3x3x128x128xf32, #tpu.memory_space<vmem>>, vector<1x1x1x128x128xf32>
    %72 = vector.shape_cast %71 : vector<1x1x1x128x128xf32> to vector<128x128xf32>
    %cst_102 = arith.constant dense<0.000000e+00> : vector<256x128xf32>
    %73 = tpu.matmul %70, %72, %cst_102 {dimension_numbers = #tpu.dot_dimension_numbers<[1], [0], [0], [1], [0, 0, 1, 1], [], []>} : vector<256x128xf32>, vector<128x128xf32>, vector<256x128xf32> -> vector<256x128xf32>
    %74 = arith.addf %68, %73 : vector<256x128xf32>
    %c0_103 = arith.constant 0 : index
    %c8_104 = arith.constant 8 : index
    %c0_105 = arith.constant 0 : index
    %75 = vector.load %arg8[%c0_103, %c8_104, %c0_105] : memref<18x25x128xf32, #tpu.memory_space<vmem>>, vector<16x16x128xf32>
    %76 = vector.shape_cast %75 : vector<16x16x128xf32> to vector<256x128xf32>
    %c1_106 = arith.constant 1 : index
    %c0_107 = arith.constant 0 : index
    %c1_108 = arith.constant 1 : index
    %c0_109 = arith.constant 0 : index
    %c0_110 = arith.constant 0 : index
    %77 = vector.load %arg2[%c1_106, %c0_107, %c1_108, %c0_109, %c0_110] : memref<2x3x3x128x128xf32, #tpu.memory_space<vmem>>, vector<1x1x1x128x128xf32>
    %78 = vector.shape_cast %77 : vector<1x1x1x128x128xf32> to vector<128x128xf32>
    %cst_111 = arith.constant dense<0.000000e+00> : vector<256x128xf32>
    %79 = tpu.matmul %76, %78, %cst_111 {dimension_numbers = #tpu.dot_dimension_numbers<[1], [0], [0], [1], [0, 0, 1, 1], [], []>} : vector<256x128xf32>, vector<128x128xf32>, vector<256x128xf32> -> vector<256x128xf32>
    %80 = arith.addf %74, %79 : vector<256x128xf32>
    %c0_112 = arith.constant 0 : index
    %c9_113 = arith.constant 9 : index
    %c0_114 = arith.constant 0 : index
    %81 = vector.load %arg8[%c0_112, %c9_113, %c0_114] : memref<18x25x128xf32, #tpu.memory_space<vmem>>, vector<16x16x128xf32>
    %82 = vector.shape_cast %81 : vector<16x16x128xf32> to vector<256x128xf32>
    %c1_115 = arith.constant 1 : index
    %c0_116 = arith.constant 0 : index
    %c2_117 = arith.constant 2 : index
    %c0_118 = arith.constant 0 : index
    %c0_119 = arith.constant 0 : index
    %83 = vector.load %arg2[%c1_115, %c0_116, %c2_117, %c0_118, %c0_119] : memref<2x3x3x128x128xf32, #tpu.memory_space<vmem>>, vector<1x1x1x128x128xf32>
    %84 = vector.shape_cast %83 : vector<1x1x1x128x128xf32> to vector<128x128xf32>
    %cst_120 = arith.constant dense<0.000000e+00> : vector<256x128xf32>
    %85 = tpu.matmul %82, %84, %cst_120 {dimension_numbers = #tpu.dot_dimension_numbers<[1], [0], [0], [1], [0, 0, 1, 1], [], []>} : vector<256x128xf32>, vector<128x128xf32>, vector<256x128xf32> -> vector<256x128xf32>
    %86 = arith.addf %80, %85 : vector<256x128xf32>
    %c1_121 = arith.constant 1 : index
    %c7_122 = arith.constant 7 : index
    %c0_123 = arith.constant 0 : index
    %87 = vector.load %arg8[%c1_121, %c7_122, %c0_123] : memref<18x25x128xf32, #tpu.memory_space<vmem>>, vector<16x16x128xf32>
    %88 = vector.shape_cast %87 : vector<16x16x128xf32> to vector<256x128xf32>
    %c1_124 = arith.constant 1 : index
    %c1_125 = arith.constant 1 : index
    %c0_126 = arith.constant 0 : index
    %c0_127 = arith.constant 0 : index
    %c0_128 = arith.constant 0 : index
    %89 = vector.load %arg2[%c1_124, %c1_125, %c0_126, %c0_127, %c0_128] : memref<2x3x3x128x128xf32, #tpu.memory_space<vmem>>, vector<1x1x1x128x128xf32>
    %90 = vector.shape_cast %89 : vector<1x1x1x128x128xf32> to vector<128x128xf32>
    %cst_129 = arith.constant dense<0.000000e+00> : vector<256x128xf32>
    %91 = tpu.matmul %88, %90, %cst_129 {dimension_numbers = #tpu.dot_dimension_numbers<[1], [0], [0], [1], [0, 0, 1, 1], [], []>} : vector<256x128xf32>, vector<128x128xf32>, vector<256x128xf32> -> vector<256x128xf32>
    %92 = arith.addf %86, %91 : vector<256x128xf32>
    %c1_130 = arith.constant 1 : index
    %c8_131 = arith.constant 8 : index
    %c0_132 = arith.constant 0 : index
    %93 = vector.load %arg8[%c1_130, %c8_131, %c0_132] : memref<18x25x128xf32, #tpu.memory_space<vmem>>, vector<16x16x128xf32>
    %94 = vector.shape_cast %93 : vector<16x16x128xf32> to vector<256x128xf32>
    %c1_133 = arith.constant 1 : index
    %c1_134 = arith.constant 1 : index
    %c1_135 = arith.constant 1 : index
    %c0_136 = arith.constant 0 : index
    %c0_137 = arith.constant 0 : index
    %95 = vector.load %arg2[%c1_133, %c1_134, %c1_135, %c0_136, %c0_137] : memref<2x3x3x128x128xf32, #tpu.memory_space<vmem>>, vector<1x1x1x128x128xf32>
    %96 = vector.shape_cast %95 : vector<1x1x1x128x128xf32> to vector<128x128xf32>
    %cst_138 = arith.constant dense<0.000000e+00> : vector<256x128xf32>
    %97 = tpu.matmul %94, %96, %cst_138 {dimension_numbers = #tpu.dot_dimension_numbers<[1], [0], [0], [1], [0, 0, 1, 1], [], []>} : vector<256x128xf32>, vector<128x128xf32>, vector<256x128xf32> -> vector<256x128xf32>
    %98 = arith.addf %92, %97 : vector<256x128xf32>
    %c1_139 = arith.constant 1 : index
    %c9_140 = arith.constant 9 : index
    %c0_141 = arith.constant 0 : index
    %99 = vector.load %arg8[%c1_139, %c9_140, %c0_141] : memref<18x25x128xf32, #tpu.memory_space<vmem>>, vector<16x16x128xf32>
    %100 = vector.shape_cast %99 : vector<16x16x128xf32> to vector<256x128xf32>
    %c1_142 = arith.constant 1 : index
    %c1_143 = arith.constant 1 : index
    %c2_144 = arith.constant 2 : index
    %c0_145 = arith.constant 0 : index
    %c0_146 = arith.constant 0 : index
    %101 = vector.load %arg2[%c1_142, %c1_143, %c2_144, %c0_145, %c0_146] : memref<2x3x3x128x128xf32, #tpu.memory_space<vmem>>, vector<1x1x1x128x128xf32>
    %102 = vector.shape_cast %101 : vector<1x1x1x128x128xf32> to vector<128x128xf32>
    %cst_147 = arith.constant dense<0.000000e+00> : vector<256x128xf32>
    %103 = tpu.matmul %100, %102, %cst_147 {dimension_numbers = #tpu.dot_dimension_numbers<[1], [0], [0], [1], [0, 0, 1, 1], [], []>} : vector<256x128xf32>, vector<128x128xf32>, vector<256x128xf32> -> vector<256x128xf32>
    %104 = arith.addf %98, %103 : vector<256x128xf32>
    %c2_148 = arith.constant 2 : index
    %c7_149 = arith.constant 7 : index
    %c0_150 = arith.constant 0 : index
    %105 = vector.load %arg8[%c2_148, %c7_149, %c0_150] : memref<18x25x128xf32, #tpu.memory_space<vmem>>, vector<16x16x128xf32>
    %106 = vector.shape_cast %105 : vector<16x16x128xf32> to vector<256x128xf32>
    %c1_151 = arith.constant 1 : index
    %c2_152 = arith.constant 2 : index
    %c0_153 = arith.constant 0 : index
    %c0_154 = arith.constant 0 : index
    %c0_155 = arith.constant 0 : index
    %107 = vector.load %arg2[%c1_151, %c2_152, %c0_153, %c0_154, %c0_155] : memref<2x3x3x128x128xf32, #tpu.memory_space<vmem>>, vector<1x1x1x128x128xf32>
    %108 = vector.shape_cast %107 : vector<1x1x1x128x128xf32> to vector<128x128xf32>
    %cst_156 = arith.constant dense<0.000000e+00> : vector<256x128xf32>
    %109 = tpu.matmul %106, %108, %cst_156 {dimension_numbers = #tpu.dot_dimension_numbers<[1], [0], [0], [1], [0, 0, 1, 1], [], []>} : vector<256x128xf32>, vector<128x128xf32>, vector<256x128xf32> -> vector<256x128xf32>
    %110 = arith.addf %104, %109 : vector<256x128xf32>
    %c2_157 = arith.constant 2 : index
    %c8_158 = arith.constant 8 : index
    %c0_159 = arith.constant 0 : index
    %111 = vector.load %arg8[%c2_157, %c8_158, %c0_159] : memref<18x25x128xf32, #tpu.memory_space<vmem>>, vector<16x16x128xf32>
    %112 = vector.shape_cast %111 : vector<16x16x128xf32> to vector<256x128xf32>
    %c1_160 = arith.constant 1 : index
    %c2_161 = arith.constant 2 : index
    %c1_162 = arith.constant 1 : index
    %c0_163 = arith.constant 0 : index
    %c0_164 = arith.constant 0 : index
    %113 = vector.load %arg2[%c1_160, %c2_161, %c1_162, %c0_163, %c0_164] : memref<2x3x3x128x128xf32, #tpu.memory_space<vmem>>, vector<1x1x1x128x128xf32>
    %114 = vector.shape_cast %113 : vector<1x1x1x128x128xf32> to vector<128x128xf32>
    %cst_165 = arith.constant dense<0.000000e+00> : vector<256x128xf32>
    %115 = tpu.matmul %112, %114, %cst_165 {dimension_numbers = #tpu.dot_dimension_numbers<[1], [0], [0], [1], [0, 0, 1, 1], [], []>} : vector<256x128xf32>, vector<128x128xf32>, vector<256x128xf32> -> vector<256x128xf32>
    %116 = arith.addf %110, %115 : vector<256x128xf32>
    %c2_166 = arith.constant 2 : index
    %c9_167 = arith.constant 9 : index
    %c0_168 = arith.constant 0 : index
    %117 = vector.load %arg8[%c2_166, %c9_167, %c0_168] : memref<18x25x128xf32, #tpu.memory_space<vmem>>, vector<16x16x128xf32>
    %118 = vector.shape_cast %117 : vector<16x16x128xf32> to vector<256x128xf32>
    %c1_169 = arith.constant 1 : index
    %c2_170 = arith.constant 2 : index
    %c2_171 = arith.constant 2 : index
    %c0_172 = arith.constant 0 : index
    %c0_173 = arith.constant 0 : index
    %119 = vector.load %arg2[%c1_169, %c2_170, %c2_171, %c0_172, %c0_173] : memref<2x3x3x128x128xf32, #tpu.memory_space<vmem>>, vector<1x1x1x128x128xf32>
    %120 = vector.shape_cast %119 : vector<1x1x1x128x128xf32> to vector<128x128xf32>
    %cst_174 = arith.constant dense<0.000000e+00> : vector<256x128xf32>
    %121 = tpu.matmul %118, %120, %cst_174 {dimension_numbers = #tpu.dot_dimension_numbers<[1], [0], [0], [1], [0, 0, 1, 1], [], []>} : vector<256x128xf32>, vector<128x128xf32>, vector<256x128xf32> -> vector<256x128xf32>
    %122 = arith.addf %116, %121 : vector<256x128xf32>
    %c1_175 = arith.constant 1 : index
    %c0_176 = arith.constant 0 : index
    %c0_177 = arith.constant 0 : index
    %123 = vector.load %arg3[%c1_175, %c0_176, %c0_177] : memref<2x1x128xf32, #tpu.memory_space<vmem>>, vector<1x1x128xf32>
    %124 = vector.shape_cast %123 : vector<1x1x128xf32> to vector<1x128xf32>
    %125 = vector.broadcast %124 : vector<1x128xf32> to vector<256x128xf32>
    %126 = arith.addf %122, %125 : vector<256x128xf32>
    %cst_178 = arith.constant 0.000000e+00 : f32
    %127 = vector.broadcast %cst_178 : f32 to vector<256x128xf32>
    %128 = arith.maximumf %126, %127 : vector<256x128xf32>
    %c0_179 = arith.constant 0 : index
    %c0_180 = arith.constant 0 : index
    %129 = vector.load %arg4[%c0_179, %c0_180] : memref<1x128xf32, #tpu.memory_space<vmem>>, vector<1x128xf32>
    %130 = vector.broadcast %129 : vector<1x128xf32> to vector<256x128xf32>
    %131 = arith.mulf %128, %130 : vector<256x128xf32>
    %c0_181 = arith.constant 0 : index
    %c0_182 = arith.constant 0 : index
    %132 = vector.load %arg5[%c0_181, %c0_182] : memref<1x128xf32, #tpu.memory_space<vmem>>, vector<1x128xf32>
    %133 = vector.broadcast %132 : vector<1x128xf32> to vector<256x128xf32>
    %134 = arith.addf %131, %133 : vector<256x128xf32>
    %135 = vector.shape_cast %134 : vector<256x128xf32> to vector<8x2x16x128xf32>
    %136 = vector.extract_strided_slice %135 {offsets = [0, 0, 0, 0], sizes = [8, 1, 16, 128], strides = [1, 1, 1, 1]} : vector<8x2x16x128xf32> to vector<8x1x16x128xf32>
    %137 = vector.shape_cast %136 : vector<8x1x16x128xf32> to vector<8x16x128xf32>
    %138 = vector.extract_strided_slice %135 {offsets = [0, 1, 0, 0], sizes = [8, 1, 16, 128], strides = [1, 1, 1, 1]} : vector<8x2x16x128xf32> to vector<8x1x16x128xf32>
    %139 = vector.shape_cast %138 : vector<8x1x16x128xf32> to vector<8x16x128xf32>
    %140 = arith.maximumf %137, %139 : vector<8x16x128xf32>
    %141 = vector.shape_cast %140 : vector<8x16x128xf32> to vector<128x128xf32>
    %c0_183 = arith.constant 0 : index
    %c0_184 = arith.constant 0 : index
    %c0_185 = arith.constant 0 : index
    %142 = vector.load %arg6[%c0_183, %c0_184, %c0_185] : memref<2x64x128xf32, #tpu.memory_space<vmem>>, vector<1x64x128xf32>
    %143 = vector.shape_cast %142 : vector<1x64x128xf32> to vector<64x128xf32>
    %cst_186 = arith.constant dense<0.000000e+00> : vector<64x128xf32>
    %144 = tpu.matmul %143, %141, %cst_186 {dimension_numbers = #tpu.dot_dimension_numbers<[1], [0], [0], [1], [0, 0, 1, 1], [], []>} : vector<64x128xf32>, vector<128x128xf32>, vector<64x128xf32> -> vector<64x128xf32>
    %c1_187 = arith.constant 1 : index
    %c0_188 = arith.constant 0 : index
    %c0_189 = arith.constant 0 : index
    %145 = vector.load %arg6[%c1_187, %c0_188, %c0_189] : memref<2x64x128xf32, #tpu.memory_space<vmem>>, vector<1x64x128xf32>
    %146 = vector.shape_cast %145 : vector<1x64x128xf32> to vector<64x128xf32>
    %cst_190 = arith.constant dense<0.000000e+00> : vector<64x128xf32>
    %147 = tpu.matmul %146, %141, %cst_190 {dimension_numbers = #tpu.dot_dimension_numbers<[1], [0], [0], [1], [0, 0, 1, 1], [], []>} : vector<64x128xf32>, vector<128x128xf32>, vector<64x128xf32> -> vector<64x128xf32>
    %148 = arith.maximumf %144, %147 : vector<64x128xf32>
    %c0_191 = arith.constant 0 : index
    %c0_192 = arith.constant 0 : index
    %c0_193 = arith.constant 0 : index
    %149 = vector.load %arg7[%c0_191, %c0_192, %c0_193] : memref<1x64x128xf32, #tpu.memory_space<vmem>>, vector<1x64x128xf32>
    %150 = vector.shape_cast %149 : vector<1x64x128xf32> to vector<64x128xf32>
    %151 = vector.shape_cast %148 : vector<64x128xf32> to vector<1x64x128xf32>
    tpu.vector_store %arg7[%c0_191, %c0_192, %c0_193], %151 {strides = array<i32>} : memref<1x64x128xf32, #tpu.memory_space<vmem>>, vector<1x64x128xf32>,
    return
  }
  func.func @transform_0(%arg0: i32) -> (i32, i32, i32, i32) {
    %c0_i32 = arith.constant 0 : i32
    %c0_i32_0 = arith.constant 0 : i32
    %c0_i32_1 = arith.constant 0 : i32
    %c0_i32_2 = arith.constant 0 : i32
    return %arg0, %c0_i32, %c0_i32_0, %c0_i32_1 : i32, i32, i32, i32
  }
  func.func @transform_1(%arg0: i32) -> (i32, i32, i32, i32, i32) {
    %c0_i32 = arith.constant 0 : i32
    %c0_i32_0 = arith.constant 0 : i32
    %c0_i32_1 = arith.constant 0 : i32
    %c0_i32_2 = arith.constant 0 : i32
    %c0_i32_3 = arith.constant 0 : i32
    %c0_i32_4 = arith.constant 0 : i32
    return %c0_i32, %c0_i32_0, %c0_i32_1, %c0_i32_2, %c0_i32_3 : i32, i32, i32, i32, i32
  }
  func.func @transform_2(%arg0: i32) -> (i32, i32, i32) {
    %c0_i32 = arith.constant 0 : i32
    %c0_i32_0 = arith.constant 0 : i32
    %c0_i32_1 = arith.constant 0 : i32
    %c0_i32_2 = arith.constant 0 : i32
    return %c0_i32, %c0_i32_0, %c0_i32_1 : i32, i32, i32
  }
  func.func @transform_3(%arg0: i32) -> (i32, i32) {
    %c0_i32 = arith.constant 0 : i32
    %c0_i32_0 = arith.constant 0 : i32
    %c0_i32_1 = arith.constant 0 : i32
    return %c0_i32, %c0_i32_0 : i32, i32
  }
  func.func @transform_4(%arg0: i32) -> (i32, i32) {
    %c0_i32 = arith.constant 0 : i32
    %c0_i32_0 = arith.constant 0 : i32
    %c0_i32_1 = arith.constant 0 : i32
    return %c0_i32, %c0_i32_0 : i32, i32
  }
  func.func @transform_5(%arg0: i32) -> (i32, i32, i32) {
    %c0_i32 = arith.constant 0 : i32
    %c0_i32_0 = arith.constant 0 : i32
    %c0_i32_1 = arith.constant 0 : i32
    %c0_i32_2 = arith.constant 0 : i32
    return %c0_i32, %c0_i32_0, %c0_i32_1 : i32, i32, i32
  }
  func.func @transform_6(%arg0: i32) -> (i32, i32, i32) {
    %c0_i32 = arith.constant 0 : i32
    %c0_i32_0 = arith.constant 0 : i32
    %c0_i32_1 = arith.constant 0 : i32
    return %arg0, %c0_i32, %c0_i32_0 : i32, i32, i32
  }
}

</mosaic_0001>

<bundles_post_ra>
// kernel: tpu_custom_call.1
= control target key start
LH: loop header
LB: loop body
LE: loop exit
PB: predicated region body
PF: predicated region fallthrough
CT: control target
= control target key end

     0   :  { %11 = vsyncpa [#allocation4], 0  ;;  %s11937_s0 = inlined_call_operand.hbm [shape: f32[2,16,16,128], index: 0, kind: input, shape index: {}]   ;;  %s11938_s1 = inlined_call_operand.hbm [shape: f32[2,3,3,128,128], index: 1, kind: input, shape index: {}]   ;;  %s11939_s2 = inlined_call_operand.hbm [shape: f32[2,1,128], index: 2, kind: input, shape index: {}]   ;;  %s11940_s3 = inlined_call_operand.hbm [shape: f32[1,128], index: 3, kind: input, shape index: {}]   ;;  %s11941_s4 = inlined_call_operand.hbm [shape: f32[1,128], index: 4, kind: input, shape index: {}]   ;;  %s11942_s5 = inlined_call_operand.hbm [shape: f32[2,64,128], index: 5, kind: input, shape index: {}]   ;;  %s11943_s6 = inlined_call_operand.hbm [shape: f32[2,64,128], index: 6, kind: output, shape index: {}]  }
   0x1   :  { %13 = vsyncpa [#allocation4 + $0x1], 0 }
   0x2   :  { %14 = vsyncpa [#allocation7], 0 }
   0x3   :  { %15 = vsyncpa [#allocation10], 0 }
   0x4   :  { %16 = vsyncpa [#allocation13], 0 }
   0x5   :  { %17 = vsyncpa [#allocation5], 0 }
   0x6   :  { %19 = vsyncpa [#allocation5 + $0x1], 0  ;;  %s10532_s21 = smov 0   ;;  %s10534_s22 = smov 0  }
   0x7   :  { %s10536_s23 = smov 0   ;;  %s10538_s24 = smov 0  }
   0x8 LB: > { %s10483_s25 = smov [#allocation6]   ;;  %s10553_s27 = sadd.s32 4294967295, %s10481_s24   ;;  %s10481_s24 = sphi %s10538_s24, %s12200_s24   ;;  %s10477_s23 = sphi %s10536_s23, %s12199_s23   ;;  %s10473_s22 = sphi %s10534_s22, %s12198_s22   ;;  %s10469_s21 = sphi %s10532_s21, %s12197_s21  }
   0x9   : > { %s199_s26 = sshll.u32 %s10483_s25, 4  ;;  %p6504_p0 = scmp.ge.s32.totalorder %s10481_s24, 1  ;;  %s10558_s26 = int_to_ptr.vmem [resolvable:$true] %s199_s26 }
   0xa   : > { %p11948_p1 = scmp.eq.s32.totalorder %s10553_s27, 0  ;;  %p187_p2 = scmp.lt.s32.totalorder %s10481_s24, 3 }
   0xb   : > { %s10484_s29 = smov [#allocation9]   ;;  %s10485_s8 = smov [#allocation8]  }
   0xc   : > { %p10560_p3 = pnand %p6504_p0, %p187_p2  ;;  %s226_s30 = sshll.u32 %s10484_s29, 4  ;;  %s10573_s30 = int_to_ptr.vmem [resolvable:$true] %s226_s30 }
   0xd   : > { %s212_s9 = sshll.u32 %s10485_s8, 4  ;;  %s10233_s12 = scalar_lea.hbm %s11938_s1, 36864  ;;  %s10575_s9 = int_to_ptr.vmem [resolvable:$true] %s212_s9 }
   0xe   : > { %s12027_s28 = scalar_select %p10560_p3, 1, 0 }
   0xf   : > { %p10149_p5 = pneg %p10560_p3  ;;  %p10234_p7 = scmp.ne.s32.totalorder %s11938_s1, %s10233_s12 }
  0x10   : > { %p10240_p11 = scmp.lt.u32.totalorder %s10233_s12, %s11938_s1 }
  0x11   : > { %p10569_p6 = pnand %p10149_p5, %p11948_p1 }
  0x13   : > { %p10585_p8 = pneg %p10569_p6 }
  0x15   : > { %p10236_p9 = pnand %p10585_p8, %p10234_p7 }
  0x17   : > { %p10237_p10 = pneg %p10236_p9 }
  0x19   : > { %p10242_p12 = pnand %p10240_p11, %p10237_p10 }
  0x1b   : > { %10245 = shalt.err (!%p10242_p12)
}
  0x1c   : > { %s10246_s18 = scalar_lea.vmem %s10558_s26, 36864  ;;  %p10254_p5 = scmp.lt.s32.totalorder %s10558_s26, %s10558_s26 }
  0x1d   : > { %p10247_p13 = scmp.ne.s32.totalorder %s10558_s26, %s10246_s18  ;;  %p10255_p4 = scmp.lt.s32.totalorder %s10246_s18, %s10246_s18 }
  0x1f   : > { %p10249_p0 = pnand %p10247_p13, %p10585_p8  ;;  %p10256_p7 = por %p10255_p4, %p10254_p5 }
  0x21   : > { %p10250_p2 = pneg %p10249_p0 }
  0x23   : > { %p10257_p9 = pnand %p10256_p7, %p10250_p2 }
  0x25   : > { %10260 = shalt.err (!%p10257_p9)
}
  0x26   : > { %s11944_s19 = smov 128   ;;  %s11946_s20 = smov 8  }
  0x27   : > { %10152 = dma.hbm_to_vmem [thread:$0]  (!%p10569_p6), %s11938_s1, 36864, %s10558_s26, [#allocation7], %s11944_s19, %s11944_s19, %s11946_s20  }
  0x28   : > { %s10261_s11 = scalar_lea.hbm %s11940_s3, 16 }
  0x29   : > { %p10262_p4 = scmp.ne.s32.totalorder %s11940_s3, %s10261_s11  ;;  %p10268_p12 = scmp.lt.u32.totalorder %s10261_s11, %s11940_s3 }
  0x2b   : > { %p10264_p10 = pnand %p10262_p4, %p10585_p8 }
  0x2d   : > { %p10265_p11 = pneg %p10264_p10 }
  0x2f   : > { %p10270_p13 = pnand %p10268_p12, %p10265_p11 }
  0x31   : > { %10273 = shalt.err (!%p10270_p13)
}
  0x32   : > { %s10274_s26 = scalar_lea.vmem %s10573_s30, 16  ;;  %s10281_s17 = scalar_lea.vmem %s10573_s30, 32 }
  0x33   : > { %p10275_p0 = scmp.ne.s32.totalorder %s10573_s30, %s10274_s26  ;;  %p10282_p7 = scmp.lt.s32.totalorder %s10573_s30, %s10573_s30 }
  0x34   : > { %p10283_p9 = scmp.lt.s32.totalorder %s10281_s17, %s10274_s26 }
  0x35   : > { %p10277_p2 = pnand %p10275_p0, %p10585_p8 }
  0x36   : > { %p10284_p4 = por %p10283_p9, %p10282_p7 }
  0x37   : > { %p10278_p5 = pneg %p10277_p2 }
  0x39   : > { %p10285_p10 = pnand %p10284_p4, %p10278_p5 }
  0x3b   : > { %10288 = shalt.err (!%p10285_p10)
}
  0x3c   : > { %10158 = dma.hbm_to_vmem [thread:$0]  (!%p10569_p6), %s11940_s3, 16, %s10573_s30, [#allocation10]  }
  0x3d   : > { %s10289_s10 = scalar_lea.hbm %s11939_s2, 32 }
  0x3e   : > { %p10290_p11 = scmp.ne.s32.totalorder %s11939_s2, %s10289_s10  ;;  %p10296_p0 = scmp.lt.u32.totalorder %s10289_s10, %s11939_s2 }
  0x40   : > { %p10292_p12 = pnand %p10290_p11, %p10585_p8 }
  0x42   : > { %p10293_p13 = pneg %p10292_p12 }
  0x44   : > { %p10298_p2 = pnand %p10296_p0, %p10293_p13 }
  0x46   : > { %10301 = shalt.err (!%p10298_p2)
}
  0x47   : > { %s10302_s30 = scalar_lea.vmem %s10575_s9, 32  ;;  %p10310_p4 = scmp.lt.s32.totalorder %s10575_s9, %s10575_s9 }
  0x48   : > { %p10303_p5 = scmp.ne.s32.totalorder %s10575_s9, %s10302_s30  ;;  %p10311_p10 = scmp.lt.s32.totalorder %s10302_s30, %s10302_s30 }
  0x4a   : > { %p10305_p7 = pnand %p10303_p5, %p10585_p8  ;;  %p10312_p11 = por %p10311_p10, %p10310_p4 }
  0x4c   : > { %p10306_p9 = pneg %p10305_p7 }
  0x4e   : > { %p10313_p12 = pnand %p10312_p11, %p10306_p9 }
  0x50   : > { %10316 = shalt.err (!%p10313_p12)
}
  0x51   : > { %s10488_s16 = smov 16   ;;  %s10489_s26 = smov 1  }
  0x52   : > { %10155 = dma.hbm_to_vmem [thread:$0]  (!%p10569_p6), %s11939_s2, 32, %s10575_s9, [#allocation7], %s10488_s16, %s10488_s16, %s10489_s26  }
  0x53   : > { %s10490_s25 = smov [#allocation11]   ;;  %s10491_s8 = smov [#allocation12]  }
  0x54   : > { %s237_s29 = sshll.u32 %s10490_s25, 4  ;;  %s247_s10 = sshll.u32 %s10491_s8, 4  ;;  %s238_s29 = int_to_ptr.vmem [resolvable:$true] %s237_s29  ;;  %s248_s10 = int_to_ptr.vmem [resolvable:$true] %s247_s10 }
  0x55   : > { %s10317_s13 = scalar_lea.hbm %s11941_s4, 16 }
  0x56   : > { %p10318_p13 = scmp.ne.s32.totalorder %s11941_s4, %s10317_s13  ;;  %p10324_p5 = scmp.lt.u32.totalorder %s10317_s13, %s11941_s4 }
  0x58   : > { %p10320_p0 = pnand %p10318_p13, %p10585_p8 }
  0x5a   : > { %p10321_p2 = pneg %p10320_p0 }
  0x5c   : > { %p10326_p7 = pnand %p10324_p5, %p10321_p2 }
  0x5e   : > { %10329 = shalt.err (!%p10326_p7)
}
  0x5f   : > { %s10330_s9 = scalar_lea.vmem %s238_s29, 16  ;;  %s10337_s16 = scalar_lea.vmem %s238_s29, 32 }
  0x60   : > { %p10331_p9 = scmp.ne.s32.totalorder %s238_s29, %s10330_s9  ;;  %p10338_p11 = scmp.lt.s32.totalorder %s238_s29, %s238_s29 }
  0x61   : > { %p10339_p12 = scmp.lt.s32.totalorder %s10337_s16, %s10330_s9 }
  0x62   : > { %p10333_p4 = pnand %p10331_p9, %p10585_p8 }
  0x63   : > { %p10340_p1 = por %p10339_p12, %p10338_p11 }
  0x64   : > { %p10334_p10 = pneg %p10333_p4 }
  0x66   : > { %p10341_p3 = pnand %p10340_p1, %p10334_p10 }
  0x68   : > { %10344 = shalt.err (!%p10341_p3)
}
  0x69   : > { %10161 = dma.hbm_to_vmem [thread:$0]  (!%p10569_p6), %s11941_s4, 16, %s238_s29, [#allocation10]  }
  0x6a   : > { %s10345_s18 = scalar_lea.hbm %s11942_s5, 2048 }
  0x6b   : > { %p10346_p13 = scmp.ne.s32.totalorder %s11942_s5, %s10345_s18  ;;  %p10352_p3 = scmp.lt.u32.totalorder %s10345_s18, %s11942_s5 }
  0x6d   : > { %p10348_p0 = pnand %p10346_p13, %p10585_p8 }
  0x6f   : > { %p10349_p1 = pneg %p10348_p0 }
  0x71   : > { %p10354_p2 = pnand %p10352_p3, %p10349_p1 }
  0x73   : > { %10357 = shalt.err (!%p10354_p2)
}
  0x74   : > { %s10358_s13 = scalar_lea.vmem %s248_s10, 2048  ;;  %p10366_p4 = scmp.lt.s32.totalorder %s248_s10, %s248_s10 }
  0x75   : > { %p10359_p5 = scmp.ne.s32.totalorder %s248_s10, %s10358_s13  ;;  %p10367_p10 = scmp.lt.s32.totalorder %s10358_s13, %s10358_s13 }
  0x77   : > { %p10361_p7 = pnand %p10359_p5, %p10585_p8  ;;  %p10368_p11 = por %p10367_p10, %p10366_p4 }
  0x79   : > { %p10362_p9 = pneg %p10361_p7 }
  0x7b   : > { %p10369_p12 = pnand %p10368_p11, %p10362_p9 }
  0x7d   : > { %10372 = shalt.err (!%p10369_p12)
}
  0x7e   : > { %s12030_s29 = smov 8   ;;  %s12031_s14 = smov 128  }
  0x7f   : > { %10164 = dma.hbm_to_vmem [thread:$0]  (!%p10569_p6), %s11942_s5, 2048, %s248_s10, [#allocation13], %s12031_s14, %s12031_s14, %s12030_s29  }
  0x80   : > { %s6503_s7 = sadd.s32 4294967294, %s10481_s24   ;;  %s10697_s15 = sadd.s32 1, %s10481_s24  }
  0x81   : > { %s32_s16 = sadd.s32 1, %s10477_s23  ;;  %s29_s26 = ssub.s32 %s10481_s24, %s10697_s15 }
  0x82   : > { %p39_p8 = scmp.ne.s32.totalorder %s10477_s23, %s10473_s22  ;;  %p30_p13 = scmp.eq.s32.totalorder %s29_s26, 0 }
  0x83   : > { %p40_p0 = scmp.eq.s32.totalorder %s10481_s24, 0  ;;  %p45_p1 = scmp.ne.s32.totalorder %s10473_s22, %s10469_s21 }
  0x84   : > { %p174_p3 = scmp.eq.s32.totalorder %s10553_s27, 1  ;;  %p12032_p5 = scmp.eq.s32.totalorder %s10553_s27, 0 }
  0x85   : > { %s10709_s17 = scalar_select %p30_p13, %s10477_s23, %s32_s16  }
  0x86   : > { %p41_p2 = por %p40_p0, %p39_p8  ;;  %p10713_p7 = por %p12032_p5, %p45_p1 }
  0x87   : > { %p10717_p6 = por %p174_p3, %p39_p8  ;;  %p180_p9 = scmp.eq.s32.totalorder %s6503_s7, 1 }
  0x88   : > { %p10178_p4 = scmp.lt.s32.totalorder %s10481_s24, 2  ;;  %s261_s20 = sand.u32 1, %s10477_s23  }
  0x89   : > { %s12034_s10 = scalar_select %p10717_p6, 1, 0 }
  0x8a   : > { %p10723_p10 = por %p180_p9, %p45_p1  ;;  %s6511_s25 = sshll.u32 %s261_s20, 8 }
  0x8b   : > { %s6531_s8 = sshll.u32 %s10481_s24, 12  ;;  %s265_s30 = scalar_lea.vmem [#allocation3], %s6511_s25 }
  0x8c   : > { %s12035_s18 = scalar_select %p10723_p10, 1, 0 }
  0x8d   : > { %s10731_s13 = scalar_lea.hbm %s11937_s0, %s6531_s8  ;;  %s272_s9 = sshll.u32 %s265_s30, 4  ;;  %s10737_s9 = int_to_ptr.vmem [resolvable:$true] %s272_s9 }
  0x8e   : > { %p10733_p11 = pnand %p10178_p4, %p41_p2  ;;  %s10739_s16 = scalar_lea.sflag [#allocation4], %s261_s20 }
  0x8f   : > { %s10373_s26 = scalar_lea.hbm %s10731_s13, 4096  ;;  %s10378_s11 = scalar_lea.hbm %s11937_s0, 8192 }
  0x90   : > { %p10374_p12 = scmp.ne.s32.totalorder %s10731_s13, %s10373_s26  ;;  %p10375_p8 = pneg %p10733_p11 }
  0x91   : > { %p10379_p1 = scmp.lt.u32.totalorder %s10731_s13, %s11937_s0  ;;  %p10380_p3 = scmp.lt.u32.totalorder %s10378_s11, %s10373_s26 }
  0x92   : > { %p10376_p13 = pnand %p10375_p8, %p10374_p12  ;;  %p10382_p5 = scmp.lt.u32.totalorder %s10373_s26, %s10731_s13 }
  0x93   : > { %p10381_p2 = por %p10380_p3, %p10379_p1 }
  0x94   : > { %p10377_p0 = pneg %p10376_p13 }
  0x95   : > { %p10383_p9 = por %p10382_p5, %p10381_p2 }
  0x97   : > { %p10384_p4 = pnand %p10383_p9, %p10377_p0 }
  0x99   : > { %10387 = shalt.err (!%p10384_p4)
}
  0x9a   : > { %s10388_s20 = scalar_lea.vmem %s10737_s9, 4096  ;;  %s10492_s25 = smov [#allocation3]  }
  0x9b   : > { %p10389_p12 = scmp.ne.s32.totalorder %s10737_s9, %s10388_s20  ;;  %s10393_s8 = sshll.u32 %s10492_s25, 4  ;;  %s10394_s8 = int_to_ptr.vmem [resolvable:$false] %s10393_s8 }
  0x9c   : > { %s10395_s12 = scalar_lea.vmem %s10394_s8, 8192  ;;  %p10396_p6 = scmp.lt.s32.totalorder %s10737_s9, %s10394_s8 }
  0x9d   : > { %p10391_p13 = pnand %p10389_p12, %p10375_p8  ;;  %p10397_p1 = scmp.lt.s32.totalorder %s10395_s12, %s10388_s20 }
  0x9f   : > { %p10392_p10 = pneg %p10391_p13  ;;  %p10398_p3 = por %p10397_p1, %p10396_p6 }
  0xa1   : > { %p10399_p2 = pnand %p10398_p3, %p10392_p10 }
  0xa3   : > { %10402 = shalt.err (!%p10399_p2)
}
  0xa4   : > { %10168 = dma.hbm_to_vmem [thread:$0]  (!%p10733_p11), %s10731_s13, 4096, %s10737_s9, %s10739_s16, %s12031_s14, %s12031_s14, %s12030_s29  }
  0xa5   : > { %p12037_p8 = scmp.ne.s32.totalorder %s12027_s28, 0 }
  0xa7   : > { %284 = sbr.rel (%p12037_p8) target bundleno = 1992 (0x7c8), region = 44 }
  0xae   : > { %s10773_s26 = sand.u32 1, %s10473_s22  }
  0xaf   : > { %s6515_s11 = sshll.u32 %s10773_s26, 8  ;;  %s287_s30 = scalar_lea.sflag [#allocation4], %s10773_s26 }
  0xb0   : > { %s10777_s20 = scalar_lea.vmem [#allocation3], %s6515_s11 }
  0xb1   : > { %10448 = dma.done.wait (%p10713_p7), %s287_s30, 4096  }
  0xb2   : > { %10450 = vsyncadd (%p10713_p7), %s287_s30, 4294963200  ;;  %p12038_p6 = scmp.eq.s32.totalorder %s10553_s27, 0 }
  0xb4   : > { %10452 = dma.done.wait (%p12038_p6), [#allocation7], 36896   ;;  %p12039_p10 = pmov %p12038_p6 }
  0xb5   : > { %p12040_p11 = pmov %p12038_p6 }
  0xb6   : > { %10454 = vsyncadd (%p12039_p10), [#allocation7], 4294930400 }
  0xb7   : > { %10456 = dma.done.wait (%p12040_p11), [#allocation10], 32   ;;  %p12041_p0 = pmov %p12038_p6 }
  0xb9   : > { %10458 = vsyncadd (%p12041_p0), [#allocation10], 4294967264  ;;  %p12042_p5 = pmov %p12041_p0 }
  0xba   : > { %p12043_p9 = pmov %p12041_p0 }
  0xbb   : > { %10460 = dma.done.wait (%p12042_p5), [#allocation13], 2048  }
  0xbc   : > { %10462 = vsyncadd (%p12043_p9), [#allocation13], 4294965248  ;;  %v10493_v0 = vmov 0.0   ;;  %v557_v1 = vld [vmem:[#allocation6 + $0x80] sm:$0xff]  ;;  %v558_v2 = vld [vmem:[#allocation6 + $0x88] sm:$0xff]  ;;  %s6521_s28 = sshll.u32 %s10773_s26, 6 }
  0xbd   : > { %340 = vst [vmem:[#allocation2 + $0x8] sm:$0xff] %v10493_v0  ;;  %7477 = vmatprep.mubr.f32.mxu0 %v10493_v0  ;;  %339 = vst [vmem:[#allocation2] sm:$0xff] %v10493_v0  ;;  %8197 = vmatprep.mubr.f32.mxu1 %v10493_v0  ;;  %v559_v3 = vld [vmem:[#allocation6 + $0x90] sm:$0xff]  ;;  %v8973_v4 = vpack.c.bf16 %v558_v2, %v557_v1  ;;  %v560_v5 = vld [vmem:[#allocation6 + $0x98] sm:$0xff]  ;;  %s338_s29 = scalar_lea.vmem [#allocation14], %s6521_s28  ;;  %s6532_s19 = sshll.u32 %s10553_s27, 10 }
  0xbe   : > { %341 = vst [vmem:[#allocation2 + $0x10] sm:$0xff] %v10493_v0  ;;  %342 = vst [vmem:[#allocation2 + $0x18] sm:$0x1] %v10493_v0  ;;  %v8977_v6 = vpack.c.bf16 %v560_v5, %v559_v3  ;;  %v561_v7 = vld [vmem:[#allocation6 + $0xa0] sm:$0xff]  ;;  %v562_v8 = vld [vmem:[#allocation6 + $0xa8] sm:$0xff]  ;;  %s6382_s14 = sshll.u32 %s338_s29, 4  ;;  %s11893_s7 = scalar_lea.hbm %s11943_s6, %s6532_s19  ;;  %s11888_s14 = int_to_ptr.vmem [resolvable:$true] %s6382_s14 }
  0xbf   : > { %343 = vst [vmem:[#allocation2 + $0x20] sm:$0xff] %v10493_v0  ;;  %346 = vst [vmem:[#allocation2 + $0x38] sm:$0x1] %v10493_v0  ;;  %8974 = vmatprep.subr.bf16.mxu0 %v8973_v4  ;;  %v8981_v9 = vpack.c.bf16 %v562_v8, %v561_v7  ;;  %v10838_v10 = vld [vmem:[%s10777_s20] sm:$0xff]  ;;  %v10841_v11 = vld [vmem:[%s10777_s20 + $0x8] sm:$0xff]  ;;  %s6369_s27 = scalar_lea.sflag [#allocation5], %s10773_s26 }
  0xc0   : > { %347 = vst [vmem:[#allocation2 + $0x40] sm:$0xff] %v10493_v0  ;;  %350 = vst [vmem:[#allocation2 + $0x58] sm:$0x1] %v10493_v0  ;;  %8976 = vmatpush3.bf16.msra.mxu0 %v8973_v4  ;;  %v563_v12 = vld [vmem:[#allocation6 + $0xb0] sm:$0xff]  ;;  %v564_v13 = vld [vmem:[#allocation6 + $0xb8] sm:$0xff]  ;;  %s10403_s16 = scalar_lea.vmem %s11888_s14, 1024 }
  0xc1   : > { %351 = vst [vmem:[#allocation2 + $0x60] sm:$0xff] %v10493_v0  ;;  %354 = vst [vmem:[#allocation2 + $0x78] sm:$0x1] %v10493_v0  ;;  %8978 = vmatprep.subr.bf16.mxu0 %v8977_v6  ;;  %v10846_v14 = vld [vmem:[%s10777_s20 + $0x10] sm:$0xff]  ;;  %v10850_v15 = vld [vmem:[%s10777_s20 + $0x18] sm:$0xff]  ;;  %v8985_v19 = vpack.c.bf16 %v564_v13, %v563_v12  ;;  %p10404_p7 = scmp.ne.s32.totalorder %s11888_s14, %s10403_s16  ;;  %p12194_p4 = scmp.ne.s32.totalorder %s12034_s10, 0 }
  0xc2   : > { %355 = vst [vmem:[#allocation2 + $0x80] sm:$0xff] %v10493_v0  ;;  %358 = vst [vmem:[#allocation2 + $0x98] sm:$0x1] %v10493_v0  ;;  %v10853_v16 = vld [vmem:[%s10777_s20 + $0x20] sm:$0xff]  ;;  %v10856_v17 = vld [vmem:[%s10777_s20 + $0x28] sm:$0xff]  ;;  %s10494_s25 = smov [#allocation14]  }
  0xc3   : > { %359 = vst [vmem:[#allocation2 + $0xa0] sm:$0xff] %v10493_v0  ;;  %362 = vst [vmem:[#allocation2 + $0xb8] sm:$0x1] %v10493_v0  ;;  %v10862_v18 = vld [vmem:[%s10777_s20 + $0x30] sm:$0xff]  ;;  %v10866_v20 = vld [vmem:[%s10777_s20 + $0x38] sm:$0xff]  ;;  %p10405_p12 = pnand %p10404_p7, %p12194_p4  ;;  %s10407_s8 = sshll.u32 %s10494_s25, 4  ;;  %s10408_s8 = int_to_ptr.vmem [resolvable:$false] %s10407_s8 }
  0xc4   : > { %363 = vst [vmem:[#allocation2 + $0xc0] sm:$0xff] %v10493_v0  ;;  %366 = vst [vmem:[#allocation2 + $0xd8] sm:$0x1] %v10493_v0  ;;  %8980 = vmatpush3.bf16.msra.mxu0 %v8977_v6  ;;  %v10869_v21 = vld [vmem:[%s10777_s20 + $0x40] sm:$0xff]  ;;  %v10872_v22 = vld [vmem:[%s10777_s20 + $0x48] sm:$0xff]  ;;  %s10409_s12 = scalar_lea.vmem %s10408_s8, 2048  ;;  %p10410_p1 = scmp.lt.s32.totalorder %s11888_s14, %s10408_s8 }
  0xc5   : > { %367 = vst [vmem:[#allocation2 + $0xe0] sm:$0xff] %v10493_v0  ;;  %370 = vst [vmem:[#allocation2 + $0xf8] sm:$0x1] %v10493_v0  ;;  %8982 = vmatprep.subr.bf16.mxu0 %v8981_v9  ;;  %v565_v23 = vld [vmem:[#allocation6 + $0xc0] sm:$0xff]  ;;  %v566_v24 = vld [vmem:[#allocation6 + $0xc8] sm:$0xff]  ;;  %p10406_p13 = pneg %p10405_p12  ;;  %p10411_p3 = scmp.lt.s32.totalorder %s10409_s12, %s10403_s16 }
  0xc6   : > { %371 = vst [vmem:[#allocation2 + $0x100] sm:$0xff] %v10493_v0  ;;  %374 = vst [vmem:[#allocation2 + $0x118] sm:$0x1] %v10493_v0  ;;  %v10878_v25 = vld [vmem:[%s10777_s20 + $0x50] sm:$0xff]  ;;  %v10882_v26 = vld [vmem:[%s10777_s20 + $0x58] sm:$0xff]  ;;  %v8989_v30 = vpack.c.bf16 %v566_v24, %v565_v23 }
  0xc7   : > { %375 = vst [vmem:[#allocation2 + $0x120] sm:$0xff] %v10493_v0  ;;  %378 = vst [vmem:[#allocation2 + $0x138] sm:$0x1] %v10493_v0  ;;  %v10885_v27 = vld [vmem:[%s10777_s20 + $0x60] sm:$0xff]  ;;  %v10888_v28 = vld [vmem:[%s10777_s20 + $0x68] sm:$0xff]  ;;  %p10412_p2 = por %p10411_p3, %p10410_p1 }
  0xc8   : > { %379 = vst [vmem:[#allocation2 + $0x140] sm:$0xff] %v10493_v0  ;;  %382 = vst [vmem:[#allocation2 + $0x158] sm:$0x1] %v10493_v0  ;;  %8984 = vmatpush3.bf16.msra.mxu0 %v8981_v9  ;;  %v10894_v29 = vld [vmem:[%s10777_s20 + $0x70] sm:$0xff]  ;;  %v10898_v31 = vld [vmem:[%s10777_s20 + $0x78] sm:$0xff] }
  0xc9   : > { %383 = vst [vmem:[#allocation2 + $0x160] sm:$0xff] %v10493_v0  ;;  %386 = vst [vmem:[#allocation2 + $0x178] sm:$0x1] %v10493_v0  ;;  %8986 = vmatprep.subr.bf16.mxu0 %v8985_v19  ;;  %v10901_v32 = vld [vmem:[%s10777_s20 + $0x80] sm:$0xff]  ;;  %v10904_v33 = vld [vmem:[%s10777_s20 + $0x88] sm:$0xff]  ;;  %p10413_p8 = pnand %p10412_p2, %p10406_p13 }
  0xca   : > { %387 = vst [vmem:[#allocation2 + $0x180] sm:$0xff] %v10493_v0  ;;  %390 = vst [vmem:[#allocation2 + $0x198] sm:$0x1] %v10493_v0  ;;  %v567_v34 = vld [vmem:[#allocation6 + $0xd0] sm:$0xff]  ;;  %v568_v35 = vld [vmem:[#allocation6 + $0xd8] sm:$0xff] }
  0xcb   : > { %391 = vst [vmem:[#allocation2 + $0x1a0] sm:$0xff] %v10493_v0  ;;  %394 = vst [vmem:[#allocation2 + $0x1b8] sm:$0x1] %v10493_v0  ;;  %v10910_v36 = vld [vmem:[%s10777_s20 + $0x90] sm:$0xff]  ;;  %v10914_v37 = vld [vmem:[%s10777_s20 + $0x98] sm:$0xff]  ;;  %v8993_v41 = vpack.c.bf16 %v568_v35, %v567_v34 }
  0xcc   : > { %395 = vst [vmem:[#allocation2 + $0x1c0] sm:$0xff] %v10493_v0  ;;  %398 = vst [vmem:[#allocation2 + $0x1d8] sm:$0x1] %v10493_v0  ;;  %v10917_v38 = vld [vmem:[%s10777_s20 + $0xa0] sm:$0xff]  ;;  %v10920_v39 = vld [vmem:[%s10777_s20 + $0xa8] sm:$0xff]  ;;  %8988 = vmatpush3.bf16.msra.mxu0 %v8985_v19 }
  0xcd   : > { %399 = vst [vmem:[#allocation2 + $0x1e0] sm:$0xff] %v10493_v0  ;;  %402 = vst [vmem:[#allocation2 + $0x1f8] sm:$0x1] %v10493_v0  ;;  %v10926_v40 = vld [vmem:[%s10777_s20 + $0xb0] sm:$0xff]  ;;  %8990 = vmatprep.subr.bf16.mxu0 %v8989_v30  ;;  %v10930_v42 = vld [vmem:[%s10777_s20 + $0xb8] sm:$0xff] }
  0xce   : > { %403 = vst [vmem:[#allocation2 + $0x200] sm:$0xff] %v10493_v0  ;;  %406 = vst [vmem:[#allocation2 + $0x218] sm:$0x1] %v10493_v0  ;;  %v10933_v43 = vld [vmem:[%s10777_s20 + $0xc0] sm:$0xff]  ;;  %v10936_v44 = vld [vmem:[%s10777_s20 + $0xc8] sm:$0xff] }
  0xcf   : > { %407 = vst [vmem:[#allocation2 + $0x220] sm:$0xff] %v10493_v0  ;;  %408 = vst [vmem:[#allocation2 + $0x228] sm:$0xff] %v10493_v0  ;;  %v569_v45 = vld [vmem:[#allocation6 + $0xe0] sm:$0xff]  ;;  %v570_v46 = vld [vmem:[#allocation6 + $0xe8] sm:$0xff] }
  0xd0   : > { %409 = vst [vmem:[#allocation2 + $0x230] sm:$0xff] %v10493_v0  ;;  %410 = vst [vmem:[#allocation2 + $0x238] sm:$0x1] %v10493_v0  ;;  %v10942_v47 = vld [vmem:[%s10777_s20 + $0xd0] sm:$0xff]  ;;  %v10946_v48 = vld [vmem:[%s10777_s20 + $0xd8] sm:$0xff]  ;;  %8992 = vmatpush3.bf16.msra.mxu0 %v8989_v30  ;;  %v8997_v51 = vpack.c.bf16 %v570_v46, %v569_v45 }
  0xd1   : > { %444 = vst [vmem:[#allocation2 + $0x28] sm:$0xff] %v10838_v10  ;;  %445 = vst [vmem:[#allocation2 + $0x30] sm:$0xff] %v10841_v11  ;;  %v10949_v49 = vld [vmem:[%s10777_s20 + $0xe0] sm:$0xff]  ;;  %v10952_v50 = vld [vmem:[%s10777_s20 + $0xe8] sm:$0xff]  ;;  %8994 = vmatprep.subr.bf16.mxu0 %v8993_v41 }
  0xd2   : > { %446 = vst [vmem:[#allocation2 + $0x48] sm:$0xff] %v10846_v14  ;;  %447 = vst [vmem:[#allocation2 + $0x50] sm:$0xff] %v10850_v15  ;;  %v571_v52 = vld [vmem:[#allocation6 + $0xf0] sm:$0xff]  ;;  %v572_v53 = vld [vmem:[#allocation6 + $0xf8] sm:$0xff] }
  0xd3   : > { %448 = vst [vmem:[#allocation2 + $0x68] sm:$0xff] %v10853_v16  ;;  %449 = vst [vmem:[#allocation2 + $0x70] sm:$0xff] %v10856_v17  ;;  %v9001_v54 = vpack.c.bf16 %v572_v53, %v571_v52  ;;  %v508_v55 = vld [vmem:[#allocation6] sm:$0xff]  ;;  %v509_v56 = vld [vmem:[#allocation6 + $0x8] sm:$0xff] }
  0xd4   : > { %450 = vst [vmem:[#allocation2 + $0x88] sm:$0xff] %v10862_v18  ;;  %451 = vst [vmem:[#allocation2 + $0x90] sm:$0xff] %v10866_v20  ;;  %8996 = vmatpush3.bf16.msra.mxu0 %v8993_v41  ;;  %v9005_v57 = vpack.c.bf16 %v509_v56, %v508_v55  ;;  %v510_v58 = vld [vmem:[#allocation6 + $0x10] sm:$0xff]  ;;  %v511_v59 = vld [vmem:[#allocation6 + $0x18] sm:$0xff] }
  0xd5   : > { %452 = vst [vmem:[#allocation2 + $0xa8] sm:$0xff] %v10869_v21  ;;  %453 = vst [vmem:[#allocation2 + $0xb0] sm:$0xff] %v10872_v22  ;;  %8998 = vmatprep.subr.bf16.mxu0 %v8997_v51  ;;  %v9009_v60 = vpack.c.bf16 %v511_v59, %v510_v58  ;;  %v512_v61 = vld [vmem:[#allocation6 + $0x20] sm:$0xff]  ;;  %v513_v62 = vld [vmem:[#allocation6 + $0x28] sm:$0xff] }
  0xd6   : > { %454 = vst [vmem:[#allocation2 + $0xc8] sm:$0xff] %v10878_v25  ;;  %455 = vst [vmem:[#allocation2 + $0xd0] sm:$0xff] %v10882_v26  ;;  %v9013_v63 = vpack.c.bf16 %v513_v62, %v512_v61  ;;  %v514_v1 = vld [vmem:[#allocation6 + $0x30] sm:$0xff]  ;;  %v515_v2 = vld [vmem:[#allocation6 + $0x38] sm:$0xff] }
  0xd7   : > { %456 = vst [vmem:[#allocation2 + $0xe8] sm:$0xff] %v10885_v27  ;;  %457 = vst [vmem:[#allocation2 + $0xf0] sm:$0xff] %v10888_v28  ;;  %v9017_v3 = vpack.c.bf16 %v515_v2, %v514_v1  ;;  %v516_v4 = vld [vmem:[#allocation6 + $0x40] sm:$0xff]  ;;  %v517_v5 = vld [vmem:[#allocation6 + $0x48] sm:$0xff] }
  0xd8   : > { %458 = vst [vmem:[#allocation2 + $0x108] sm:$0xff] %v10894_v29  ;;  %459 = vst [vmem:[#allocation2 + $0x110] sm:$0xff] %v10898_v31  ;;  %9000 = vmatpush3.bf16.msra.mxu0 %v8997_v51  ;;  %v518_v6 = vld [vmem:[#allocation6 + $0x50] sm:$0xff]  ;;  %v519_v7 = vld [vmem:[#allocation6 + $0x58] sm:$0xff] }
  0xd9   : > { %460 = vst [vmem:[#allocation2 + $0x128] sm:$0xff] %v10901_v32  ;;  %461 = vst [vmem:[#allocation2 + $0x130] sm:$0xff] %v10904_v33  ;;  %9002 = vmatprep.subr.bf16.mxu0 %v9001_v54  ;;  %v9025_v8 = vpack.c.bf16 %v519_v7, %v518_v6  ;;  %v520_v9 = vld [vmem:[#allocation6 + $0x60] sm:$0xff]  ;;  %v521_v12 = vld [vmem:[#allocation6 + $0x68] sm:$0xff] }
  0xda   : > { %462 = vst [vmem:[#allocation2 + $0x148] sm:$0xff] %v10910_v36  ;;  %12044 = vst [vmem:[#allocation20_spill] sm:$0xff] %v10917_v38  ;;  %v9029_v13 = vpack.c.bf16 %v521_v12, %v520_v9  ;;  %v522_v19 = vld [vmem:[#allocation6 + $0x70] sm:$0xff]  ;;  %v523_v23 = vld [vmem:[#allocation6 + $0x78] sm:$0xff] }
  0xdb   : > { %12045 = vst [vmem:[#allocation21_spill] sm:$0xff] %v10920_v39  ;;  %463 = vst [vmem:[#allocation2 + $0x150] sm:$0xff] %v10914_v37  ;;  %v9033_v24 = vpack.c.bf16 %v523_v23, %v522_v19  ;;  %v1056_v30 = vld [vmem:[#allocation6 + $0x100] sm:$0xff]  ;;  %v1057_v34 = vld [vmem:[#allocation6 + $0x108] sm:$0xff] }
  0xdc   : > { %464 = vst [vmem:[#allocation2 + $0x168] sm:$0xff] %v10917_v38  ;;  %465 = vst [vmem:[#allocation2 + $0x170] sm:$0xff] %v10920_v39  ;;  %9004 = vmatpush3.bf16.msra.mxu0 %v9001_v54  ;;  %v9037_v35 = vpack.c.bf16 %v1057_v34, %v1056_v30  ;;  %v476_v41 = vld [vmem:[#allocation2 + $0x7] sm:$0xff]  ;;  %v1058_v45 = vld [vmem:[#allocation6 + $0x110] sm:$0xff] }
  0xdd   : > { %12046 = vst [vmem:[#allocation22_spill] sm:$0xff] %v10926_v40  ;;  %466 = vst [vmem:[#allocation2 + $0x188] sm:$0xff] %v10926_v40  ;;  %9006 = vmatprep.subr.bf16.mxu0 %v9005_v57  ;;  %v1059_v46 = vld [vmem:[#allocation6 + $0x118] sm:$0xff]  ;;  %v477_v51 = vld [vmem:[#allocation2 + $0xf] sm:$0xff] }
  0xde   : > { %12047 = vst [vmem:[#allocation23_spill] sm:$0xff] %v10930_v42  ;;  %12048 = vst [vmem:[#allocation24_spill] sm:$0xff] %v10933_v43  ;;  %v10988_v52 = vld [vmem:[#allocation2 + $0x27] sm:$0xff]  ;;  %v9041_v53 = vpack.c.bf16 %v1059_v46, %v1058_v45  ;;  %v10991_v56 = vld [vmem:[#allocation2 + $0x2f] sm:$0xff] }
  0xdf   : > { %12049 = vst [vmem:[#allocation25_spill] sm:$0xff] %v10936_v44  ;;  %467 = vst [vmem:[#allocation2 + $0x190] sm:$0xff] %v10930_v42  ;;  %7478 = vmatmul.mubr.f32.vlgmr.msra.gmra.mrb[0].mxu0 %v10493_v0  ;;  %v9021_v0 = vpack.c.bf16 %v517_v5, %v516_v4  ;;  %v1060_v54 = vld [vmem:[#allocation6 + $0x120] sm:$0xff]  ;;  %v1061_v55 = vld [vmem:[#allocation6 + $0x128] sm:$0xff] }
  0xe0   : > { %468 = vst [vmem:[#allocation2 + $0x1a8] sm:$0xff] %v10933_v43  ;;  %469 = vst [vmem:[#allocation2 + $0x1b0] sm:$0xff] %v10936_v44  ;;  %7480 = vmatprep.mubr.f32.mxu0 %v10838_v10  ;;  %9008 = vmatpush3.bf16.msra.mxu0 %v9005_v57  ;;  %v10993_v57 = vld [vmem:[#allocation2 + $0x47] sm:$0xff]  ;;  %v9045_v58 = vpack.c.bf16 %v1061_v55, %v1060_v54  ;;  %v1062_v59 = vld [vmem:[#allocation6 + $0x130] sm:$0xff] }
  0xe1   : > { %12050 = vst [vmem:[#allocation26_spill] sm:$0xff] %v10942_v47  ;;  %470 = vst [vmem:[#allocation2 + $0x1c8] sm:$0xff] %v10942_v47  ;;  %9010 = vmatprep.subr.bf16.mxu0 %v9009_v60  ;;  %v10997_v61 = vld [vmem:[#allocation2 + $0x4f] sm:$0xff]  ;;  %v10999_v62 = vld [vmem:[#allocation2 + $0x67] sm:$0xff] }
  0xe2   : > { %12051 = vst [vmem:[#allocation27_spill] sm:$0xff] %v10946_v48  ;;  %12052 = vst [vmem:[#allocation28_spill] sm:$0xff] %v10949_v49  ;;  %v1064_v1 = vld [vmem:[#allocation6 + $0x140] sm:$0xff]  ;;  %v1065_v2 = vld [vmem:[#allocation6 + $0x148] sm:$0xff] }
  0xe3   : > { %12053 = vst [vmem:[#allocation29_spill] sm:$0xff] %v10952_v50  ;;  %471 = vst [vmem:[#allocation2 + $0x1d0] sm:$0xff] %v10946_v48  ;;  %7481 = vmatmul.mubr.f32.gmra.mrb[2].mxu0 %v10841_v11  ;;  %v11005_v4 = vld [vmem:[#allocation2 + $0x87] sm:$0xff]  ;;  %v9053_v5 = vpack.c.bf16 %v1065_v2, %v1064_v1  ;;  %v1067_v6 = vld [vmem:[#allocation6 + $0x158] sm:$0xff] }
  0xe4   : > { %472 = vst [vmem:[#allocation2 + $0x1e8] sm:$0xff] %v10949_v49  ;;  %473 = vst [vmem:[#allocation2 + $0x1f0] sm:$0xff] %v10952_v50  ;;  %7483 = vmatprep.mubr.f32.mxu0 %v10846_v14  ;;  %9012 = vmatpush3.bf16.msra.mxu0 %v9009_v60  ;;  %v1063_v60 = vld [vmem:[#allocation6 + $0x138] sm:$0xff]  ;;  %v11009_v7 = vld [vmem:[#allocation2 + $0x8f] sm:$0xff] }
  0xe5   : > { %9014 = vmatprep.subr.bf16.mxu0 %v9013_v63  ;;  %v1068_v12 = vld [vmem:[#allocation6 + $0x160] sm:$0xff]  ;;  %v11015_v19 = vld [vmem:[#allocation2 + $0xaf] sm:$0xff]  ;;  %v1071_v34 = vld [vmem:[#allocation6 + $0x178] sm:$0xff] }
  0xe6   : > { %v11017_v23 = vld [vmem:[#allocation2 + $0xc7] sm:$0xff]  ;;  %v1070_v30 = vld [vmem:[#allocation6 + $0x170] sm:$0xff] }
  0xe7   : > { %7484 = vmatmul.mubr.f32.gmra.mrb[4].mxu0 %v10850_v15  ;;  %v9065_v45 = vpack.c.bf16 %v1071_v34, %v1070_v30  ;;  %v1362_v46 = vld [vmem:[#allocation6 + $0x180] sm:$0xff]  ;;  %v11045_v1 = vld [vmem:[#allocation2 + $0x14f] sm:$0xff]  ;;  %v11072_v30 = vld [vmem:[%s10777_s20 + $0xf8] sm:$0xff] }
  0xe8   : > { %7486 = vmatprep.mubr.f32.mxu0 %v10853_v16  ;;  %9016 = vmatpush3.bf16.msra.mxu0 %v9013_v63  ;;  %v9049_v63 = vpack.c.bf16 %v1063_v60, %v1062_v59  ;;  %v11029_v54 = vld [vmem:[#allocation2 + $0x107] sm:$0xff]  ;;  %v11039_v60 = vld [vmem:[#allocation2 + $0x12f] sm:$0xff]  ;;  %12055 = vst [vmem:[#allocation31_spill] sm:$0xff] %v11072_v30  ;;  %475 = vst [vmem:[#allocation2 + $0x210] sm:$0xff] %v11072_v30 }
  0xe9   : > { %9018 = vmatprep.subr.bf16.mxu0 %v9017_v3  ;;  %v11035_v59 = vld [vmem:[#allocation2 + $0x127] sm:$0xff] }
  0xea   : > { %v11047_v2 = vld [vmem:[#allocation2 + $0x167] sm:$0xff]  ;;  %v11077_v34 = vld [vmem:[#allocation2 + $0x1cf] sm:$0xff] }
  0xeb   : > { %7487 = vmatmul.mubr.f32.gmra.mrb[6].mxu0 %v10856_v17  ;;  %v11086_v30 = vld [vmem:[#allocation2 + $0x29] sm:$0xff] }
  0xec   : > { %7489 = vmatprep.mubr.f32.mxu0 %v10862_v18  ;;  %9020 = vmatpush3.bf16.msra.mxu0 %v9017_v3  ;;  %v11003_v3 = vld [vmem:[#allocation2 + $0x6f] sm:$0xff]  ;;  %12056 = vst [vmem:[#allocation32_spill] sm:$0xff] %v11086_v30 }
  0xed   : > { %9022 = vmatprep.subr.bf16.mxu0 %v9021_v0 }
  0xef   : > { %7490 = vmatmul.mubr.f32.gmra.mrb[8].mxu0 %v10866_v20 }
  0xf0   : > { %7492 = vmatprep.mubr.f32.mxu0 %v10869_v21  ;;  %9024 = vmatpush3.bf16.msra.mxu0 %v9021_v0  ;;  %v1066_v0 = vld [vmem:[#allocation6 + $0x150] sm:$0xff] }
  0xf1   : > { %9026 = vmatprep.subr.bf16.mxu0 %v9025_v8  ;;  %v9057_v9 = vpack.c.bf16 %v1067_v6, %v1066_v0  ;;  %v11053_v0 = vld [vmem:[#allocation2 + $0x187] sm:$0xff]  ;;  %v11057_v6 = vld [vmem:[#allocation2 + $0x18f] sm:$0xff] }
  0xf3   : > { %7493 = vmatmul.mubr.f32.gmra.mrb[10].mxu0 %v10872_v22 }
  0xf4   : > { %7495 = vmatprep.mubr.f32.mxu0 %v10878_v25  ;;  %9028 = vmatpush3.bf16.msra.mxu0 %v9025_v8  ;;  %v11011_v8 = vld [vmem:[#allocation2 + $0xa7] sm:$0xff] }
  0xf5   : > { %9030 = vmatprep.subr.bf16.mxu0 %v9029_v13 }
  0xf7   : > { %7496 = vmatmul.mubr.f32.gmra.mrb[12].mxu0 %v10882_v26 }
  0xf8   : > { %7498 = vmatprep.mubr.f32.mxu0 %v10885_v27  ;;  %9032 = vmatpush3.bf16.msra.mxu0 %v9029_v13  ;;  %v1069_v13 = vld [vmem:[#allocation6 + $0x168] sm:$0xff] }
  0xf9   : > { %9034 = vmatprep.subr.bf16.mxu0 %v9033_v24 }
  0xfb   : > { %7499 = vmatmul.mubr.f32.gmra.mrb[14].mxu0 %v10888_v28 }
  0xfc   : > { %7501 = vmatprep.mubr.f32.mxu0 %v10894_v29  ;;  %9036 = vmatpush3.bf16.msra.mxu0 %v9033_v24  ;;  %v9061_v24 = vpack.c.bf16 %v1069_v13, %v1068_v12  ;;  %v11063_v12 = vld [vmem:[#allocation2 + $0x1af] sm:$0xff]  ;;  %v11065_v13 = vld [vmem:[#allocation2 + $0x1c7] sm:$0xff] }
  0xfd   : > { %9038 = vmatprep.subr.bf16.mxu0 %v9037_v35 }
  0xff   : > { %7502 = vmatmul.mubr.f32.gmra.mrb[16].mxu0 %v10898_v31 }
 0x100   : > { %7504 = vmatprep.mubr.f32.mxu0 %v10901_v32 }
 0x103   : > { %7505 = vmatmul.mubr.f32.gmra.mrb[18].mxu0 %v10904_v33 }
 0x104   : > { %7507 = vmatprep.mubr.f32.mxu0 %v10910_v36 }
 0x107   : > { %7508 = vmatmul.mubr.f32.gmra.mrb[20].mxu0 %v10914_v37 }
 0x108   : > { %7510 = vmatprep.mubr.f32.mxu0 %v10917_v38  ;;  %v1369_v38 = vld [vmem:[#allocation6 + $0x1b8] sm:$0xff] }
 0x10b   : > { %7511 = vmatmul.mubr.f32.gmra.mrb[22].mxu0 %v10920_v39  ;;  %v1368_v39 = vld [vmem:[#allocation6 + $0x1b0] sm:$0xff] }
 0x10c   : > { %7513 = vmatprep.mubr.f32.mxu0 %v10926_v40 }
 0x10f   : > { %7514 = vmatmul.mubr.f32.gmra.mrb[24].mxu0 %v10930_v42  ;;  %v11091_v42 = vld [vmem:[#allocation2 + $0x49] sm:$0xff] }
 0x110   : > { %7516 = vmatprep.mubr.f32.mxu0 %v10933_v43  ;;  %v11089_v43 = vld [vmem:[#allocation2 + $0x31] sm:$0xff]  ;;  %12058 = vst [vmem:[#allocation34_spill] sm:$0xff] %v11091_v42 }
 0x111   : > { %12057 = vst [vmem:[#allocation33_spill] sm:$0xff] %v11089_v43 }
 0x113   : > { %7517 = vmatmul.mubr.f32.gmra.mrb[26].mxu0 %v10936_v44  ;;  %v1367_v44 = vld [vmem:[#allocation6 + $0x1a8] sm:$0xff] }
 0x114   : > { %7519 = vmatprep.mubr.f32.mxu0 %v10942_v47  ;;  %v1366_v47 = vld [vmem:[#allocation6 + $0x1a0] sm:$0xff] }
 0x115   : > { %v9077_v40 = vpack.c.bf16 %v1367_v44, %v1366_v47  ;;  %v11101_v44 = vld [vmem:[#allocation2 + $0x71] sm:$0xff]  ;;  %v11103_v47 = vld [vmem:[#allocation2 + $0x89] sm:$0xff] }
 0x116   : > { %12061 = vst [vmem:[#allocation37_spill] sm:$0xff] %v11101_v44  ;;  %12062 = vst [vmem:[#allocation38_spill] sm:$0xff] %v11103_v47 }
 0x117   : > { %7520 = vmatmul.mubr.f32.gmra.mrb[28].mxu0 %v10946_v48 }
 0x118   : > { %7522 = vmatprep.mubr.f32.mxu0 %v10949_v49  ;;  %v1024_v49 = vld [vmem:[#allocation2 + $0x11] sm:$0xff] }
 0x11b   : > { %7523 = vmatmul.mubr.f32.gmra.mrb[30].mxu0 %v10952_v50  ;;  %v1365_v50 = vld [vmem:[#allocation6 + $0x198] sm:$0xff] }
 0x11c   : > { %7557 = vmatprep.mubr.f32.mxu0 %v476_v41  ;;  %v11023_v41 = vld [vmem:[#allocation2 + $0xe7] sm:$0xff] }
 0x11f   : > { %7558 = vmatmul.mubr.f32.vlgmr.msra.gmra.mrb[0].mxu0 %v477_v51  ;;  %v1363_v51 = vld [vmem:[#allocation6 + $0x188] sm:$0xff] }
 0x120   : > { %7560 = vmatprep.mubr.f32.mxu0 %v10988_v52  ;;  %9040 = vmatpush3.bf16.msra.mxu0 %v9037_v35  ;;  %v11021_v35 = vld [vmem:[#allocation2 + $0xcf] sm:$0xff]  ;;  %v9069_v55 = vpack.c.bf16 %v1363_v51, %v1362_v46 }
 0x121   : > { %9042 = vmatprep.subr.bf16.mxu0 %v9041_v53  ;;  %v11083_v46 = vld [vmem:[#allocation2 + $0x1ef] sm:$0xff] }
 0x122   : > { %v1023_v51 = vld [vmem:[#allocation2 + $0x9] sm:$0xff] }
 0x123   : > { %7561 = vmatmul.mubr.f32.gmra.mrb[2].mxu0 %v10991_v56 }
 0x124   : > { %7563 = vmatprep.mubr.f32.mxu0 %v10993_v57  ;;  %9044 = vmatpush3.bf16.msra.mxu0 %v9041_v53  ;;  %v11027_v53 = vld [vmem:[#allocation2 + $0xef] sm:$0xff] }
 0x125   : > { %9046 = vmatprep.subr.bf16.mxu0 %v9045_v58 }
 0x127   : > { %7564 = vmatmul.mubr.f32.gmra.mrb[4].mxu0 %v10997_v61 }
 0x128   : > { %7566 = vmatprep.mubr.f32.mxu0 %v10999_v62  ;;  %9048 = vmatpush3.bf16.msra.mxu0 %v9045_v58  ;;  %v11033_v58 = vld [vmem:[#allocation2 + $0x10f] sm:$0xff] }
 0x129   : > { %9050 = vmatprep.subr.bf16.mxu0 %v9049_v63 }
 0x12b   : > { %7567 = vmatmul.mubr.f32.gmra.mrb[6].mxu0 %v11003_v3 }
 0x12c   : > { %7569 = vmatprep.mubr.f32.mxu0 %v11005_v4  ;;  %9052 = vmatpush3.bf16.msra.mxu0 %v9049_v63  ;;  %v11041_v63 = vld [vmem:[#allocation2 + $0x147] sm:$0xff] }
 0x12d   : > { %9054 = vmatprep.subr.bf16.mxu0 %v9053_v5 }
 0x12f   : > { %7570 = vmatmul.mubr.f32.gmra.mrb[8].mxu0 %v11009_v7 }
 0x130   : > { %7572 = vmatprep.mubr.f32.mxu0 %v11011_v8  ;;  %9056 = vmatpush3.bf16.msra.mxu0 %v9053_v5  ;;  %v11051_v5 = vld [vmem:[#allocation2 + $0x16f] sm:$0xff] }
 0x131   : > { %9058 = vmatprep.subr.bf16.mxu0 %v9057_v9 }
 0x133   : > { %7573 = vmatmul.mubr.f32.gmra.mrb[10].mxu0 %v11015_v19 }
 0x134   : > { %7575 = vmatprep.mubr.f32.mxu0 %v11017_v23  ;;  %9060 = vmatpush3.bf16.msra.mxu0 %v9057_v9  ;;  %v11059_v9 = vld [vmem:[#allocation2 + $0x1a7] sm:$0xff] }
 0x135   : > { %9062 = vmatprep.subr.bf16.mxu0 %v9061_v24 }
 0x137   : > { %7576 = vmatmul.mubr.f32.gmra.mrb[12].mxu0 %v11021_v35 }
 0x138   : > { %7578 = vmatprep.mubr.f32.mxu0 %v11023_v41  ;;  %9064 = vmatpush3.bf16.msra.mxu0 %v9061_v24  ;;  %v11068_v24 = vld [vmem:[%s10777_s20 + $0xf0] sm:$0xff] }
 0x139   : > { %9066 = vmatprep.subr.bf16.mxu0 %v9065_v45  ;;  %12054 = vst [vmem:[#allocation30_spill] sm:$0xff] %v11068_v24  ;;  %474 = vst [vmem:[#allocation2 + $0x208] sm:$0xff] %v11068_v24  ;;  %v1364_v24 = vld [vmem:[#allocation6 + $0x190] sm:$0xff] }
 0x13a   : > { %v9073_v48 = vpack.c.bf16 %v1365_v50, %v1364_v24  ;;  %v11097_v50 = vld [vmem:[#allocation2 + $0x69] sm:$0xff]  ;;  %v1370_v24 = vld [vmem:[#allocation6 + $0x1c0] sm:$0xff] }
 0x13b   : > { %7579 = vmatmul.mubr.f32.gmra.mrb[14].mxu0 %v11027_v53  ;;  %12060 = vst [vmem:[#allocation36_spill] sm:$0xff] %v11097_v50 }
 0x13c   : > { %7581 = vmatprep.mubr.f32.mxu0 %v11029_v54  ;;  %9068 = vmatpush3.bf16.msra.mxu0 %v9065_v45  ;;  %v11079_v45 = vld [vmem:[#allocation2 + $0x1e7] sm:$0xff] }
 0x13d   : > { %9070 = vmatprep.subr.bf16.mxu0 %v9069_v55 }
 0x13f   : > { %7582 = vmatmul.mubr.f32.gmra.mrb[16].mxu0 %v11033_v58 }
 0x140   : > { %7584 = vmatprep.mubr.f32.mxu0 %v11035_v59 }
 0x143   : > { %7585 = vmatmul.mubr.f32.gmra.mrb[18].mxu0 %v11039_v60 }
 0x144   : > { %7587 = vmatprep.mubr.f32.mxu0 %v11041_v63 }
 0x147   : > { %7588 = vmatmul.mubr.f32.gmra.mrb[20].mxu0 %v11045_v1 }
 0x148   : > { %7590 = vmatprep.mubr.f32.mxu0 %v11047_v2 }
 0x14b   : > { %7591 = vmatmul.mubr.f32.gmra.mrb[22].mxu0 %v11051_v5 }
 0x14c   : > { %7593 = vmatprep.mubr.f32.mxu0 %v11053_v0 }
 0x14f   : > { %7594 = vmatmul.mubr.f32.gmra.mrb[24].mxu0 %v11057_v6 }
 0x150   : > { %7596 = vmatprep.mubr.f32.mxu0 %v11059_v9 }
 0x153   : > { %7597 = vmatmul.mubr.f32.gmra.mrb[26].mxu0 %v11063_v12 }
 0x154   : > { %7599 = vmatprep.mubr.f32.mxu0 %v11065_v13 }
 0x157   : > { %7600 = vmatmul.mubr.f32.gmra.mrb[28].mxu0 %v11077_v34 }
 0x158   : > { %7602 = vmatprep.mubr.f32.mxu0 %v11079_v45 }
 0x15b   : > { %7603 = vmatmul.mubr.f32.gmra.mrb[30].mxu0 %v11083_v46 }
 0x15c   : > { %7637 = vmatprep.mubr.f32.mxu0 %v1023_v51  ;;  %v11095_v51 = vld [vmem:[#allocation2 + $0x51] sm:$0xff] }
 0x15d   : > { %12059 = vst [vmem:[#allocation35_spill] sm:$0xff] %v11095_v51 }
 0x15f   : > { %7638 = vmatmul.mubr.f32.vlgmr.msra.gmra.mrb[0].mxu0 %v1024_v49  ;;  %v9081_v49 = vpack.c.bf16 %v1369_v38, %v1368_v39  ;;  %v11107_v38 = vld [vmem:[#allocation2 + $0x91] sm:$0xff]  ;;  %v11109_v39 = vld [vmem:[#allocation2 + $0xa9] sm:$0xff] }
 0x160   : > { %7640 = vmatprep.mubr.f32.mxu0 %v11086_v30  ;;  %9072 = vmatpush3.bf16.msra.mxu0 %v9069_v55  ;;  %v1371_v30 = vld [vmem:[#allocation6 + $0x1c8] sm:$0xff]  ;;  %12063 = vst [vmem:[#allocation39_spill] sm:$0xff] %v11107_v38  ;;  %12064 = vst [vmem:[#allocation40_spill] sm:$0xff] %v11109_v39 }
 0x161   : > { %9074 = vmatprep.subr.bf16.mxu0 %v9073_v48  ;;  %v9085_v55 = vpack.c.bf16 %v1371_v30, %v1370_v24  ;;  %v11115_v30 = vld [vmem:[#allocation2 + $0xc9] sm:$0xff] }
 0x163   : > { %7641 = vmatmul.mubr.f32.gmra.mrb[2].mxu0 %v11089_v43  ;;  %v1373_v43 = vld [vmem:[#allocation6 + $0x1d8] sm:$0xff] }
 0x164   : > { %7643 = vmatprep.mubr.f32.mxu0 %v11091_v42  ;;  %9076 = vmatpush3.bf16.msra.mxu0 %v9073_v48  ;;  %v1372_v42 = vld [vmem:[#allocation6 + $0x1d0] sm:$0xff] }
 0x165   : > { %9078 = vmatprep.subr.bf16.mxu0 %v9077_v40  ;;  %v9089_v48 = vpack.c.bf16 %v1373_v43, %v1372_v42  ;;  %v11119_v42 = vld [vmem:[#allocation2 + $0xd1] sm:$0xff]  ;;  %v11121_v43 = vld [vmem:[#allocation2 + $0xe9] sm:$0xff] }
 0x167   : > { %7644 = vmatmul.mubr.f32.gmra.mrb[4].mxu0 %v11095_v51  ;;  %v1375_v51 = vld [vmem:[#allocation6 + $0x1e8] sm:$0xff] }
 0x168   : > { %7646 = vmatprep.mubr.f32.mxu0 %v11097_v50  ;;  %9080 = vmatpush3.bf16.msra.mxu0 %v9077_v40  ;;  %v1374_v50 = vld [vmem:[#allocation6 + $0x1e0] sm:$0xff]  ;;  %v11113_v40 = vld [vmem:[#allocation2 + $0xb1] sm:$0xff] }
 0x169   : > { %9082 = vmatprep.subr.bf16.mxu0 %v9081_v49  ;;  %v9093_v24 = vpack.c.bf16 %v1375_v51, %v1374_v50  ;;  %v11125_v51 = vld [vmem:[#allocation2 + $0xf1] sm:$0xff]  ;;  %v11127_v50 = vld [vmem:[#allocation2 + $0x109] sm:$0xff] }
 0x16a   : > { %12065 = vst [vmem:[#allocation41_spill] sm:$0xff] %v11125_v51  ;;  %12066 = vst [vmem:[#allocation42_spill] sm:$0xff] %v11127_v50 }
 0x16b   : > { %7647 = vmatmul.mubr.f32.gmra.mrb[6].mxu0 %v11101_v44  ;;  %v1377_v44 = vld [vmem:[#allocation6 + $0x1f8] sm:$0xff] }
 0x16c   : > { %7649 = vmatprep.mubr.f32.mxu0 %v11103_v47  ;;  %9084 = vmatpush3.bf16.msra.mxu0 %v9081_v49  ;;  %v1376_v47 = vld [vmem:[#allocation6 + $0x1f0] sm:$0xff] }
 0x16d   : > { %9086 = vmatprep.subr.bf16.mxu0 %v9085_v55  ;;  %v9097_v49 = vpack.c.bf16 %v1377_v44, %v1376_v47  ;;  %v11133_v44 = vld [vmem:[#allocation2 + $0x129] sm:$0xff]  ;;  %v11137_v47 = vld [vmem:[#allocation2 + $0x131] sm:$0xff] }
 0x16e   : > { %12068 = vst [vmem:[#allocation44_spill] sm:$0xff] %v11133_v44  ;;  %12069 = vst [vmem:[#allocation45_spill] sm:$0xff] %v11137_v47 }
 0x16f   : > { %7650 = vmatmul.mubr.f32.gmra.mrb[8].mxu0 %v11107_v38  ;;  %v1669_v38 = vld [vmem:[#allocation6 + $0x208] sm:$0xff] }
 0x170   : > { %7652 = vmatprep.mubr.f32.mxu0 %v11109_v39  ;;  %9088 = vmatpush3.bf16.msra.mxu0 %v9085_v55  ;;  %v1668_v39 = vld [vmem:[#allocation6 + $0x200] sm:$0xff] }
 0x171   : > { %9090 = vmatprep.subr.bf16.mxu0 %v9089_v48  ;;  %v9101_v55 = vpack.c.bf16 %v1669_v38, %v1668_v39  ;;  %v11143_v38 = vld [vmem:[#allocation2 + $0x151] sm:$0xff]  ;;  %v11145_v39 = vld [vmem:[#allocation2 + $0x169] sm:$0xff] }
 0x172   : > { %12071 = vst [vmem:[#allocation47_spill] sm:$0xff] %v11143_v38  ;;  %12072 = vst [vmem:[#allocation48_spill] sm:$0xff] %v11145_v39 }
 0x173   : > { %7653 = vmatmul.mubr.f32.gmra.mrb[10].mxu0 %v11113_v40 }
 0x174   : > { %7655 = vmatprep.mubr.f32.mxu0 %v11115_v30  ;;  %9092 = vmatpush3.bf16.msra.mxu0 %v9089_v48  ;;  %v11131_v48 = vld [vmem:[#allocation2 + $0x111] sm:$0xff] }
 0x175   : > { %9094 = vmatprep.subr.bf16.mxu0 %v9093_v24  ;;  %12067 = vst [vmem:[#allocation43_spill] sm:$0xff] %v11131_v48 }
 0x177   : > { %7656 = vmatmul.mubr.f32.gmra.mrb[12].mxu0 %v11119_v42 }
 0x178   : > { %7658 = vmatprep.mubr.f32.mxu0 %v11121_v43  ;;  %9096 = vmatpush3.bf16.msra.mxu0 %v9093_v24  ;;  %v11139_v24 = vld [vmem:[#allocation2 + $0x149] sm:$0xff] }
 0x179   : > { %9098 = vmatprep.subr.bf16.mxu0 %v9097_v49  ;;  %12070 = vst [vmem:[#allocation46_spill] sm:$0xff] %v11139_v24 }
 0x17b   : > { %7659 = vmatmul.mubr.f32.gmra.mrb[14].mxu0 %v11125_v51  ;;  %v1673_v51 = vld [vmem:[#allocation6 + $0x228] sm:$0xff] }
 0x17c   : > { %7661 = vmatprep.mubr.f32.mxu0 %v11127_v50  ;;  %9100 = vmatpush3.bf16.msra.mxu0 %v9097_v49  ;;  %v11149_v49 = vld [vmem:[#allocation2 + $0x171] sm:$0xff] }
 0x17d   : > { %9102 = vmatprep.subr.bf16.mxu0 %v9101_v55  ;;  %12073 = vst [vmem:[#allocation49_spill] sm:$0xff] %v11149_v49 }
 0x17f   : > { %7662 = vmatmul.mubr.f32.gmra.mrb[16].mxu0 %v11131_v48  ;;  %v11151_v48 = vld [vmem:[#allocation2 + $0x189] sm:$0xff] }
 0x180   : > { %7664 = vmatprep.mubr.f32.mxu0 %v11133_v44  ;;  %12074 = vst [vmem:[#allocation50_spill] sm:$0xff] %v11151_v48  ;;  %v11155_v44 = vld [vmem:[#allocation2 + $0x191] sm:$0xff] }
 0x181   : > { %12075 = vst [vmem:[#allocation51_spill] sm:$0xff] %v11155_v44 }
 0x183   : > { %7665 = vmatmul.mubr.f32.gmra.mrb[18].mxu0 %v11137_v47  ;;  %v11157_v47 = vld [vmem:[#allocation2 + $0x1a9] sm:$0xff] }
 0x184   : > { %7667 = vmatprep.mubr.f32.mxu0 %v11139_v24  ;;  %12076 = vst [vmem:[#allocation52_spill] sm:$0xff] %v11157_v47  ;;  %v11161_v24 = vld [vmem:[#allocation2 + $0x1b1] sm:$0xff] }
 0x185   : > { %12077 = vst [vmem:[#allocation53_spill] sm:$0xff] %v11161_v24 }
 0x187   : > { %7668 = vmatmul.mubr.f32.gmra.mrb[20].mxu0 %v11143_v38  ;;  %v11163_v38 = vld [vmem:[#allocation2 + $0x1c9] sm:$0xff] }
 0x188   : > { %7670 = vmatprep.mubr.f32.mxu0 %v11145_v39  ;;  %12078 = vst [vmem:[#allocation54_spill] sm:$0xff] %v11163_v38  ;;  %v11167_v39 = vld [vmem:[#allocation2 + $0x1d1] sm:$0xff] }
 0x189   : > { %12079 = vst [vmem:[#allocation55_spill] sm:$0xff] %v11167_v39 }
 0x18b   : > { %7671 = vmatmul.mubr.f32.gmra.mrb[22].mxu0 %v11149_v49  ;;  %v11169_v49 = vld [vmem:[#allocation2 + $0x1e9] sm:$0xff] }
 0x18c   : > { %7673 = vmatprep.mubr.f32.mxu0 %v11151_v48  ;;  %12080 = vst [vmem:[#allocation56_spill] sm:$0xff] %v11169_v49  ;;  %v11173_v48 = vld [vmem:[#allocation2 + $0x1f1] sm:$0xff] }
 0x18d   : > { %12081 = vst [vmem:[#allocation57_spill] sm:$0xff] %v11173_v48 }
 0x18f   : > { %7674 = vmatmul.mubr.f32.gmra.mrb[24].mxu0 %v11155_v44  ;;  %v1670_v44 = vld [vmem:[#allocation6 + $0x210] sm:$0xff] }
 0x190   : > { %7676 = vmatprep.mubr.f32.mxu0 %v11157_v47  ;;  %v1671_v47 = vld [vmem:[#allocation6 + $0x218] sm:$0xff] }
 0x191   : > { %v9105_v50 = vpack.c.bf16 %v1671_v47, %v1670_v44  ;;  %v1677_v44 = vld [vmem:[#allocation6 + $0x248] sm:$0xff]  ;;  %v1680_v47 = vld [vmem:[#allocation6 + $0x260] sm:$0xff] }
 0x193   : > { %7677 = vmatmul.mubr.f32.gmra.mrb[26].mxu0 %v11161_v24  ;;  %v1672_v24 = vld [vmem:[#allocation6 + $0x220] sm:$0xff] }
 0x194   : > { %7679 = vmatprep.mubr.f32.mxu0 %v11163_v38  ;;  %v1674_v38 = vld [vmem:[#allocation6 + $0x230] sm:$0xff] }
 0x197   : > { %7680 = vmatmul.mubr.f32.gmra.mrb[28].mxu0 %v11167_v39  ;;  %v9109_v39 = vpack.c.bf16 %v1673_v51, %v1672_v24  ;;  %v1679_v51 = vld [vmem:[#allocation6 + $0x258] sm:$0xff]  ;;  %v1681_v24 = vld [vmem:[#allocation6 + $0x268] sm:$0xff] }
 0x198   : > { %7682 = vmatprep.mubr.f32.mxu0 %v11169_v49  ;;  %v1675_v49 = vld [vmem:[#allocation6 + $0x238] sm:$0xff] }
 0x19b   : > { %7683 = vmatmul.mubr.f32.gmra.mrb[30].mxu0 %v11173_v48  ;;  %v9113_v48 = vpack.c.bf16 %v1675_v49, %v1674_v38  ;;  %v9125_v38 = vpack.c.bf16 %v1681_v24, %v1680_v47  ;;  %v1683_v49 = vld [vmem:[#allocation6 + $0x278] sm:$0xff] }
 0x19c   : > { %7717 = vmatprep.mubr.f32.mxu0 %v10988_v52  ;;  %v1676_v52 = vld [vmem:[#allocation6 + $0x240] sm:$0xff]  ;;  %v1977_v47 = vld [vmem:[#allocation6 + $0x298] sm:$0xff] }
 0x19f   : > { %7718 = vmatmul.mubr.f32.vlgmr.msra.gmra.mrb[0].mxu0 %v10991_v56  ;;  %v9117_v56 = vpack.c.bf16 %v1677_v44, %v1676_v52  ;;  %v1974_v52 = vld [vmem:[#allocation6 + $0x280] sm:$0xff]  ;;  %v1975_v44 = vld [vmem:[#allocation6 + $0x288] sm:$0xff] }
 0x1a0   : > { %7720 = vmatprep.mubr.f32.mxu0 %v10993_v57  ;;  %9104 = vmatpush3.bf16.msra.mxu0 %v9101_v55  ;;  %v1678_v55 = vld [vmem:[#allocation6 + $0x250] sm:$0xff] }
 0x1a1   : > { %9106 = vmatprep.subr.bf16.mxu0 %v9105_v50 }
 0x1a3   : > { %7721 = vmatmul.mubr.f32.gmra.mrb[2].mxu0 %v10997_v61 }
 0x1a4   : > { %7723 = vmatprep.mubr.f32.mxu0 %v10999_v62  ;;  %9108 = vmatpush3.bf16.msra.mxu0 %v9105_v50  ;;  %v9121_v50 = vpack.c.bf16 %v1679_v51, %v1678_v55  ;;  %v11205_v55 = vld [vmem:[#allocation2 + $0x207] sm:$0xff]  ;;  %v11209_v51 = vld [vmem:[#allocation2 + $0x20f] sm:$0xff] }
 0x1a5   : > { %9110 = vmatprep.subr.bf16.mxu0 %v9109_v39 }
 0x1a7   : > { %7724 = vmatmul.mubr.f32.gmra.mrb[4].mxu0 %v11003_v3 }
 0x1a8   : > { %7726 = vmatprep.mubr.f32.mxu0 %v11005_v4  ;;  %9112 = vmatpush3.bf16.msra.mxu0 %v9109_v39  ;;  %v1682_v39 = vld [vmem:[#allocation6 + $0x270] sm:$0xff] }
 0x1a9   : > { %9114 = vmatprep.subr.bf16.mxu0 %v9113_v48 }
 0x1ab   : > { %7727 = vmatmul.mubr.f32.gmra.mrb[6].mxu0 %v11009_v7 }
 0x1ac   : > { %7729 = vmatprep.mubr.f32.mxu0 %v11011_v8  ;;  %9116 = vmatpush3.bf16.msra.mxu0 %v9113_v48  ;;  %v9129_v48 = vpack.c.bf16 %v1683_v49, %v1682_v39  ;;  %v1979_v39 = vld [vmem:[#allocation6 + $0x2a8] sm:$0xff] }
 0x1ad   : > { %9118 = vmatprep.subr.bf16.mxu0 %v9117_v56 }
 0x1af   : > { %7730 = vmatmul.mubr.f32.gmra.mrb[8].mxu0 %v11015_v19 }
 0x1b0   : > { %7732 = vmatprep.mubr.f32.mxu0 %v11017_v23  ;;  %9120 = vmatpush3.bf16.msra.mxu0 %v9117_v56  ;;  %v9133_v56 = vpack.c.bf16 %v1975_v44, %v1974_v52  ;;  %v1981_v52 = vld [vmem:[#allocation6 + $0x2b8] sm:$0xff] }
 0x1b1   : > { %9122 = vmatprep.subr.bf16.mxu0 %v9121_v50 }
 0x1b3   : > { %7733 = vmatmul.mubr.f32.gmra.mrb[10].mxu0 %v11021_v35 }
 0x1b4   : > { %7735 = vmatprep.mubr.f32.mxu0 %v11023_v41  ;;  %9124 = vmatpush3.bf16.msra.mxu0 %v9121_v50  ;;  %v1976_v50 = vld [vmem:[#allocation6 + $0x290] sm:$0xff] }
 0x1b5   : > { %9126 = vmatprep.subr.bf16.mxu0 %v9125_v38  ;;  %v9137_v24 = vpack.c.bf16 %v1977_v47, %v1976_v50  ;;  %v1983_v50 = vld [vmem:[#allocation6 + $0x2c8] sm:$0xff] }
 0x1b6   : > { %v1987_v47 = vld [vmem:[#allocation6 + $0x2e8] sm:$0xff] }
 0x1b7   : > { %7736 = vmatmul.mubr.f32.gmra.mrb[12].mxu0 %v11027_v53 }
 0x1b8   : > { %7738 = vmatprep.mubr.f32.mxu0 %v11029_v54  ;;  %9128 = vmatpush3.bf16.msra.mxu0 %v9125_v38  ;;  %v1978_v38 = vld [vmem:[#allocation6 + $0x2a0] sm:$0xff] }
 0x1b9   : > { %9130 = vmatprep.subr.bf16.mxu0 %v9129_v48  ;;  %v9141_v49 = vpack.c.bf16 %v1979_v39, %v1978_v38  ;;  %v2282_v38 = vld [vmem:[#allocation6 + $0x308] sm:$0xff]  ;;  %v12089_v39 = vld [vmem:[#allocation27_spill] sm:$0xff] }
 0x1bb   : > { %7739 = vmatmul.mubr.f32.gmra.mrb[14].mxu0 %v11033_v58 }
 0x1bc   : > { %7741 = vmatprep.mubr.f32.mxu0 %v11035_v59  ;;  %9132 = vmatpush3.bf16.msra.mxu0 %v9129_v48  ;;  %v1980_v48 = vld [vmem:[#allocation6 + $0x2b0] sm:$0xff] }
 0x1bd   : > { %9134 = vmatprep.subr.bf16.mxu0 %v9133_v56  ;;  %v9145_v44 = vpack.c.bf16 %v1981_v52, %v1980_v48  ;;  %v2284_v48 = vld [vmem:[#allocation6 + $0x318] sm:$0xff] }
 0x1be   : > { %v12093_v52 = vld [vmem:[#allocation31_spill] sm:$0xff] }
 0x1bf   : > { %7742 = vmatmul.mubr.f32.gmra.mrb[16].mxu0 %v11039_v60 }
 0x1c0   : > { %7744 = vmatprep.mubr.f32.mxu0 %v11041_v63 }
 0x1c3   : > { %7745 = vmatmul.mubr.f32.gmra.mrb[18].mxu0 %v11045_v1 }
 0x1c4   : > { %7747 = vmatprep.mubr.f32.mxu0 %v11047_v2 }
 0x1c7   : > { %7748 = vmatmul.mubr.f32.gmra.mrb[20].mxu0 %v11051_v5 }
 0x1c8   : > { %7750 = vmatprep.mubr.f32.mxu0 %v11053_v0 }
 0x1cb   : > { %7751 = vmatmul.mubr.f32.gmra.mrb[22].mxu0 %v11057_v6 }
 0x1cc   : > { %7753 = vmatprep.mubr.f32.mxu0 %v11059_v9 }
 0x1cf   : > { %7754 = vmatmul.mubr.f32.gmra.mrb[24].mxu0 %v11063_v12 }
 0x1d0   : > { %7756 = vmatprep.mubr.f32.mxu0 %v11065_v13 }
 0x1d3   : > { %7757 = vmatmul.mubr.f32.gmra.mrb[26].mxu0 %v11077_v34 }
 0x1d4   : > { %7759 = vmatprep.mubr.f32.mxu0 %v11079_v45 }
 0x1d7   : > { %7760 = vmatmul.mubr.f32.gmra.mrb[28].mxu0 %v11083_v46 }
 0x1d8   : > { %7762 = vmatprep.mubr.f32.mxu0 %v11205_v55 }
 0x1db   : > { %7763 = vmatmul.mubr.f32.gmra.mrb[30].mxu0 %v11209_v51 }
 0x1dc   : > { %7797 = vmatprep.mubr.f32.mxu0 %v10838_v10  ;;  %v1982_v10 = vld [vmem:[#allocation6 + $0x2c0] sm:$0xff] }
 0x1df   : > { %7798 = vmatmul.mubr.f32.vlgmr.msra.gmra.mrb[0].mxu0 %v10841_v11  ;;  %v9149_v11 = vpack.c.bf16 %v1983_v50, %v1982_v10  ;;  %v2285_v50 = vld [vmem:[#allocation6 + $0x320] sm:$0xff] }
 0x1e0   : > { %7800 = vmatprep.mubr.f32.mxu0 %v10846_v14  ;;  %9136 = vmatpush3.bf16.msra.mxu0 %v9133_v56  ;;  %v1984_v14 = vld [vmem:[#allocation6 + $0x2d0] sm:$0xff]  ;;  %v1985_v56 = vld [vmem:[#allocation6 + $0x2d8] sm:$0xff] }
 0x1e1   : > { %9138 = vmatprep.subr.bf16.mxu0 %v9137_v24 }
 0x1e3   : > { %7801 = vmatmul.mubr.f32.gmra.mrb[2].mxu0 %v10850_v15  ;;  %v9153_v15 = vpack.c.bf16 %v1985_v56, %v1984_v14  ;;  %v12095_v14 = vld [vmem:[#allocation33_spill] sm:$0xff]  ;;  %v12096_v56 = vld [vmem:[#allocation34_spill] sm:$0xff] }
 0x1e4   : > { %7803 = vmatprep.mubr.f32.mxu0 %v10853_v16  ;;  %9140 = vmatpush3.bf16.msra.mxu0 %v9137_v24  ;;  %v1986_v16 = vld [vmem:[#allocation6 + $0x2e0] sm:$0xff]  ;;  %v1989_v24 = vld [vmem:[#allocation6 + $0x2f8] sm:$0xff] }
 0x1e5   : > { %9142 = vmatprep.subr.bf16.mxu0 %v9141_v49 }
 0x1e7   : > { %7804 = vmatmul.mubr.f32.gmra.mrb[4].mxu0 %v10856_v17  ;;  %v9157_v17 = vpack.c.bf16 %v1987_v47, %v1986_v16  ;;  %v2287_v16 = vld [vmem:[#allocation6 + $0x330] sm:$0xff]  ;;  %v2288_v47 = vld [vmem:[#allocation6 + $0x338] sm:$0xff] }
 0x1e8   : > { %7806 = vmatprep.mubr.f32.mxu0 %v10862_v18  ;;  %9144 = vmatpush3.bf16.msra.mxu0 %v9141_v49  ;;  %v1988_v18 = vld [vmem:[#allocation6 + $0x2f0] sm:$0xff] }
 0x1e9   : > { %9146 = vmatprep.subr.bf16.mxu0 %v9145_v44  ;;  %v2283_v49 = vld [vmem:[#allocation6 + $0x310] sm:$0xff] }
 0x1ea   : > { %v9169_v10 = vpack.c.bf16 %v2284_v48, %v2283_v49  ;;  %v2587_v48 = vld [vmem:[#allocation6 + $0x380] sm:$0xff] }
 0x1eb   : > { %7807 = vmatmul.mubr.f32.gmra.mrb[6].mxu0 %v10866_v20  ;;  %v9161_v20 = vpack.c.bf16 %v1989_v24, %v1988_v18  ;;  %v12098_v18 = vld [vmem:[#allocation36_spill] sm:$0xff]  ;;  %v9177_v24 = vpack.c.bf16 %v2288_v47, %v2287_v16  ;;  %v12113_v16 = vld [vmem:[#allocation51_spill] sm:$0xff] }
 0x1ec   : > { %7809 = vmatprep.mubr.f32.mxu0 %v10869_v21  ;;  %9148 = vmatpush3.bf16.msra.mxu0 %v9145_v44  ;;  %v2281_v21 = vld [vmem:[#allocation6 + $0x300] sm:$0xff] }
 0x1ed   : > { %9150 = vmatprep.subr.bf16.mxu0 %v9149_v11  ;;  %v12094_v44 = vld [vmem:[#allocation32_spill] sm:$0xff] }
 0x1ee   : > { %v12114_v47 = vld [vmem:[#allocation52_spill] sm:$0xff] }
 0x1ef   : > { %7810 = vmatmul.mubr.f32.gmra.mrb[8].mxu0 %v10872_v22  ;;  %v9165_v22 = vpack.c.bf16 %v2282_v38, %v2281_v21  ;;  %v2290_v21 = vld [vmem:[#allocation6 + $0x348] sm:$0xff] }
 0x1f0   : > { %7812 = vmatprep.mubr.f32.mxu0 %v10878_v25  ;;  %9152 = vmatpush3.bf16.msra.mxu0 %v9149_v11  ;;  %v12082_v25 = vld [vmem:[#allocation20_spill] sm:$0xff]  ;;  %v12099_v38 = vld [vmem:[#allocation37_spill] sm:$0xff] }
 0x1f1   : > { %9154 = vmatprep.subr.bf16.mxu0 %v9153_v15  ;;  %v2286_v11 = vld [vmem:[#allocation6 + $0x328] sm:$0xff] }
 0x1f3   : > { %7813 = vmatmul.mubr.f32.gmra.mrb[10].mxu0 %v10882_v26  ;;  %v12083_v26 = vld [vmem:[#allocation21_spill] sm:$0xff] }
 0x1f4   : > { %7815 = vmatprep.mubr.f32.mxu0 %v10885_v27  ;;  %9156 = vmatpush3.bf16.msra.mxu0 %v9153_v15  ;;  %v12084_v27 = vld [vmem:[#allocation22_spill] sm:$0xff]  ;;  %v9173_v15 = vpack.c.bf16 %v2286_v11, %v2285_v50  ;;  %v12106_v50 = vld [vmem:[#allocation44_spill] sm:$0xff]  ;;  %v12109_v11 = vld [vmem:[#allocation47_spill] sm:$0xff] }
 0x1f5   : > { %9158 = vmatprep.subr.bf16.mxu0 %v9157_v17 }
 0x1f7   : > { %7816 = vmatmul.mubr.f32.gmra.mrb[12].mxu0 %v10888_v28  ;;  %v12085_v28 = vld [vmem:[#allocation23_spill] sm:$0xff] }
 0x1f8   : > { %7818 = vmatprep.mubr.f32.mxu0 %v10894_v29  ;;  %9160 = vmatpush3.bf16.msra.mxu0 %v9157_v17  ;;  %v12086_v29 = vld [vmem:[#allocation24_spill] sm:$0xff]  ;;  %v12097_v17 = vld [vmem:[#allocation35_spill] sm:$0xff] }
 0x1f9   : > { %9162 = vmatprep.subr.bf16.mxu0 %v9161_v20 }
 0x1fb   : > { %7819 = vmatmul.mubr.f32.gmra.mrb[14].mxu0 %v10898_v31  ;;  %v12087_v31 = vld [vmem:[#allocation25_spill] sm:$0xff] }
 0x1fc   : > { %7821 = vmatprep.mubr.f32.mxu0 %v10901_v32  ;;  %9164 = vmatpush3.bf16.msra.mxu0 %v9161_v20  ;;  %v12088_v32 = vld [vmem:[#allocation26_spill] sm:$0xff]  ;;  %v2289_v20 = vld [vmem:[#allocation6 + $0x340] sm:$0xff] }
 0x1fd   : > { %9166 = vmatprep.subr.bf16.mxu0 %v9165_v22 }
 0x1ff   : > { %7822 = vmatmul.mubr.f32.gmra.mrb[16].mxu0 %v10904_v33  ;;  %v12090_v33 = vld [vmem:[#allocation28_spill] sm:$0xff] }
 0x200   : > { %7824 = vmatprep.mubr.f32.mxu0 %v10910_v36  ;;  %v12091_v36 = vld [vmem:[#allocation29_spill] sm:$0xff] }
 0x203   : > { %7825 = vmatmul.mubr.f32.gmra.mrb[18].mxu0 %v10914_v37  ;;  %v12092_v37 = vld [vmem:[#allocation30_spill] sm:$0xff] }
 0x204   : > { %7827 = vmatprep.mubr.f32.mxu0 %v12082_v25  ;;  %v12100_v25 = vld [vmem:[#allocation38_spill] sm:$0xff] }
 0x207   : > { %7828 = vmatmul.mubr.f32.gmra.mrb[20].mxu0 %v12083_v26  ;;  %v2291_v26 = vld [vmem:[#allocation6 + $0x350] sm:$0xff] }
 0x208   : > { %7830 = vmatprep.mubr.f32.mxu0 %v12084_v27  ;;  %v2292_v27 = vld [vmem:[#allocation6 + $0x358] sm:$0xff] }
 0x20b   : > { %7831 = vmatmul.mubr.f32.gmra.mrb[22].mxu0 %v12085_v28  ;;  %v12101_v28 = vld [vmem:[#allocation39_spill] sm:$0xff] }
 0x20c   : > { %7833 = vmatprep.mubr.f32.mxu0 %v12086_v29  ;;  %v12102_v29 = vld [vmem:[#allocation40_spill] sm:$0xff] }
 0x20f   : > { %7834 = vmatmul.mubr.f32.gmra.mrb[24].mxu0 %v12087_v31  ;;  %v9185_v31 = vpack.c.bf16 %v2292_v27, %v2291_v26  ;;  %v2590_v26 = vld [vmem:[#allocation6 + $0x398] sm:$0xff] }
 0x210   : > { %7836 = vmatprep.mubr.f32.mxu0 %v12088_v32  ;;  %v2293_v32 = vld [vmem:[#allocation6 + $0x360] sm:$0xff] }
 0x213   : > { %7837 = vmatmul.mubr.f32.gmra.mrb[26].mxu0 %v12089_v39  ;;  %v2294_v39 = vld [vmem:[#allocation6 + $0x368] sm:$0xff] }
 0x214   : > { %7839 = vmatprep.mubr.f32.mxu0 %v12090_v33  ;;  %v9189_v33 = vpack.c.bf16 %v2294_v39, %v2293_v32  ;;  %v2593_v32 = vld [vmem:[#allocation6 + $0x3b0] sm:$0xff]  ;;  %v2594_v39 = vld [vmem:[#allocation6 + $0x3b8] sm:$0xff] }
 0x217   : > { %7840 = vmatmul.mubr.f32.gmra.mrb[28].mxu0 %v12091_v36  ;;  %v2295_v36 = vld [vmem:[#allocation6 + $0x370] sm:$0xff] }
 0x218   : > { %7842 = vmatprep.mubr.f32.mxu0 %v12092_v37  ;;  %v2296_v37 = vld [vmem:[#allocation6 + $0x378] sm:$0xff] }
 0x219   : > { %v9193_v49 = vpack.c.bf16 %v2296_v37, %v2295_v36  ;;  %v2596_v36 = vld [vmem:[#allocation6 + $0x3c8] sm:$0xff]  ;;  %v2598_v37 = vld [vmem:[#allocation6 + $0x3d8] sm:$0xff] }
 0x21b   : > { %7843 = vmatmul.mubr.f32.gmra.mrb[30].mxu0 %v12093_v52  ;;  %v2588_v52 = vld [vmem:[#allocation6 + $0x388] sm:$0xff] }
 0x21c   : > { %7877 = vmatprep.mubr.f32.mxu0 %v12094_v44  ;;  %v12103_v44 = vld [vmem:[#allocation41_spill] sm:$0xff] }
 0x21f   : > { %7878 = vmatmul.mubr.f32.vlgmr.msra.gmra.mrb[0].mxu0 %v12095_v14  ;;  %v12110_v14 = vld [vmem:[#allocation48_spill] sm:$0xff] }
 0x220   : > { %7880 = vmatprep.mubr.f32.mxu0 %v12096_v56  ;;  %9168 = vmatpush3.bf16.msra.mxu0 %v9165_v22  ;;  %v9181_v22 = vpack.c.bf16 %v2290_v21, %v2289_v20  ;;  %v12111_v56 = vld [vmem:[#allocation49_spill] sm:$0xff]  ;;  %v12118_v20 = vld [vmem:[#allocation56_spill] sm:$0xff] }
 0x221   : > { %9170 = vmatprep.subr.bf16.mxu0 %v9169_v10  ;;  %v11273_v21 = vld [vmem:[#allocation2 + $0x209] sm:$0xff] }
 0x223   : > { %7881 = vmatmul.mubr.f32.gmra.mrb[2].mxu0 %v12097_v17  ;;  %v12115_v17 = vld [vmem:[#allocation53_spill] sm:$0xff] }
 0x224   : > { %7883 = vmatprep.mubr.f32.mxu0 %v12098_v18  ;;  %9172 = vmatpush3.bf16.msra.mxu0 %v9169_v10  ;;  %v12104_v10 = vld [vmem:[#allocation42_spill] sm:$0xff] }
 0x225   : > { %9174 = vmatprep.subr.bf16.mxu0 %v9173_v15  ;;  %v12116_v18 = vld [vmem:[#allocation54_spill] sm:$0xff] }
 0x227   : > { %7884 = vmatmul.mubr.f32.gmra.mrb[4].mxu0 %v12099_v38  ;;  %v12119_v38 = vld [vmem:[#allocation57_spill] sm:$0xff] }
 0x228   : > { %7886 = vmatprep.mubr.f32.mxu0 %v12100_v25  ;;  %9176 = vmatpush3.bf16.msra.mxu0 %v9173_v15  ;;  %v12112_v15 = vld [vmem:[#allocation50_spill] sm:$0xff] }
 0x229   : > { %9178 = vmatprep.subr.bf16.mxu0 %v9177_v24  ;;  %v11277_v25 = vld [vmem:[#allocation2 + $0x211] sm:$0xff] }
 0x22b   : > { %7887 = vmatmul.mubr.f32.gmra.mrb[6].mxu0 %v12101_v28  ;;  %v2591_v28 = vld [vmem:[#allocation6 + $0x3a0] sm:$0xff] }
 0x22c   : > { %7889 = vmatprep.mubr.f32.mxu0 %v12102_v29  ;;  %9180 = vmatpush3.bf16.msra.mxu0 %v9177_v24  ;;  %v12117_v24 = vld [vmem:[#allocation55_spill] sm:$0xff]  ;;  %v2592_v29 = vld [vmem:[#allocation6 + $0x3a8] sm:$0xff] }
 0x22d   : > { %9182 = vmatprep.subr.bf16.mxu0 %v9181_v22 }
 0x22f   : > { %7890 = vmatmul.mubr.f32.gmra.mrb[8].mxu0 %v11113_v40  ;;  %v9197_v40 = vpack.c.bf16 %v2588_v52, %v2587_v48  ;;  %v2602_v48 = vld [vmem:[#allocation6 + $0x3f8] sm:$0xff]  ;;  %v2894_v52 = vld [vmem:[#allocation6 + $0x408] sm:$0xff] }
 0x230   : > { %7892 = vmatprep.mubr.f32.mxu0 %v11115_v30  ;;  %9184 = vmatpush3.bf16.msra.mxu0 %v9181_v22  ;;  %v12105_v30 = vld [vmem:[#allocation43_spill] sm:$0xff]  ;;  %v2589_v22 = vld [vmem:[#allocation6 + $0x390] sm:$0xff] }
 0x231   : > { %9186 = vmatprep.subr.bf16.mxu0 %v9185_v31  ;;  %v9201_v27 = vpack.c.bf16 %v2590_v26, %v2589_v22  ;;  %v2904_v26 = vld [vmem:[#allocation6 + $0x458] sm:$0xff] }
 0x233   : > { %7893 = vmatmul.mubr.f32.gmra.mrb[10].mxu0 %v11119_v42  ;;  %v12107_v42 = vld [vmem:[#allocation45_spill] sm:$0xff] }
 0x234   : > { %7895 = vmatprep.mubr.f32.mxu0 %v11121_v43  ;;  %9188 = vmatpush3.bf16.msra.mxu0 %v9185_v31  ;;  %v12108_v43 = vld [vmem:[#allocation46_spill] sm:$0xff]  ;;  %v9205_v31 = vpack.c.bf16 %v2592_v29, %v2591_v28 }
 0x235   : > { %9190 = vmatprep.subr.bf16.mxu0 %v9189_v33  ;;  %v3362_v28 = vld [vmem:[#allocation6 + $0x558] sm:$0xff]  ;;  %v2563_v29 = vld [vmem:[#allocation2 + $0xd0] sm:$0xff] }
 0x237   : > { %7896 = vmatmul.mubr.f32.gmra.mrb[12].mxu0 %v12103_v44 }
 0x238   : > { %7898 = vmatprep.mubr.f32.mxu0 %v12104_v10  ;;  %9192 = vmatpush3.bf16.msra.mxu0 %v9189_v33  ;;  %v9209_v33 = vpack.c.bf16 %v2594_v39, %v2593_v32  ;;  %v2899_v10 = vld [vmem:[#allocation6 + $0x430] sm:$0xff] }
 0x239   : > { %9194 = vmatprep.subr.bf16.mxu0 %v9193_v49 }
 0x23b   : > { %7899 = vmatmul.mubr.f32.gmra.mrb[14].mxu0 %v12105_v30  ;;  %v2900_v30 = vld [vmem:[#allocation6 + $0x438] sm:$0xff] }
 0x23c   : > { %7901 = vmatprep.mubr.f32.mxu0 %v12106_v50  ;;  %9196 = vmatpush3.bf16.msra.mxu0 %v9193_v49  ;;  %v2600_v49 = vld [vmem:[#allocation6 + $0x3e8] sm:$0xff]  ;;  %v3357_v50 = vld [vmem:[#allocation6 + $0x530] sm:$0xff] }
 0x23d   : > { %9198 = vmatprep.subr.bf16.mxu0 %v9197_v40 }
 0x23f   : > { %7902 = vmatmul.mubr.f32.gmra.mrb[16].mxu0 %v12107_v42  ;;  %v3358_v42 = vld [vmem:[#allocation6 + $0x538] sm:$0xff] }
 0x240   : > { %7904 = vmatprep.mubr.f32.mxu0 %v12108_v43  ;;  %v2559_v43 = vld [vmem:[#allocation2 + $0x90] sm:$0xff] }
 0x243   : > { %7905 = vmatmul.mubr.f32.gmra.mrb[18].mxu0 %v12109_v11  ;;  %v2560_v11 = vld [vmem:[#allocation2 + $0xa8] sm:$0xff] }
 0x244   : > { %7907 = vmatprep.mubr.f32.mxu0 %v12110_v14  ;;  %v9241_v14 = vpack.c.bf16 %v2900_v30, %v2899_v10  ;;  %v2871_v10 = vld [vmem:[#allocation2 + $0xf1] sm:$0xff] }
 0x245   : > { %v2873_v30 = vld [vmem:[#allocation2 + $0x111] sm:$0xff] }
 0x247   : > { %7908 = vmatmul.mubr.f32.gmra.mrb[20].mxu0 %v12111_v56  ;;  %v2901_v56 = vld [vmem:[#allocation6 + $0x440] sm:$0xff] }
 0x248   : > { %7910 = vmatprep.mubr.f32.mxu0 %v12112_v15  ;;  %v9273_v15 = vpack.c.bf16 %v3358_v42, %v3357_v50  ;;  %v2874_v50 = vld [vmem:[#allocation2 + $0x129] sm:$0xff]  ;;  %v2875_v42 = vld [vmem:[#allocation2 + $0x131] sm:$0xff] }
 0x24b   : > { %7911 = vmatmul.mubr.f32.gmra.mrb[22].mxu0 %v12113_v16  ;;  %v2902_v16 = vld [vmem:[#allocation6 + $0x448] sm:$0xff] }
 0x24c   : > { %7913 = vmatprep.mubr.f32.mxu0 %v12114_v47  ;;  %v3359_v47 = vld [vmem:[#allocation6 + $0x540] sm:$0xff] }
 0x24f   : > { %7914 = vmatmul.mubr.f32.gmra.mrb[24].mxu0 %v12115_v17  ;;  %v3360_v17 = vld [vmem:[#allocation6 + $0x548] sm:$0xff] }
 0x250   : > { %7916 = vmatprep.mubr.f32.mxu0 %v12116_v18  ;;  %v2561_v18 = vld [vmem:[#allocation2 + $0xb0] sm:$0xff]  ;;  %v9277_v22 = vpack.c.bf16 %v3360_v17, %v3359_v47 }
 0x251   : > { %v2882_v47 = vld [vmem:[#allocation2 + $0x1a9] sm:$0xff]  ;;  %v2883_v17 = vld [vmem:[#allocation2 + $0x1b1] sm:$0xff] }
 0x253   : > { %7917 = vmatmul.mubr.f32.gmra.mrb[26].mxu0 %v12117_v24  ;;  %v2562_v24 = vld [vmem:[#allocation2 + $0xc8] sm:$0xff] }
 0x254   : > { %7919 = vmatprep.mubr.f32.mxu0 %v12118_v20  ;;  %v9245_v20 = vpack.c.bf16 %v2902_v16, %v2901_v56  ;;  %v2879_v56 = vld [vmem:[#allocation2 + $0x171] sm:$0xff] }
 0x255   : > { %v2881_v16 = vld [vmem:[#allocation2 + $0x191] sm:$0xff] }
 0x257   : > { %7920 = vmatmul.mubr.f32.gmra.mrb[28].mxu0 %v12119_v38  ;;  %v2903_v38 = vld [vmem:[#allocation6 + $0x450] sm:$0xff] }
 0x258   : > { %7922 = vmatprep.mubr.f32.mxu0 %v11273_v21  ;;  %v9249_v32 = vpack.c.bf16 %v2904_v26, %v2903_v38  ;;  %v2887_v38 = vld [vmem:[#allocation2 + $0x1f1] sm:$0xff] }
 0x259   : > { %v2891_v26 = vld [vmem:[#allocation2 + $0x231] sm:$0xff] }
 0x25b   : > { %7923 = vmatmul.mubr.f32.gmra.mrb[30].mxu0 %v11277_v25 }
 0x25c   : > { %7957 = vmatprep.mubr.f32.mxu0 %v10993_v57  ;;  %v2595_v57 = vld [vmem:[#allocation6 + $0x3c0] sm:$0xff] }
 0x25f   : > { %7958 = vmatmul.mubr.f32.vlgmr.msra.gmra.mrb[0].mxu0 %v10997_v61  ;;  %v9213_v61 = vpack.c.bf16 %v2596_v36, %v2595_v57  ;;  %v2906_v57 = vld [vmem:[#allocation6 + $0x468] sm:$0xff]  ;;  %v2565_v36 = vld [vmem:[#allocation2 + $0xf0] sm:$0xff] }
 0x260   : > { %7960 = vmatprep.mubr.f32.mxu0 %v10999_v62  ;;  %9200 = vmatpush3.bf16.msra.mxu0 %v9197_v40  ;;  %v2597_v62 = vld [vmem:[#allocation6 + $0x3d0] sm:$0xff] }
 0x261   : > { %9202 = vmatprep.subr.bf16.mxu0 %v9201_v27 }
 0x263   : > { %7961 = vmatmul.mubr.f32.gmra.mrb[2].mxu0 %v11003_v3  ;;  %v9217_v3 = vpack.c.bf16 %v2598_v37, %v2597_v62  ;;  %v2907_v37 = vld [vmem:[#allocation6 + $0x470] sm:$0xff] }
 0x264   : > { %7963 = vmatprep.mubr.f32.mxu0 %v11005_v4  ;;  %9204 = vmatpush3.bf16.msra.mxu0 %v9201_v27  ;;  %v2599_v4 = vld [vmem:[#allocation6 + $0x3e0] sm:$0xff]  ;;  %v3361_v27 = vld [vmem:[#allocation6 + $0x550] sm:$0xff] }
 0x265   : > { %9206 = vmatprep.subr.bf16.mxu0 %v9205_v31  ;;  %v9281_v39 = vpack.c.bf16 %v3362_v28, %v3361_v27  ;;  %v3363_v27 = vld [vmem:[#allocation6 + $0x560] sm:$0xff]  ;;  %v3364_v28 = vld [vmem:[#allocation6 + $0x568] sm:$0xff] }
 0x267   : > { %7964 = vmatmul.mubr.f32.gmra.mrb[4].mxu0 %v11009_v7  ;;  %v9221_v7 = vpack.c.bf16 %v2600_v49, %v2599_v4  ;;  %v2567_v4 = vld [vmem:[#allocation2 + $0x110] sm:$0xff]  ;;  %v2568_v49 = vld [vmem:[#allocation2 + $0x128] sm:$0xff] }
 0x268   : > { %7966 = vmatprep.mubr.f32.mxu0 %v11011_v8  ;;  %9208 = vmatpush3.bf16.msra.mxu0 %v9205_v31  ;;  %v2601_v8 = vld [vmem:[#allocation6 + $0x3f0] sm:$0xff]  ;;  %v2564_v31 = vld [vmem:[#allocation2 + $0xe8] sm:$0xff] }
 0x269   : > { %9210 = vmatprep.subr.bf16.mxu0 %v9209_v33 }
 0x26b   : > { %7967 = vmatmul.mubr.f32.gmra.mrb[6].mxu0 %v11015_v19  ;;  %v9225_v19 = vpack.c.bf16 %v2602_v48, %v2601_v8  ;;  %v2569_v8 = vld [vmem:[#allocation2 + $0x130] sm:$0xff]  ;;  %v2570_v48 = vld [vmem:[#allocation2 + $0x148] sm:$0xff] }
 0x26c   : > { %7969 = vmatprep.mubr.f32.mxu0 %v11017_v23  ;;  %9212 = vmatpush3.bf16.msra.mxu0 %v9209_v33  ;;  %v2893_v23 = vld [vmem:[#allocation6 + $0x400] sm:$0xff] }
 0x26d   : > { %9214 = vmatprep.subr.bf16.mxu0 %v9213_v61  ;;  %v2905_v33 = vld [vmem:[#allocation6 + $0x460] sm:$0xff] }
 0x26e   : > { %v9253_v62 = vpack.c.bf16 %v2906_v57, %v2905_v33  ;;  %v3302_v33 = vld [vmem:[#allocation6 + $0x480] sm:$0xff] }
 0x26f   : > { %7970 = vmatmul.mubr.f32.gmra.mrb[8].mxu0 %v11021_v35  ;;  %v9229_v35 = vpack.c.bf16 %v2894_v52, %v2893_v23  ;;  %v2572_v23 = vld [vmem:[#allocation2 + $0x168] sm:$0xff]  ;;  %v2573_v52 = vld [vmem:[#allocation2 + $0x170] sm:$0xff] }
 0x270   : > { %7972 = vmatprep.mubr.f32.mxu0 %v11023_v41  ;;  %9216 = vmatpush3.bf16.msra.mxu0 %v9213_v61  ;;  %v2278_v41 = vld [vmem:[#allocation2 + $0x227] sm:$0xff] }
 0x271   : > { %9218 = vmatprep.subr.bf16.mxu0 %v9217_v3  ;;  %v2566_v61 = vld [vmem:[#allocation2 + $0x108] sm:$0xff] }
 0x273   : > { %7973 = vmatmul.mubr.f32.gmra.mrb[10].mxu0 %v11027_v53  ;;  %v2279_v53 = vld [vmem:[#allocation2 + $0x22f] sm:$0xff] }
 0x274   : > { %7975 = vmatprep.mubr.f32.mxu0 %v11029_v54  ;;  %9220 = vmatpush3.bf16.msra.mxu0 %v9217_v3  ;;  %v2554_v54 = vld [vmem:[#allocation2 + $0x48] sm:$0xff]  ;;  %v2908_v3 = vld [vmem:[#allocation6 + $0x478] sm:$0xff] }
 0x275   : > { %9222 = vmatprep.subr.bf16.mxu0 %v9221_v7 }
 0x277   : > { %7976 = vmatmul.mubr.f32.gmra.mrb[12].mxu0 %v11033_v58  ;;  %v2895_v58 = vld [vmem:[#allocation6 + $0x410] sm:$0xff] }
 0x278   : > { %7978 = vmatprep.mubr.f32.mxu0 %v11035_v59  ;;  %9224 = vmatpush3.bf16.msra.mxu0 %v9221_v7  ;;  %v2896_v59 = vld [vmem:[#allocation6 + $0x418] sm:$0xff]  ;;  %v9257_v7 = vpack.c.bf16 %v2908_v3, %v2907_v37  ;;  %v3307_v37 = vld [vmem:[#allocation6 + $0x4a8] sm:$0xff] }
 0x279   : > { %9226 = vmatprep.subr.bf16.mxu0 %v9225_v19 }
 0x27b   : > { %7979 = vmatmul.mubr.f32.gmra.mrb[14].mxu0 %v11039_v60  ;;  %v3351_v60 = vld [vmem:[#allocation6 + $0x500] sm:$0xff] }
 0x27c   : > { %7981 = vmatprep.mubr.f32.mxu0 %v11041_v63  ;;  %9228 = vmatpush3.bf16.msra.mxu0 %v9225_v19  ;;  %v3352_v63 = vld [vmem:[#allocation6 + $0x508] sm:$0xff]  ;;  %v2571_v19 = vld [vmem:[#allocation2 + $0x150] sm:$0xff] }
 0x27d   : > { %9230 = vmatprep.subr.bf16.mxu0 %v9229_v35 }
 0x27f   : > { %7982 = vmatmul.mubr.f32.gmra.mrb[16].mxu0 %v11045_v1  ;;  %v3353_v1 = vld [vmem:[#allocation6 + $0x510] sm:$0xff] }
 0x280   : > { %7984 = vmatprep.mubr.f32.mxu0 %v11047_v2  ;;  %v2555_v2 = vld [vmem:[#allocation2 + $0x50] sm:$0xff] }
 0x283   : > { %7985 = vmatmul.mubr.f32.gmra.mrb[18].mxu0 %v11051_v5  ;;  %v9261_v5 = vpack.c.bf16 %v3352_v63, %v3351_v60  ;;  %v2580_v60 = vld [vmem:[#allocation2 + $0x1e8] sm:$0xff]  ;;  %v2581_v63 = vld [vmem:[#allocation2 + $0x1f0] sm:$0xff] }
 0x284   : > { %7987 = vmatprep.mubr.f32.mxu0 %v11053_v0  ;;  %v3354_v0 = vld [vmem:[#allocation6 + $0x518] sm:$0xff] }
 0x285   : > { %9262 = vmatprep.subr.bf16.mxu1 %v9261_v5 }
 0x286   : > { %9264 = vmatpush3.bf16.msra.mxu1 %v9261_v5  ;;  %v11310_v5 = vld [vmem:[#allocation2 + $0x8] sm:$0xff] }
 0x287   : > { %7988 = vmatmul.mubr.f32.gmra.mrb[20].mxu0 %v11057_v6  ;;  %v2556_v6 = vld [vmem:[#allocation2 + $0x68] sm:$0xff] }
 0x288   : > { %7990 = vmatprep.mubr.f32.mxu0 %v11059_v9  ;;  %v9233_v9 = vpack.c.bf16 %v2896_v59, %v2895_v58  ;;  %v2578_v58 = vld [vmem:[#allocation2 + $0x1c8] sm:$0xff]  ;;  %v2579_v59 = vld [vmem:[#allocation2 + $0x1d0] sm:$0xff] }
 0x28b   : > { %7991 = vmatmul.mubr.f32.gmra.mrb[22].mxu0 %v11063_v12  ;;  %v2897_v12 = vld [vmem:[#allocation6 + $0x420] sm:$0xff] }
 0x28c   : > { %7993 = vmatprep.mubr.f32.mxu0 %v11065_v13  ;;  %v9265_v13 = vpack.c.bf16 %v3354_v0, %v3353_v1  ;;  %v10229_v1 = vld [vmem:[#allocation2 + $0x208] sm:$0xff] }
 0x28d   : > { %v2860_v0 = vld [vmem:[#allocation2 + $0x49] sm:$0xff] }
 0x28e   : > { %9266 = vmatprep.subr.bf16.mxu1 %v9265_v13 }
 0x28f   : > { %7994 = vmatmul.mubr.f32.gmra.mrb[24].mxu0 %v11077_v34  ;;  %v2898_v34 = vld [vmem:[#allocation6 + $0x428] sm:$0xff]  ;;  %9268 = vmatpush3.bf16.msra.mxu1 %v9265_v13 }
 0x290   : > { %7996 = vmatprep.mubr.f32.mxu0 %v11079_v45  ;;  %v3355_v45 = vld [vmem:[#allocation6 + $0x520] sm:$0xff]  ;;  %v9237_v44 = vpack.c.bf16 %v2898_v34, %v2897_v12  ;;  %v2863_v12 = vld [vmem:[#allocation2 + $0x71] sm:$0xff]  ;;  %v2864_v13 = vld [vmem:[#allocation2 + $0x89] sm:$0xff] }
 0x291   : > { %v2865_v34 = vld [vmem:[#allocation2 + $0x91] sm:$0xff] }
 0x293   : > { %7997 = vmatmul.mubr.f32.gmra.mrb[26].mxu0 %v11083_v46  ;;  %v3356_v46 = vld [vmem:[#allocation6 + $0x528] sm:$0xff] }
 0x294   : > { %7999 = vmatprep.mubr.f32.mxu0 %v11205_v55  ;;  %v2557_v55 = vld [vmem:[#allocation2 + $0x70] sm:$0xff]  ;;  %v9269_v40 = vpack.c.bf16 %v3356_v46, %v3355_v45 }
 0x295   : > { %v2866_v45 = vld [vmem:[#allocation2 + $0xa9] sm:$0xff]  ;;  %v2867_v46 = vld [vmem:[#allocation2 + $0xb1] sm:$0xff] }
 0x296   : > { %9270 = vmatprep.subr.bf16.mxu1 %v9269_v40 }
 0x297   : > { %8000 = vmatmul.mubr.f32.gmra.mrb[28].mxu0 %v11209_v51  ;;  %v2558_v51 = vld [vmem:[#allocation2 + $0x88] sm:$0xff]  ;;  %9272 = vmatpush3.bf16.msra.mxu1 %v9269_v40 }
 0x298   : > { %8002 = vmatprep.mubr.f32.mxu0 %v2278_v41  ;;  %9274 = vmatprep.subr.bf16.mxu1 %v9273_v15  ;;  %v2575_v41 = vld [vmem:[#allocation2 + $0x190] sm:$0xff] }
 0x299   : > { %v2872_v40 = vld [vmem:[#allocation2 + $0x109] sm:$0xff] }
 0x29b   : > { %8003 = vmatmul.mubr.f32.gmra.mrb[30].mxu0 %v2279_v53  ;;  %9276 = vmatpush3.bf16.msra.mxu1 %v9273_v15  ;;  %v2576_v53 = vld [vmem:[#allocation2 + $0x1a8] sm:$0xff] }
 0x29c   : > { %8037 = vmatprep.mubr.f32.mxu0 %v2554_v54  ;;  %9278 = vmatprep.subr.bf16.mxu1 %v9277_v22  ;;  %v2577_v54 = vld [vmem:[#allocation2 + $0x1b0] sm:$0xff] }
 0x29d   : > { %v2880_v15 = vld [vmem:[#allocation2 + $0x189] sm:$0xff] }
 0x29f   : > { %8038 = vmatmul.mubr.f32.vlgmr.msra.gmra.mrb[0].mxu0 %v2555_v2  ;;  %9280 = vmatpush3.bf16.msra.mxu1 %v9277_v22  ;;  %v10230_v2 = vld [vmem:[#allocation2 + $0x210] sm:$0xff] }
 0x2a0   : > { %8040 = vmatprep.mubr.f32.mxu0 %v2556_v6  ;;  %9232 = vmatpush3.bf16.msra.mxu0 %v9229_v35  ;;  %v2574_v35 = vld [vmem:[#allocation2 + $0x188] sm:$0xff]  ;;  %v2861_v6 = vld [vmem:[#allocation2 + $0x51] sm:$0xff] }
 0x2a1   : > { %9234 = vmatprep.subr.bf16.mxu0 %v9233_v9  ;;  %9282 = vmatprep.subr.bf16.mxu1 %v9281_v39  ;;  %v2890_v22 = vld [vmem:[#allocation2 + $0x229] sm:$0xff] }
 0x2a3   : > { %8041 = vmatmul.mubr.f32.gmra.mrb[2].mxu0 %v2557_v55  ;;  %9284 = vmatpush3.bf16.msra.mxu1 %v9281_v39  ;;  %v2868_v55 = vld [vmem:[#allocation2 + $0xc9] sm:$0xff] }
 0x2a4   : > { %8043 = vmatprep.mubr.f32.mxu0 %v2558_v51  ;;  %9236 = vmatpush3.bf16.msra.mxu0 %v9233_v9  ;;  %v2862_v9 = vld [vmem:[#allocation2 + $0x69] sm:$0xff]  ;;  %v2869_v51 = vld [vmem:[#allocation2 + $0xd1] sm:$0xff] }
 0x2a5   : > { %9238 = vmatprep.subr.bf16.mxu0 %v9237_v44 }
 0x2a7   : > { %8044 = vmatmul.mubr.f32.gmra.mrb[4].mxu0 %v2559_v43  ;;  %v2876_v43 = vld [vmem:[#allocation2 + $0x149] sm:$0xff] }
 0x2a8   : > { %8046 = vmatprep.mubr.f32.mxu0 %v2560_v11  ;;  %9240 = vmatpush3.bf16.msra.mxu0 %v9237_v44  ;;  %v2870_v44 = vld [vmem:[#allocation2 + $0xe9] sm:$0xff]  ;;  %v2877_v11 = vld [vmem:[#allocation2 + $0x151] sm:$0xff] }
 0x2a9   : > { %9242 = vmatprep.subr.bf16.mxu0 %v9241_v14 }
 0x2ab   : > { %8047 = vmatmul.mubr.f32.gmra.mrb[6].mxu0 %v2561_v18  ;;  %v2884_v18 = vld [vmem:[#allocation2 + $0x1c9] sm:$0xff] }
 0x2ac   : > { %8049 = vmatprep.mubr.f32.mxu0 %v2562_v24  ;;  %9244 = vmatpush3.bf16.msra.mxu0 %v9241_v14  ;;  %v2878_v14 = vld [vmem:[#allocation2 + $0x169] sm:$0xff]  ;;  %v2885_v24 = vld [vmem:[#allocation2 + $0x1d1] sm:$0xff] }
 0x2ad   : > { %9246 = vmatprep.subr.bf16.mxu0 %v9245_v20 }
 0x2af   : > { %8050 = vmatmul.mubr.f32.gmra.mrb[8].mxu0 %v2563_v29  ;;  %v9285_v29 = vpack.c.bf16 %v3364_v28, %v3363_v27 }
 0x2b0   : > { %8052 = vmatprep.mubr.f32.mxu0 %v2564_v31  ;;  %9248 = vmatpush3.bf16.msra.mxu0 %v9245_v20  ;;  %v2886_v20 = vld [vmem:[#allocation2 + $0x1e9] sm:$0xff] }
 0x2b1   : > { %9250 = vmatprep.subr.bf16.mxu0 %v9249_v32  ;;  %9286 = vmatprep.subr.bf16.mxu1 %v9285_v29  ;;  %v3365_v31 = vld [vmem:[#allocation6 + $0x570] sm:$0xff] }
 0x2b2   : > { %9288 = vmatpush3.bf16.msra.mxu1 %v9285_v29 }
 0x2b3   : > { %8053 = vmatmul.mubr.f32.gmra.mrb[10].mxu0 %v2565_v36  ;;  %v3305_v36 = vld [vmem:[#allocation6 + $0x498] sm:$0xff] }
 0x2b4   : > { %8055 = vmatprep.mubr.f32.mxu0 %v2566_v61  ;;  %9252 = vmatpush3.bf16.msra.mxu0 %v9249_v32  ;;  %v3366_v32 = vld [vmem:[#allocation6 + $0x578] sm:$0xff] }
 0x2b5   : > { %9254 = vmatprep.subr.bf16.mxu0 %v9253_v62  ;;  %v9289_v39 = vpack.c.bf16 %v3366_v32, %v3365_v31 }
 0x2b7   : > { %8056 = vmatmul.mubr.f32.gmra.mrb[12].mxu0 %v2567_v4  ;;  %9290 = vmatprep.subr.bf16.mxu1 %v9289_v39  ;;  %v3308_v4 = vld [vmem:[#allocation6 + $0x4b0] sm:$0xff] }
 0x2b8   : > { %8058 = vmatprep.mubr.f32.mxu0 %v2568_v49  ;;  %9256 = vmatpush3.bf16.msra.mxu0 %v9253_v62  ;;  %v3306_v62 = vld [vmem:[#allocation6 + $0x4a0] sm:$0xff]  ;;  %v3309_v49 = vld [vmem:[#allocation6 + $0x4b8] sm:$0xff] }
 0x2b9   : > { %9258 = vmatprep.subr.bf16.mxu0 %v9257_v7  ;;  %9292 = vmatpush3.bf16.msra.mxu1 %v9289_v39  ;;  %v9301_v3 = vpack.c.bf16 %v3307_v37, %v3306_v62 }
 0x2bb   : > { %8059 = vmatmul.mubr.f32.gmra.mrb[14].mxu0 %v2569_v8  ;;  %v3310_v8 = vld [vmem:[#allocation6 + $0x4c0] sm:$0xff] }
 0x2bc   : > { %8061 = vmatprep.mubr.f32.mxu0 %v2570_v48  ;;  %9260 = vmatpush3.bf16.msra.mxu0 %v9257_v7  ;;  %v9305_v7 = vpack.c.bf16 %v3309_v49, %v3308_v4  ;;  %v3311_v48 = vld [vmem:[#allocation6 + $0x4c8] sm:$0xff] }
 0x2bd   : > { %8198 = vmatmul.mubr.f32.vlgmr.msra.gmra.mrb[0].mxu1 %v11310_v5 }
 0x2bf   : > { %8062 = vmatmul.mubr.f32.gmra.mrb[16].mxu0 %v2571_v19  ;;  %v9309_v19 = vpack.c.bf16 %v3311_v48, %v3310_v8 }
 0x2c0   : > { %8064 = vmatprep.mubr.f32.mxu0 %v2572_v23  ;;  %v3312_v23 = vld [vmem:[#allocation6 + $0x4d0] sm:$0xff] }
 0x2c3   : > { %8065 = vmatmul.mubr.f32.gmra.mrb[18].mxu0 %v2573_v52  ;;  %v3313_v52 = vld [vmem:[#allocation6 + $0x4d8] sm:$0xff] }
 0x2c4   : > { %8067 = vmatprep.mubr.f32.mxu0 %v2574_v35  ;;  %v9313_v35 = vpack.c.bf16 %v3313_v52, %v3312_v23 }
 0x2c7   : > { %8068 = vmatmul.mubr.f32.gmra.mrb[20].mxu0 %v2575_v41  ;;  %v3314_v41 = vld [vmem:[#allocation6 + $0x4e0] sm:$0xff] }
 0x2c8   : > { %8070 = vmatprep.mubr.f32.mxu0 %v2576_v53  ;;  %v3315_v53 = vld [vmem:[#allocation6 + $0x4e8] sm:$0xff] }
 0x2cb   : > { %8071 = vmatmul.mubr.f32.gmra.mrb[22].mxu0 %v2577_v54  ;;  %v9317_v54 = vpack.c.bf16 %v3315_v53, %v3314_v41 }
 0x2cc   : > { %8073 = vmatprep.mubr.f32.mxu0 %v2578_v58  ;;  %v3316_v58 = vld [vmem:[#allocation6 + $0x4f0] sm:$0xff] }
 0x2cf   : > { %8074 = vmatmul.mubr.f32.gmra.mrb[24].mxu0 %v2579_v59  ;;  %v3317_v59 = vld [vmem:[#allocation6 + $0x4f8] sm:$0xff] }
 0x2d0   : > { %8076 = vmatprep.mubr.f32.mxu0 %v2580_v60  ;;  %v9321_v60 = vpack.c.bf16 %v3317_v59, %v3316_v58 }
 0x2d3   : > { %8077 = vmatmul.mubr.f32.gmra.mrb[26].mxu0 %v2581_v63  ;;  %v3850_v63 = vld [vmem:[#allocation6 + $0x580] sm:$0xff] }
 0x2d4   : > { %8079 = vmatprep.mubr.f32.mxu0 %v10229_v1  ;;  %v3851_v1 = vld [vmem:[#allocation6 + $0x588] sm:$0xff] }
 0x2d7   : > { %8080 = vmatmul.mubr.f32.gmra.mrb[28].mxu0 %v10230_v2  ;;  %v11317_v2 = vpack.c.bf16 %v3851_v1, %v3850_v63 }
 0x2d8   : > { %8082 = vmatprep.mubr.f32.mxu0 %v11310_v5 }
 0x2db   : > { %8083 = vmatmul.mubr.f32.gmra.mrb[30].mxu0 %v11310_v5  ;;  %v11320_v5 = vld [vmem:[#allocation8] ss:$0 sm:$0xff] }
 0x2dc   : > { %8117 = vmatprep.mubr.f32.mxu0 %v2860_v0 }
 0x2df   : > { %8118 = vmatmul.mubr.f32.vlgmr.msra.gmra.mrb[0].mxu0 %v2861_v6 }
 0x2e0   : > { %8120 = vmatprep.mubr.f32.mxu0 %v2862_v9 }
 0x2e3   : > { %8121 = vmatmul.mubr.f32.gmra.mrb[2].mxu0 %v2863_v12 }
 0x2e4   : > { %8123 = vmatprep.mubr.f32.mxu0 %v2864_v13 }
 0x2e7   : > { %8124 = vmatmul.mubr.f32.gmra.mrb[4].mxu0 %v2865_v34 }
 0x2e8   : > { %8126 = vmatprep.mubr.f32.mxu0 %v2866_v45 }
 0x2eb   : > { %8127 = vmatmul.mubr.f32.gmra.mrb[6].mxu0 %v2867_v46 }
 0x2ec   : > { %8129 = vmatprep.mubr.f32.mxu0 %v2868_v55 }
 0x2ef   : > { %8130 = vmatmul.mubr.f32.gmra.mrb[8].mxu0 %v2869_v51 }
 0x2f0   : > { %8132 = vmatprep.mubr.f32.mxu0 %v2870_v44 }
 0x2f3   : > { %8133 = vmatmul.mubr.f32.gmra.mrb[10].mxu0 %v2871_v10 }
 0x2f4   : > { %8135 = vmatprep.mubr.f32.mxu0 %v2872_v40 }
 0x2f7   : > { %8136 = vmatmul.mubr.f32.gmra.mrb[12].mxu0 %v2873_v30 }
 0x2f8   : > { %8138 = vmatprep.mubr.f32.mxu0 %v2874_v50 }
 0x2fb   : > { %8139 = vmatmul.mubr.f32.gmra.mrb[14].mxu0 %v2875_v42 }
 0x2fc   : > { %8141 = vmatprep.mubr.f32.mxu0 %v2876_v43 }
 0x2ff   : > { %8142 = vmatmul.mubr.f32.gmra.mrb[16].mxu0 %v2877_v11 }
 0x300   : > { %8144 = vmatprep.mubr.f32.mxu0 %v2878_v14 }
 0x303   : > { %8145 = vmatmul.mubr.f32.gmra.mrb[18].mxu0 %v2879_v56 }
 0x304   : > { %8147 = vmatprep.mubr.f32.mxu0 %v2880_v15 }
 0x307   : > { %8148 = vmatmul.mubr.f32.gmra.mrb[20].mxu0 %v2881_v16 }
 0x308   : > { %8150 = vmatprep.mubr.f32.mxu0 %v2882_v47 }
 0x30b   : > { %8151 = vmatmul.mubr.f32.gmra.mrb[22].mxu0 %v2883_v17 }
 0x30c   : > { %8153 = vmatprep.mubr.f32.mxu0 %v2884_v18 }
 0x30f   : > { %8154 = vmatmul.mubr.f32.gmra.mrb[24].mxu0 %v2885_v24 }
 0x310   : > { %8156 = vmatprep.mubr.f32.mxu0 %v2886_v20 }
 0x313   : > { %8157 = vmatmul.mubr.f32.gmra.mrb[26].mxu0 %v2887_v38 }
 0x314   : > { %8159 = vmatprep.mubr.f32.mxu0 %v11273_v21  ;;  %v3303_v21 = vld [vmem:[#allocation6 + $0x488] sm:$0xff] }
 0x315   : > { %v9293_v57 = vpack.c.bf16 %v3303_v21, %v3302_v33 }
 0x317   : > { %8160 = vmatmul.mubr.f32.gmra.mrb[28].mxu0 %v11277_v25  ;;  %9294 = vmatprep.subr.bf16.mxu1 %v9293_v57  ;;  %v3304_v25 = vld [vmem:[#allocation6 + $0x490] sm:$0xff] }
 0x318   : > { %8162 = vmatprep.mubr.f32.mxu0 %v2890_v22  ;;  %9296 = vmatpush3.bf16.msra.mxu1 %v9293_v57  ;;  %v9297_v61 = vpack.c.bf16 %v3305_v36, %v3304_v25 }
 0x31a   : > { %9298 = vmatprep.subr.bf16.mxu1 %v9297_v61 }
 0x31b   : > { %8163 = vmatmul.mubr.f32.gmra.mrb[30].mxu0 %v2891_v26 }
 0x31c   : > { %9300 = vmatpush3.bf16.msra.mxu1 %v9297_v61 }
 0x31d   : > { %9302 = vmatprep.subr.bf16.mxu1 %v9301_v3 }
 0x320   : > { %9304 = vmatpush3.bf16.msra.mxu1 %v9301_v3 }
 0x321   : > { %9306 = vmatprep.subr.bf16.mxu1 %v9305_v7 }
 0x324   : > { %9308 = vmatpush3.bf16.msra.mxu1 %v9305_v7 }
 0x325   : > { %9310 = vmatprep.subr.bf16.mxu1 %v9309_v19 }
 0x328   : > { %9312 = vmatpush3.bf16.msra.mxu1 %v9309_v19 }
 0x329   : > { %9314 = vmatprep.subr.bf16.mxu1 %v9313_v35 }
 0x32c   : > { %9316 = vmatpush3.bf16.msra.mxu1 %v9313_v35 }
 0x32d   : > { %9318 = vmatprep.subr.bf16.mxu1 %v9317_v54 }
 0x330   : > { %9320 = vmatpush3.bf16.msra.mxu1 %v9317_v54 }
 0x331   : > { %9322 = vmatprep.subr.bf16.mxu1 %v9321_v60 }
 0x334   : > { %9324 = vmatpush3.bf16.msra.mxu1 %v9321_v60 }
 0x335   : > { %9326 = vmatprep.subr.bf16.mxu1 %v11317_v2 }
 0x3b2   : > { %v8119_v0 = vpop.f32.mrb[0].mxu0 }
 0x3b3   : > { %v3174_v6 = vadd.f32 %v8119_v0, %v11320_v5  ;;  %v2975_v9 = vpop.f32.mrb[1].mxu0 }
 0x3b4   : > { %v3173_v12 = vadd.f32 %v11320_v5, %v2975_v9 }
 0x3b5   : > { %v3206_v13 = vmax.f32 %v3174_v6, 0.0 }
 0x3b6   : > { %v3205_v34 = vmax.f32 %v3173_v12, 0.0  ;;  %v8122_v45 = vpop.f32.mrb[2].mxu0 }
 0x3b7   : > { %3238 = vst [vmem:[#allocation2 + $0x30] sm:$0xff] %v3206_v13  ;;  %v3176_v46 = vadd.f32 %v8122_v45, %v11320_v5  ;;  %v2985_v55 = vpop.f32.mrb[3].mxu0 }
 0x3b8   : > { %3237 = vst [vmem:[#allocation2 + $0x28] sm:$0xff] %v3205_v34  ;;  %v3175_v51 = vadd.f32 %v11320_v5, %v2985_v55  ;;  %8200 = vmatprep.mubr.f32.mxu1 %v3205_v34 }
 0x3b9   : > { %v3208_v44 = vmax.f32 %v3176_v46, 0.0  ;;  %8201 = vmatmul.mubr.f32.gmra.mrb[2].mxu1 %v3206_v13 }
 0x3ba   : > { %v3207_v10 = vmax.f32 %v3175_v51, 0.0  ;;  %v8125_v40 = vpop.f32.mrb[4].mxu0 }
 0x3bb   : > { %3240 = vst [vmem:[#allocation2 + $0x50] sm:$0xff] %v3208_v44  ;;  %v3178_v30 = vadd.f32 %v8125_v40, %v11320_v5  ;;  %v2995_v50 = vpop.f32.mrb[5].mxu0 }
 0x3bc   : > { %3239 = vst [vmem:[#allocation2 + $0x48] sm:$0xff] %v3207_v10  ;;  %v3177_v42 = vadd.f32 %v11320_v5, %v2995_v50  ;;  %8203 = vmatprep.mubr.f32.mxu1 %v3207_v10 }
 0x3bd   : > { %v3210_v43 = vmax.f32 %v3178_v30, 0.0  ;;  %8204 = vmatmul.mubr.f32.gmra.mrb[4].mxu1 %v3208_v44 }
 0x3be   : > { %v3209_v11 = vmax.f32 %v3177_v42, 0.0  ;;  %v8128_v14 = vpop.f32.mrb[6].mxu0 }
 0x3bf   : > { %3242 = vst [vmem:[#allocation2 + $0x70] sm:$0xff] %v3210_v43  ;;  %v3180_v56 = vadd.f32 %v8128_v14, %v11320_v5  ;;  %v3005_v15 = vpop.f32.mrb[7].mxu0 }
 0x3c0   : > { %3241 = vst [vmem:[#allocation2 + $0x68] sm:$0xff] %v3209_v11  ;;  %v3179_v16 = vadd.f32 %v11320_v5, %v3005_v15  ;;  %8206 = vmatprep.mubr.f32.mxu1 %v3209_v11 }
 0x3c1   : > { %v3212_v47 = vmax.f32 %v3180_v56, 0.0  ;;  %8207 = vmatmul.mubr.f32.gmra.mrb[6].mxu1 %v3210_v43 }
 0x3c2   : > { %v3211_v17 = vmax.f32 %v3179_v16, 0.0  ;;  %v8131_v18 = vpop.f32.mrb[8].mxu0 }
 0x3c3   : > { %3244 = vst [vmem:[#allocation2 + $0x90] sm:$0xff] %v3212_v47  ;;  %v3182_v24 = vadd.f32 %v8131_v18, %v11320_v5  ;;  %v3015_v20 = vpop.f32.mrb[9].mxu0 }
 0x3c4   : > { %3243 = vst [vmem:[#allocation2 + $0x88] sm:$0xff] %v3211_v17  ;;  %v3181_v38 = vadd.f32 %v11320_v5, %v3015_v20  ;;  %8209 = vmatprep.mubr.f32.mxu1 %v3211_v17 }
 0x3c5   : > { %v3214_v22 = vmax.f32 %v3182_v24, 0.0  ;;  %8210 = vmatmul.mubr.f32.gmra.mrb[8].mxu1 %v3212_v47 }
 0x3c6   : > { %v3213_v26 = vmax.f32 %v3181_v38, 0.0  ;;  %v8134_v27 = vpop.f32.mrb[10].mxu0 }
 0x3c7   : > { %3246 = vst [vmem:[#allocation2 + $0xb0] sm:$0xff] %v3214_v22  ;;  %v3184_v28 = vadd.f32 %v8134_v27, %v11320_v5  ;;  %v3025_v29 = vpop.f32.mrb[11].mxu0 }
 0x3c8   : > { %3245 = vst [vmem:[#allocation2 + $0xa8] sm:$0xff] %v3213_v26  ;;  %v3183_v31 = vadd.f32 %v11320_v5, %v3025_v29  ;;  %8212 = vmatprep.mubr.f32.mxu1 %v3213_v26 }
 0x3c9   : > { %v3216_v32 = vmax.f32 %v3184_v28, 0.0  ;;  %8213 = vmatmul.mubr.f32.gmra.mrb[10].mxu1 %v3214_v22  ;;  %v3269_v28 = vld [vmem:[#allocation2 + $0x7] sm:$0xff] }
 0x3ca   : > { %v11334_v39 = vmax.f32 %v3183_v31, 0.0  ;;  %v8137_v33 = vpop.f32.mrb[12].mxu0  ;;  %v3852_v31 = vld [vmem:[#allocation6 + $0x590] sm:$0xff] }
 0x3cb   : > { %3248 = vst [vmem:[#allocation2 + $0xd0] sm:$0xff] %v3216_v32  ;;  %v3186_v21 = vadd.f32 %v8137_v33, %v11320_v5  ;;  %v3035_v57 = vpop.f32.mrb[13].mxu0 }
 0x3cc   : > { %3247 = vst [vmem:[#allocation2 + $0xc8] sm:$0xff] %v11334_v39  ;;  %v3185_v25 = vadd.f32 %v11320_v5, %v3035_v57  ;;  %8215 = vmatprep.mubr.f32.mxu1 %v11334_v39  ;;  %v3270_v57 = vld [vmem:[#allocation2 + $0xf] sm:$0xff] }
 0x3cd   : > { %v11340_v36 = vmax.f32 %v3186_v21, 0.0  ;;  %8216 = vmatmul.mubr.f32.gmra.mrb[12].mxu1 %v3216_v32  ;;  %v3853_v32 = vld [vmem:[#allocation6 + $0x598] sm:$0xff] }
 0x3ce   : > { %v11342_v61 = vmax.f32 %v3185_v25, 0.0  ;;  %v8140_v62 = vpop.f32.mrb[14].mxu0  ;;  %v9329_v25 = vpack.c.bf16 %v3853_v32, %v3852_v31 }
 0x3cf   : > { %3250 = vst [vmem:[#allocation2 + $0xf0] sm:$0xff] %v11340_v36  ;;  %v3188_v37 = vadd.f32 %v8140_v62, %v11320_v5  ;;  %v3045_v3 = vpop.f32.mrb[15].mxu0  ;;  %v3855_v62 = vld [vmem:[#allocation6 + $0x5a8] sm:$0xff] }
 0x3d0   : > { %3249 = vst [vmem:[#allocation2 + $0xe8] sm:$0xff] %v11342_v61  ;;  %v3187_v4 = vadd.f32 %v11320_v5, %v3045_v3  ;;  %8218 = vmatprep.mubr.f32.mxu1 %v11342_v61 }
 0x3d1   : > { %v11349_v49 = vmax.f32 %v3188_v37, 0.0  ;;  %8219 = vmatmul.mubr.f32.gmra.mrb[14].mxu1 %v11340_v36  ;;  %v11440_v37 = vld [vmem:[#allocation2 + $0x27] sm:$0xff] }
 0x3d2   : > { %v11352_v7 = vmax.f32 %v3187_v4, 0.0  ;;  %v8143_v8 = vpop.f32.mrb[16].mxu0  ;;  %v11444_v4 = vld [vmem:[#allocation2 + $0x2f] sm:$0xff] }
 0x3d3   : > { %3252 = vst [vmem:[#allocation2 + $0x110] sm:$0xff] %v11349_v49  ;;  %v3190_v48 = vadd.f32 %v8143_v8, %v11320_v5  ;;  %v3055_v19 = vpop.f32.mrb[17].mxu0  ;;  %v3856_v8 = vld [vmem:[#allocation6 + $0x5b0] sm:$0xff] }
 0x3d4   : > { %3251 = vst [vmem:[#allocation2 + $0x108] sm:$0xff] %v11352_v7  ;;  %v3189_v23 = vadd.f32 %v11320_v5, %v3055_v19  ;;  %8221 = vmatprep.mubr.f32.mxu1 %v11352_v7  ;;  %v11447_v19 = vld [vmem:[#allocation2 + $0x47] sm:$0xff] }
 0x3d5   : > { %v11359_v52 = vmax.f32 %v3190_v48, 0.0  ;;  %8222 = vmatmul.mubr.f32.gmra.mrb[16].mxu1 %v11349_v49  ;;  %v3857_v48 = vld [vmem:[#allocation6 + $0x5b8] sm:$0xff] }
 0x3d6   : > { %v11362_v35 = vmax.f32 %v3189_v23, 0.0  ;;  %v8146_v41 = vpop.f32.mrb[18].mxu0  ;;  %v9337_v23 = vpack.c.bf16 %v3857_v48, %v3856_v8 }
 0x3d7   : > { %3254 = vst [vmem:[#allocation2 + $0x130] sm:$0xff] %v11359_v52  ;;  %v3192_v53 = vadd.f32 %v8146_v41, %v11320_v5  ;;  %v3065_v54 = vpop.f32.mrb[19].mxu0  ;;  %v11450_v41 = vld [vmem:[#allocation2 + $0x4f] sm:$0xff] }
 0x3d8   : > { %3253 = vst [vmem:[#allocation2 + $0x128] sm:$0xff] %v11362_v35  ;;  %v3191_v58 = vadd.f32 %v11320_v5, %v3065_v54  ;;  %8224 = vmatprep.mubr.f32.mxu1 %v11362_v35  ;;  %v3859_v54 = vld [vmem:[#allocation6 + $0x5c8] sm:$0xff] }
 0x3d9   : > { %v11369_v59 = vmax.f32 %v3192_v53, 0.0  ;;  %8225 = vmatmul.mubr.f32.gmra.mrb[18].mxu1 %v11359_v52  ;;  %v3858_v53 = vld [vmem:[#allocation6 + $0x5c0] sm:$0xff] }
 0x3da   : > { %v11372_v60 = vmax.f32 %v3191_v58, 0.0  ;;  %v8149_v63 = vpop.f32.mrb[20].mxu0  ;;  %v9341_v58 = vpack.c.bf16 %v3859_v54, %v3858_v53 }
 0x3db   : > { %3256 = vst [vmem:[#allocation2 + $0x150] sm:$0xff] %v11369_v59  ;;  %v3194_v1 = vadd.f32 %v8149_v63, %v11320_v5  ;;  %v3075_v0 = vpop.f32.mrb[21].mxu0  ;;  %v11456_v63 = vld [vmem:[#allocation2 + $0x6f] sm:$0xff] }
 0x3dc   : > { %3255 = vst [vmem:[#allocation2 + $0x148] sm:$0xff] %v11372_v60  ;;  %v3193_v6 = vadd.f32 %v11320_v5, %v3075_v0  ;;  %8227 = vmatprep.mubr.f32.mxu1 %v11372_v60  ;;  %v3861_v0 = vld [vmem:[#allocation6 + $0x5d8] sm:$0xff] }
 0x3dd   : > { %v11379_v9 = vmax.f32 %v3194_v1, 0.0  ;;  %8228 = vmatmul.mubr.f32.gmra.mrb[20].mxu1 %v11369_v59  ;;  %v3860_v1 = vld [vmem:[#allocation6 + $0x5d0] sm:$0xff] }
 0x3de   : > { %v11382_v12 = vmax.f32 %v3193_v6, 0.0  ;;  %v8152_v13 = vpop.f32.mrb[22].mxu0  ;;  %v11459_v6 = vld [vmem:[#allocation2 + $0x87] sm:$0xff] }
 0x3df   : > { %3258 = vst [vmem:[#allocation2 + $0x170] sm:$0xff] %v11379_v9  ;;  %v3196_v34 = vadd.f32 %v8152_v13, %v11320_v5  ;;  %v3085_v45 = vpop.f32.mrb[23].mxu0  ;;  %v9345_v13 = vpack.c.bf16 %v3861_v0, %v3860_v1  ;;  %v11489_v31 = vld [vmem:[#allocation2 + $0x127] sm:$0xff]  ;;  %v11492_v32 = vld [vmem:[#allocation2 + $0x12f] sm:$0xff] }
 0x3e0   : > { %3257 = vst [vmem:[#allocation2 + $0x168] sm:$0xff] %v11382_v12  ;;  %v3195_v46 = vadd.f32 %v11320_v5, %v3085_v45  ;;  %8230 = vmatprep.mubr.f32.mxu1 %v11382_v12  ;;  %v3862_v45 = vld [vmem:[#allocation6 + $0x5e0] sm:$0xff]  ;;  %v3817_v1 = vld [vmem:[#allocation2 + $0x9] sm:$0xff] }
 0x3e1   : > { %v11389_v55 = vmax.f32 %v3196_v34, 0.0  ;;  %8231 = vmatmul.mubr.f32.gmra.mrb[22].mxu1 %v11379_v9  ;;  %v11462_v34 = vld [vmem:[#allocation2 + $0x8f] sm:$0xff] }
 0x3e2   : > { %v11392_v51 = vmax.f32 %v3195_v46, 0.0  ;;  %v8155_v44 = vpop.f32.mrb[24].mxu0  ;;  %v3863_v46 = vld [vmem:[#allocation6 + $0x5e8] sm:$0xff] }
 0x3e3   : > { %3260 = vst [vmem:[#allocation2 + $0x190] sm:$0xff] %v11389_v55  ;;  %v3198_v10 = vadd.f32 %v8155_v44, %v11320_v5  ;;  %v3095_v40 = vpop.f32.mrb[25].mxu0  ;;  %v11465_v44 = vld [vmem:[#allocation2 + $0xa7] sm:$0xff] }
 0x3e4   : > { %3259 = vst [vmem:[#allocation2 + $0x188] sm:$0xff] %v11392_v51  ;;  %v3197_v30 = vadd.f32 %v11320_v5, %v3095_v40  ;;  %8233 = vmatprep.mubr.f32.mxu1 %v11392_v51  ;;  %v11468_v40 = vld [vmem:[#allocation2 + $0xaf] sm:$0xff] }
 0x3e5   : > { %v11399_v50 = vmax.f32 %v3198_v10, 0.0  ;;  %8234 = vmatmul.mubr.f32.gmra.mrb[24].mxu1 %v11389_v55  ;;  %v9349_v10 = vpack.c.bf16 %v3863_v46, %v3862_v45  ;;  %v4159_v45 = vld [vmem:[#allocation6 + $0x618] sm:$0xff] }
 0x3e6   : > { %v11402_v42 = vmax.f32 %v3197_v30, 0.0  ;;  %v8158_v43 = vpop.f32.mrb[26].mxu0  ;;  %v3864_v30 = vld [vmem:[#allocation6 + $0x5f0] sm:$0xff] }
 0x3e7   : > { %3262 = vst [vmem:[#allocation2 + $0x1b0] sm:$0xff] %v11399_v50  ;;  %v3200_v11 = vadd.f32 %v8158_v43, %v11320_v5  ;;  %v3105_v14 = vpop.f32.mrb[27].mxu0  ;;  %v3865_v43 = vld [vmem:[#allocation6 + $0x5f8] sm:$0xff] }
 0x3e8   : > { %3261 = vst [vmem:[#allocation2 + $0x1a8] sm:$0xff] %v11402_v42  ;;  %v3199_v56 = vadd.f32 %v11320_v5, %v3105_v14  ;;  %8236 = vmatprep.mubr.f32.mxu1 %v11402_v42  ;;  %v9353_v14 = vpack.c.bf16 %v3865_v43, %v3864_v30  ;;  %v3818_v46 = vld [vmem:[#allocation2 + $0x11] sm:$0xff]  ;;  %v4160_v30 = vld [vmem:[#allocation6 + $0x620] sm:$0xff]  ;;  %v4161_v43 = vld [vmem:[#allocation6 + $0x628] sm:$0xff] }
 0x3e9   : > { %v11409_v15 = vmax.f32 %v3200_v11, 0.0  ;;  %8237 = vmatmul.mubr.f32.gmra.mrb[26].mxu1 %v11399_v50  ;;  %v11471_v11 = vld [vmem:[#allocation2 + $0xc7] sm:$0xff] }
 0x3ea   : > { %v11412_v16 = vmax.f32 %v3199_v56, 0.0  ;;  %v8161_v47 = vpop.f32.mrb[28].mxu0  ;;  %v11474_v56 = vld [vmem:[#allocation2 + $0xcf] sm:$0xff] }
 0x3eb   : > { %3264 = vst [vmem:[#allocation2 + $0x1d0] sm:$0xff] %v11409_v15  ;;  %v3202_v17 = vadd.f32 %v8161_v47, %v11320_v5  ;;  %v3115_v18 = vpop.f32.mrb[29].mxu0  ;;  %v4156_v47 = vld [vmem:[#allocation6 + $0x600] sm:$0xff]  ;;  %v11510_v8 = vld [vmem:[#allocation2 + $0x18f] sm:$0xff] }
 0x3ec   : > { %3263 = vst [vmem:[#allocation2 + $0x1c8] sm:$0xff] %v11412_v16  ;;  %v3201_v24 = vadd.f32 %v11320_v5, %v3115_v18  ;;  %8239 = vmatprep.mubr.f32.mxu1 %v11412_v16  ;;  %v11477_v18 = vld [vmem:[#allocation2 + $0xe7] sm:$0xff] }
 0x3ed   : > { %v11419_v20 = vmax.f32 %v3202_v17, 0.0  ;;  %8240 = vmatmul.mubr.f32.gmra.mrb[28].mxu1 %v11409_v15  ;;  %v4157_v17 = vld [vmem:[#allocation6 + $0x608] sm:$0xff] }
 0x3ee   : > { %v11422_v38 = vmax.f32 %v3201_v24, 0.0  ;;  %v8164_v22 = vpop.f32.mrb[30].mxu0  ;;  %v9357_v24 = vpack.c.bf16 %v4157_v17, %v4156_v47  ;;  %v9365_v47 = vpack.c.bf16 %v4161_v43, %v4160_v30  ;;  %v11534_v17 = vld [vmem:[#allocation2 + $0x31] sm:$0xff] }
 0x3ef   : > { %3266 = vst [vmem:[#allocation2 + $0x1f0] sm:$0xff] %v11419_v20  ;;  %v11426_v26 = vadd.f32 %v8164_v22, %v11320_v5  ;;  %v3125_v27 = vpop.f32.mrb[31].mxu0  ;;  %v11480_v22 = vld [vmem:[#allocation2 + $0xef] sm:$0xff]  ;;  %v11513_v48 = vld [vmem:[#allocation2 + $0x1a7] sm:$0xff]  ;;  %12123 = vst [vmem:[#allocation23_spill] sm:$0xff] %v11534_v17 }
 0x3f0   : > { %3265 = vst [vmem:[#allocation2 + $0x1e8] sm:$0xff] %v11422_v38  ;;  %v11430_v29 = vadd.f32 %v11320_v5, %v3125_v27  ;;  %8242 = vmatprep.mubr.f32.mxu1 %v11422_v38  ;;  %v3854_v5 = vld [vmem:[#allocation6 + $0x5a0] sm:$0xff]  ;;  %v11546_v43 = vld [vmem:[#allocation2 + $0x71] sm:$0xff] }
 0x3f1   : > { %12120 = vst [vmem:[#allocation20_spill] sm:$0xff] %v11426_v26  ;;  %v11989_v33 = vmax.f32 %v11426_v26, 0.0  ;;  %8243 = vmatmul.mubr.f32.gmra.mrb[30].mxu1 %v11419_v20  ;;  %v9333_v3 = vpack.c.bf16 %v3855_v62, %v3854_v5  ;;  %v11483_v27 = vld [vmem:[#allocation2 + $0x107] sm:$0xff]  ;;  %v11504_v62 = vld [vmem:[#allocation2 + $0x16f] sm:$0xff]  ;;  %12127 = vst [vmem:[#allocation27_spill] sm:$0xff] %v11546_v43 }
 0x3f2   : > { %v11990_v21 = vmax.f32 %v11430_v29, 0.0  ;;  %8277 = vmatprep.mubr.f32.mxu1 %v3269_v28  ;;  %v11486_v28 = vld [vmem:[#allocation2 + $0x10f] sm:$0xff]  ;;  %v11501_v5 = vld [vmem:[#allocation2 + $0x167] sm:$0xff] }
 0x3f3   : > { %3268 = vst [vmem:[#allocation2 + $0x210] sm:$0xff] %v11989_v33  ;;  %v11519_v53 = vld [vmem:[#allocation2 + $0x1c7] sm:$0xff]  ;;  %v11522_v54 = vld [vmem:[#allocation2 + $0x1cf] sm:$0xff] }
 0x3f4   : > { %3267 = vst [vmem:[#allocation2 + $0x208] sm:$0xff] %v11990_v21  ;;  %v4162_v33 = vld [vmem:[#allocation6 + $0x630] sm:$0xff]  ;;  %v4163_v21 = vld [vmem:[#allocation6 + $0x638] sm:$0xff] }
 0x3f5   : > { %8278 = vmatmul.mubr.f32.vlgmr.msra.gmra.mrb[0].mxu1 %v3270_v57  ;;  %v11495_v57 = vld [vmem:[#allocation2 + $0x147] sm:$0xff] }
 0x3f6   : > { %8280 = vmatprep.mubr.f32.mxu1 %v11440_v37  ;;  %9328 = vmatpush3.bf16.msra.mxu1 %v11317_v2  ;;  %v11453_v2 = vld [vmem:[#allocation2 + $0x67] sm:$0xff] }
 0x3f7   : > { %9330 = vmatprep.subr.bf16.mxu1 %v9329_v25  ;;  %v11528_v0 = vld [vmem:[#allocation2 + $0x1ef] sm:$0xff] }
 0x3f8   : > { %12122 = vst [vmem:[#allocation22_spill] sm:$0xff] %v11528_v0  ;;  %v11537_v26 = vld [vmem:[#allocation2 + $0x49] sm:$0xff] }
 0x3f9   : > { %8281 = vmatmul.mubr.f32.gmra.mrb[2].mxu1 %v11444_v4  ;;  %12124 = vst [vmem:[#allocation24_spill] sm:$0xff] %v11537_v26 }
 0x3fa   : > { %8283 = vmatprep.mubr.f32.mxu1 %v11447_v19  ;;  %9332 = vmatpush3.bf16.msra.mxu1 %v9329_v25  ;;  %v11498_v25 = vld [vmem:[#allocation2 + $0x14f] sm:$0xff] }
 0x3fb   : > { %9334 = vmatprep.subr.bf16.mxu1 %v9333_v3 }
 0x3fd   : > { %8284 = vmatmul.mubr.f32.gmra.mrb[4].mxu1 %v11450_v41 }
 0x3fe   : > { %8286 = vmatprep.mubr.f32.mxu1 %v11453_v2  ;;  %9336 = vmatpush3.bf16.msra.mxu1 %v9333_v3  ;;  %v11507_v3 = vld [vmem:[#allocation2 + $0x187] sm:$0xff] }
 0x3ff   : > { %9338 = vmatprep.subr.bf16.mxu1 %v9337_v23 }
 0x401   : > { %8287 = vmatmul.mubr.f32.gmra.mrb[6].mxu1 %v11456_v63 }
 0x402   : > { %8289 = vmatprep.mubr.f32.mxu1 %v11459_v6  ;;  %9340 = vmatpush3.bf16.msra.mxu1 %v9337_v23  ;;  %v11516_v23 = vld [vmem:[#allocation2 + $0x1af] sm:$0xff] }
 0x403   : > { %9342 = vmatprep.subr.bf16.mxu1 %v9341_v58 }
 0x405   : > { %8290 = vmatmul.mubr.f32.gmra.mrb[8].mxu1 %v11462_v34 }
 0x406   : > { %8292 = vmatprep.mubr.f32.mxu1 %v11465_v44  ;;  %9344 = vmatpush3.bf16.msra.mxu1 %v9341_v58  ;;  %v11525_v58 = vld [vmem:[#allocation2 + $0x1e7] sm:$0xff] }
 0x407   : > { %9346 = vmatprep.subr.bf16.mxu1 %v9345_v13  ;;  %12121 = vst [vmem:[#allocation21_spill] sm:$0xff] %v11525_v58 }
 0x409   : > { %8293 = vmatmul.mubr.f32.gmra.mrb[10].mxu1 %v11468_v40 }
 0x40a   : > { %8295 = vmatprep.mubr.f32.mxu1 %v11471_v11  ;;  %9348 = vmatpush3.bf16.msra.mxu1 %v9345_v13  ;;  %v4158_v13 = vld [vmem:[#allocation6 + $0x610] sm:$0xff] }
 0x40b   : > { %9350 = vmatprep.subr.bf16.mxu1 %v9349_v10 }
 0x40d   : > { %8296 = vmatmul.mubr.f32.gmra.mrb[12].mxu1 %v11474_v56 }
 0x40e   : > { %8298 = vmatprep.mubr.f32.mxu1 %v11477_v18  ;;  %9352 = vmatpush3.bf16.msra.mxu1 %v9349_v10  ;;  %v9361_v10 = vpack.c.bf16 %v4159_v45, %v4158_v13  ;;  %v11540_v13 = vld [vmem:[#allocation2 + $0x51] sm:$0xff]  ;;  %v4164_v45 = vld [vmem:[#allocation6 + $0x640] sm:$0xff] }
 0x40f   : > { %9354 = vmatprep.subr.bf16.mxu1 %v9353_v14  ;;  %12125 = vst [vmem:[#allocation25_spill] sm:$0xff] %v11540_v13 }
 0x411   : > { %8299 = vmatmul.mubr.f32.gmra.mrb[14].mxu1 %v11480_v22 }
 0x412   : > { %8301 = vmatprep.mubr.f32.mxu1 %v11483_v27  ;;  %9356 = vmatpush3.bf16.msra.mxu1 %v9353_v14  ;;  %v11531_v14 = vld [vmem:[#allocation2 + $0x29] sm:$0xff] }
 0x413   : > { %9358 = vmatprep.subr.bf16.mxu1 %v9357_v24 }
 0x415   : > { %8302 = vmatmul.mubr.f32.gmra.mrb[16].mxu1 %v11486_v28 }
 0x416   : > { %8304 = vmatprep.mubr.f32.mxu1 %v11489_v31 }
 0x419   : > { %8305 = vmatmul.mubr.f32.gmra.mrb[18].mxu1 %v11492_v32 }
 0x41a   : > { %8307 = vmatprep.mubr.f32.mxu1 %v11495_v57 }
 0x41d   : > { %8308 = vmatmul.mubr.f32.gmra.mrb[20].mxu1 %v11498_v25 }
 0x41e   : > { %8310 = vmatprep.mubr.f32.mxu1 %v11501_v5 }
 0x421   : > { %8311 = vmatmul.mubr.f32.gmra.mrb[22].mxu1 %v11504_v62 }
 0x422   : > { %8313 = vmatprep.mubr.f32.mxu1 %v11507_v3 }
 0x425   : > { %8314 = vmatmul.mubr.f32.gmra.mrb[24].mxu1 %v11510_v8 }
 0x426   : > { %8316 = vmatprep.mubr.f32.mxu1 %v11513_v48 }
 0x429   : > { %8317 = vmatmul.mubr.f32.gmra.mrb[26].mxu1 %v11516_v23 }
 0x42a   : > { %8319 = vmatprep.mubr.f32.mxu1 %v11519_v53 }
 0x42d   : > { %8320 = vmatmul.mubr.f32.gmra.mrb[28].mxu1 %v11522_v54 }
 0x42e   : > { %8322 = vmatprep.mubr.f32.mxu1 %v11525_v58 }
 0x431   : > { %8323 = vmatmul.mubr.f32.gmra.mrb[30].mxu1 %v11528_v0 }
 0x432   : > { %8357 = vmatprep.mubr.f32.mxu1 %v3817_v1  ;;  %v9369_v1 = vpack.c.bf16 %v4163_v21, %v4162_v33  ;;  %v11549_v33 = vld [vmem:[#allocation2 + $0x89] sm:$0xff] }
 0x433   : > { %12128 = vst [vmem:[#allocation28_spill] sm:$0xff] %v11549_v33 }
 0x435   : > { %8358 = vmatmul.mubr.f32.vlgmr.msra.gmra.mrb[0].mxu1 %v3818_v46  ;;  %v4165_v46 = vld [vmem:[#allocation6 + $0x648] sm:$0xff] }
 0x436   : > { %8360 = vmatprep.mubr.f32.mxu1 %v11531_v14  ;;  %9360 = vmatpush3.bf16.msra.mxu1 %v9357_v24  ;;  %v11543_v24 = vld [vmem:[#allocation2 + $0x69] sm:$0xff]  ;;  %v9373_v30 = vpack.c.bf16 %v4165_v46, %v4164_v45  ;;  %v11558_v46 = vld [vmem:[#allocation2 + $0xb1] sm:$0xff] }
 0x437   : > { %9362 = vmatprep.subr.bf16.mxu1 %v9361_v10  ;;  %12126 = vst [vmem:[#allocation26_spill] sm:$0xff] %v11543_v24 }
 0x439   : > { %8361 = vmatmul.mubr.f32.gmra.mrb[2].mxu1 %v11534_v17  ;;  %v4166_v17 = vld [vmem:[#allocation6 + $0x650] sm:$0xff] }
 0x43a   : > { %8363 = vmatprep.mubr.f32.mxu1 %v11537_v26  ;;  %9364 = vmatpush3.bf16.msra.mxu1 %v9361_v10  ;;  %v4167_v26 = vld [vmem:[#allocation6 + $0x658] sm:$0xff] }
 0x43b   : > { %9366 = vmatprep.subr.bf16.mxu1 %v9365_v47  ;;  %v9377_v21 = vpack.c.bf16 %v4167_v26, %v4166_v17  ;;  %v11552_v10 = vld [vmem:[#allocation2 + $0x91] sm:$0xff]  ;;  %v11561_v26 = vld [vmem:[#allocation2 + $0xc9] sm:$0xff] }
 0x43c   : > { %12129 = vst [vmem:[#allocation29_spill] sm:$0xff] %v11552_v10 }
 0x43d   : > { %8364 = vmatmul.mubr.f32.gmra.mrb[4].mxu1 %v11540_v13  ;;  %v4168_v13 = vld [vmem:[#allocation6 + $0x660] sm:$0xff] }
 0x43e   : > { %8366 = vmatprep.mubr.f32.mxu1 %v11543_v24  ;;  %9368 = vmatpush3.bf16.msra.mxu1 %v9365_v47  ;;  %v4169_v24 = vld [vmem:[#allocation6 + $0x668] sm:$0xff] }
 0x43f   : > { %9370 = vmatprep.subr.bf16.mxu1 %v9369_v1  ;;  %v11555_v47 = vld [vmem:[#allocation2 + $0xa9] sm:$0xff]  ;;  %v9381_v45 = vpack.c.bf16 %v4169_v24, %v4168_v13 }
 0x440   : > { %12130 = vst [vmem:[#allocation30_spill] sm:$0xff] %v11555_v47  ;;  %v11567_v13 = vld [vmem:[#allocation2 + $0xe9] sm:$0xff] }
 0x441   : > { %8367 = vmatmul.mubr.f32.gmra.mrb[6].mxu1 %v11546_v43  ;;  %v4170_v43 = vld [vmem:[#allocation6 + $0x670] sm:$0xff]  ;;  %12131 = vst [vmem:[#allocation31_spill] sm:$0xff] %v11567_v13 }
 0x442   : > { %8369 = vmatprep.mubr.f32.mxu1 %v11549_v33  ;;  %9372 = vmatpush3.bf16.msra.mxu1 %v9369_v1  ;;  %v4171_v33 = vld [vmem:[#allocation6 + $0x678] sm:$0xff] }
 0x443   : > { %9374 = vmatprep.subr.bf16.mxu1 %v9373_v30  ;;  %v9385_v17 = vpack.c.bf16 %v4171_v33, %v4170_v43  ;;  %v11564_v1 = vld [vmem:[#allocation2 + $0xd1] sm:$0xff]  ;;  %v11579_v33 = vld [vmem:[#allocation2 + $0x129] sm:$0xff] }
 0x444   : > { %v11576_v43 = vld [vmem:[#allocation2 + $0x111] sm:$0xff]  ;;  %12135 = vst [vmem:[#allocation35_spill] sm:$0xff] %v11579_v33 }
 0x445   : > { %8370 = vmatmul.mubr.f32.gmra.mrb[8].mxu1 %v11552_v10  ;;  %v4462_v10 = vld [vmem:[#allocation6 + $0x680] sm:$0xff]  ;;  %12134 = vst [vmem:[#allocation34_spill] sm:$0xff] %v11576_v43 }
 0x446   : > { %8372 = vmatprep.mubr.f32.mxu1 %v11555_v47  ;;  %9376 = vmatpush3.bf16.msra.mxu1 %v9373_v30  ;;  %v4463_v47 = vld [vmem:[#allocation6 + $0x688] sm:$0xff]  ;;  %v11570_v30 = vld [vmem:[#allocation2 + $0xf1] sm:$0xff] }
 0x447   : > { %9378 = vmatprep.subr.bf16.mxu1 %v9377_v21  ;;  %v9389_v24 = vpack.c.bf16 %v4463_v47, %v4462_v10  ;;  %12132 = vst [vmem:[#allocation32_spill] sm:$0xff] %v11570_v30  ;;  %v11585_v10 = vld [vmem:[#allocation2 + $0x149] sm:$0xff]  ;;  %v11588_v47 = vld [vmem:[#allocation2 + $0x151] sm:$0xff] }
 0x448   : > { %12137 = vst [vmem:[#allocation37_spill] sm:$0xff] %v11585_v10  ;;  %12138 = vst [vmem:[#allocation38_spill] sm:$0xff] %v11588_v47 }
 0x449   : > { %8373 = vmatmul.mubr.f32.gmra.mrb[10].mxu1 %v11558_v46 }
 0x44a   : > { %8375 = vmatprep.mubr.f32.mxu1 %v11561_v26  ;;  %9380 = vmatpush3.bf16.msra.mxu1 %v9377_v21  ;;  %v11573_v21 = vld [vmem:[#allocation2 + $0x109] sm:$0xff] }
 0x44b   : > { %9382 = vmatprep.subr.bf16.mxu1 %v9381_v45  ;;  %12133 = vst [vmem:[#allocation33_spill] sm:$0xff] %v11573_v21 }
 0x44d   : > { %8376 = vmatmul.mubr.f32.gmra.mrb[12].mxu1 %v11564_v1 }
 0x44e   : > { %8378 = vmatprep.mubr.f32.mxu1 %v11567_v13  ;;  %9384 = vmatpush3.bf16.msra.mxu1 %v9381_v45  ;;  %v11582_v45 = vld [vmem:[#allocation2 + $0x131] sm:$0xff]  ;;  %v4467_v13 = vld [vmem:[#allocation6 + $0x6a8] sm:$0xff] }
 0x44f   : > { %9386 = vmatprep.subr.bf16.mxu1 %v9385_v17  ;;  %12136 = vst [vmem:[#allocation36_spill] sm:$0xff] %v11582_v45 }
 0x451   : > { %8379 = vmatmul.mubr.f32.gmra.mrb[14].mxu1 %v11570_v30  ;;  %v4466_v30 = vld [vmem:[#allocation6 + $0x6a0] sm:$0xff] }
 0x452   : > { %8381 = vmatprep.mubr.f32.mxu1 %v11573_v21  ;;  %9388 = vmatpush3.bf16.msra.mxu1 %v9385_v17  ;;  %v11591_v17 = vld [vmem:[#allocation2 + $0x169] sm:$0xff] }
 0x453   : > { %9390 = vmatprep.subr.bf16.mxu1 %v9389_v24  ;;  %12139 = vst [vmem:[#allocation39_spill] sm:$0xff] %v11591_v17  ;;  %v4464_v21 = vld [vmem:[#allocation6 + $0x690] sm:$0xff] }
 0x455   : > { %8382 = vmatmul.mubr.f32.gmra.mrb[16].mxu1 %v11576_v43  ;;  %v11594_v43 = vld [vmem:[#allocation2 + $0x171] sm:$0xff] }
 0x456   : > { %8384 = vmatprep.mubr.f32.mxu1 %v11579_v33  ;;  %12140 = vst [vmem:[#allocation40_spill] sm:$0xff] %v11594_v43  ;;  %v11597_v33 = vld [vmem:[#allocation2 + $0x189] sm:$0xff] }
 0x457   : > { %12141 = vst [vmem:[#allocation41_spill] sm:$0xff] %v11597_v33 }
 0x459   : > { %8385 = vmatmul.mubr.f32.gmra.mrb[18].mxu1 %v11582_v45  ;;  %v11600_v45 = vld [vmem:[#allocation2 + $0x191] sm:$0xff] }
 0x45a   : > { %8387 = vmatprep.mubr.f32.mxu1 %v11585_v10  ;;  %12142 = vst [vmem:[#allocation42_spill] sm:$0xff] %v11600_v45  ;;  %v11603_v10 = vld [vmem:[#allocation2 + $0x1a9] sm:$0xff] }
 0x45b   : > { %12143 = vst [vmem:[#allocation43_spill] sm:$0xff] %v11603_v10 }
 0x45d   : > { %8388 = vmatmul.mubr.f32.gmra.mrb[20].mxu1 %v11588_v47  ;;  %v11606_v47 = vld [vmem:[#allocation2 + $0x1b1] sm:$0xff] }
 0x45e   : > { %8390 = vmatprep.mubr.f32.mxu1 %v11591_v17  ;;  %12144 = vst [vmem:[#allocation44_spill] sm:$0xff] %v11606_v47  ;;  %v11609_v17 = vld [vmem:[#allocation2 + $0x1c9] sm:$0xff] }
 0x45f   : > { %12145 = vst [vmem:[#allocation45_spill] sm:$0xff] %v11609_v17 }
 0x461   : > { %8391 = vmatmul.mubr.f32.gmra.mrb[22].mxu1 %v11594_v43  ;;  %v11612_v43 = vld [vmem:[#allocation2 + $0x1d1] sm:$0xff] }
 0x462   : > { %8393 = vmatprep.mubr.f32.mxu1 %v11597_v33  ;;  %12146 = vst [vmem:[#allocation46_spill] sm:$0xff] %v11612_v43  ;;  %v11615_v33 = vld [vmem:[#allocation2 + $0x1e9] sm:$0xff] }
 0x463   : > { %12147 = vst [vmem:[#allocation47_spill] sm:$0xff] %v11615_v33 }
 0x465   : > { %8394 = vmatmul.mubr.f32.gmra.mrb[24].mxu1 %v11600_v45  ;;  %v11618_v45 = vld [vmem:[#allocation2 + $0x1f1] sm:$0xff] }
 0x466   : > { %8396 = vmatprep.mubr.f32.mxu1 %v11603_v10  ;;  %12148 = vst [vmem:[#allocation48_spill] sm:$0xff] %v11618_v45  ;;  %v4465_v10 = vld [vmem:[#allocation6 + $0x698] sm:$0xff] }
 0x469   : > { %8397 = vmatmul.mubr.f32.gmra.mrb[26].mxu1 %v11606_v47  ;;  %v9393_v47 = vpack.c.bf16 %v4465_v10, %v4464_v21  ;;  %v4471_v21 = vld [vmem:[#allocation6 + $0x6c8] sm:$0xff]  ;;  %v4474_v10 = vld [vmem:[#allocation6 + $0x6e0] sm:$0xff] }
 0x46a   : > { %8399 = vmatprep.mubr.f32.mxu1 %v11609_v17  ;;  %v4468_v17 = vld [vmem:[#allocation6 + $0x6b0] sm:$0xff] }
 0x46d   : > { %8400 = vmatmul.mubr.f32.gmra.mrb[28].mxu1 %v11612_v43  ;;  %v9397_v43 = vpack.c.bf16 %v4467_v13, %v4466_v30  ;;  %v4473_v13 = vld [vmem:[#allocation6 + $0x6d8] sm:$0xff] }
 0x46e   : > { %8402 = vmatprep.mubr.f32.mxu1 %v11615_v33  ;;  %v4469_v33 = vld [vmem:[#allocation6 + $0x6b8] sm:$0xff] }
 0x471   : > { %8403 = vmatmul.mubr.f32.gmra.mrb[30].mxu1 %v11618_v45  ;;  %v9401_v45 = vpack.c.bf16 %v4469_v33, %v4468_v17  ;;  %v4475_v33 = vld [vmem:[#allocation6 + $0x6e8] sm:$0xff]  ;;  %v4477_v17 = vld [vmem:[#allocation6 + $0x6f8] sm:$0xff] }
 0x472   : > { %8437 = vmatprep.mubr.f32.mxu1 %v11440_v37  ;;  %v4470_v37 = vld [vmem:[#allocation6 + $0x6c0] sm:$0xff] }
 0x475   : > { %8438 = vmatmul.mubr.f32.vlgmr.msra.gmra.mrb[0].mxu1 %v11444_v4  ;;  %v9405_v4 = vpack.c.bf16 %v4471_v21, %v4470_v37  ;;  %v4768_v37 = vld [vmem:[#allocation6 + $0x700] sm:$0xff]  ;;  %v4769_v21 = vld [vmem:[#allocation6 + $0x708] sm:$0xff] }
 0x476   : > { %8440 = vmatprep.mubr.f32.mxu1 %v11447_v19  ;;  %9392 = vmatpush3.bf16.msra.mxu1 %v9389_v24  ;;  %v4472_v24 = vld [vmem:[#allocation6 + $0x6d0] sm:$0xff] }
 0x477   : > { %9394 = vmatprep.subr.bf16.mxu1 %v9393_v47  ;;  %v9409_v30 = vpack.c.bf16 %v4473_v13, %v4472_v24  ;;  %v11651_v24 = vld [vmem:[#allocation2 + $0x207] sm:$0xff]  ;;  %v11654_v13 = vld [vmem:[#allocation2 + $0x20f] sm:$0xff] }
 0x478   : > { %12149 = vst [vmem:[#allocation49_spill] sm:$0xff] %v11651_v24  ;;  %12150 = vst [vmem:[#allocation50_spill] sm:$0xff] %v11654_v13 }
 0x479   : > { %8441 = vmatmul.mubr.f32.gmra.mrb[2].mxu1 %v11450_v41 }
 0x47a   : > { %8443 = vmatprep.mubr.f32.mxu1 %v11453_v2  ;;  %9396 = vmatpush3.bf16.msra.mxu1 %v9393_v47  ;;  %v4476_v47 = vld [vmem:[#allocation6 + $0x6f0] sm:$0xff] }
 0x47b   : > { %9398 = vmatprep.subr.bf16.mxu1 %v9397_v43 }
 0x47d   : > { %8444 = vmatmul.mubr.f32.gmra.mrb[4].mxu1 %v11456_v63 }
 0x47e   : > { %8446 = vmatprep.mubr.f32.mxu1 %v11459_v6  ;;  %9400 = vmatpush3.bf16.msra.mxu1 %v9397_v43  ;;  %v9413_v43 = vpack.c.bf16 %v4475_v33, %v4474_v10  ;;  %v4771_v10 = vld [vmem:[#allocation6 + $0x718] sm:$0xff]  ;;  %v4429_v33 = vld [vmem:[#allocation2 + $0x28] sm:$0xff] }
 0x47f   : > { %9402 = vmatprep.subr.bf16.mxu1 %v9401_v45 }
 0x481   : > { %8447 = vmatmul.mubr.f32.gmra.mrb[6].mxu1 %v11462_v34 }
 0x482   : > { %8449 = vmatprep.mubr.f32.mxu1 %v11465_v44  ;;  %9404 = vmatpush3.bf16.msra.mxu1 %v9401_v45  ;;  %v9417_v45 = vpack.c.bf16 %v4477_v17, %v4476_v47  ;;  %v4430_v47 = vld [vmem:[#allocation2 + $0x30] sm:$0xff]  ;;  %v4772_v17 = vld [vmem:[#allocation6 + $0x720] sm:$0xff] }
 0x483   : > { %9406 = vmatprep.subr.bf16.mxu1 %v9405_v4 }
 0x485   : > { %8450 = vmatmul.mubr.f32.gmra.mrb[8].mxu1 %v11468_v40 }
 0x486   : > { %8452 = vmatprep.mubr.f32.mxu1 %v11471_v11  ;;  %9408 = vmatpush3.bf16.msra.mxu1 %v9405_v4  ;;  %v9421_v4 = vpack.c.bf16 %v4769_v21, %v4768_v37  ;;  %v11657_v37 = vld [vmem:[#allocation2 + $0x48] sm:$0xff] }
 0x487   : > { %9410 = vmatprep.subr.bf16.mxu1 %v9409_v30 }
 0x489   : > { %8453 = vmatmul.mubr.f32.gmra.mrb[10].mxu1 %v11474_v56 }
 0x48a   : > { %8455 = vmatprep.mubr.f32.mxu1 %v11477_v18  ;;  %9412 = vmatpush3.bf16.msra.mxu1 %v9409_v30  ;;  %v4770_v30 = vld [vmem:[#allocation6 + $0x710] sm:$0xff] }
 0x48b   : > { %9414 = vmatprep.subr.bf16.mxu1 %v9413_v43 }
 0x48d   : > { %8456 = vmatmul.mubr.f32.gmra.mrb[12].mxu1 %v11480_v22 }
 0x48e   : > { %8458 = vmatprep.mubr.f32.mxu1 %v11483_v27  ;;  %9416 = vmatpush3.bf16.msra.mxu1 %v9413_v43  ;;  %v9425_v43 = vpack.c.bf16 %v4771_v10, %v4770_v30  ;;  %v11666_v10 = vld [vmem:[#allocation2 + $0x70] sm:$0xff] }
 0x48f   : > { %9418 = vmatprep.subr.bf16.mxu1 %v9417_v45  ;;  %12153 = vst [vmem:[#allocation53_spill] sm:$0xff] %v11666_v10 }
 0x491   : > { %8459 = vmatmul.mubr.f32.gmra.mrb[14].mxu1 %v11486_v28 }
 0x492   : > { %8461 = vmatprep.mubr.f32.mxu1 %v11489_v31  ;;  %9420 = vmatpush3.bf16.msra.mxu1 %v9417_v45  ;;  %v4773_v45 = vld [vmem:[#allocation6 + $0x728] sm:$0xff] }
 0x493   : > { %9422 = vmatprep.subr.bf16.mxu1 %v9421_v4  ;;  %v9429_v21 = vpack.c.bf16 %v4773_v45, %v4772_v17  ;;  %v11672_v45 = vld [vmem:[#allocation2 + $0x90] sm:$0xff] }
 0x494   : > { %12155 = vst [vmem:[#allocation55_spill] sm:$0xff] %v11672_v45 }
 0x495   : > { %8462 = vmatmul.mubr.f32.gmra.mrb[16].mxu1 %v11492_v32 }
 0x496   : > { %8464 = vmatprep.mubr.f32.mxu1 %v11495_v57 }
 0x499   : > { %8465 = vmatmul.mubr.f32.gmra.mrb[18].mxu1 %v11498_v25 }
 0x49a   : > { %8467 = vmatprep.mubr.f32.mxu1 %v11501_v5 }
 0x49d   : > { %8468 = vmatmul.mubr.f32.gmra.mrb[20].mxu1 %v11504_v62 }
 0x49e   : > { %8470 = vmatprep.mubr.f32.mxu1 %v11507_v3 }
 0x4a1   : > { %8471 = vmatmul.mubr.f32.gmra.mrb[22].mxu1 %v11510_v8 }
 0x4a2   : > { %8473 = vmatprep.mubr.f32.mxu1 %v11513_v48 }
 0x4a5   : > { %8474 = vmatmul.mubr.f32.gmra.mrb[24].mxu1 %v11516_v23 }
 0x4a6   : > { %8476 = vmatprep.mubr.f32.mxu1 %v11519_v53 }
 0x4a9   : > { %8477 = vmatmul.mubr.f32.gmra.mrb[26].mxu1 %v11522_v54 }
 0x4aa   : > { %8479 = vmatprep.mubr.f32.mxu1 %v11525_v58  ;;  %v4775_v58 = vld [vmem:[#allocation6 + $0x738] sm:$0xff] }
 0x4ad   : > { %8480 = vmatmul.mubr.f32.gmra.mrb[28].mxu1 %v11528_v0  ;;  %v4774_v0 = vld [vmem:[#allocation6 + $0x730] sm:$0xff] }
 0x4ae   : > { %8482 = vmatprep.mubr.f32.mxu1 %v11651_v24  ;;  %v11660_v24 = vld [vmem:[#allocation2 + $0x50] sm:$0xff]  ;;  %v9433_v30 = vpack.c.bf16 %v4775_v58, %v4774_v0  ;;  %v11675_v58 = vld [vmem:[#allocation2 + $0xa8] sm:$0xff] }
 0x4af   : > { %12151 = vst [vmem:[#allocation51_spill] sm:$0xff] %v11660_v24 }
 0x4b1   : > { %8483 = vmatmul.mubr.f32.gmra.mrb[30].mxu1 %v11654_v13  ;;  %v11663_v13 = vld [vmem:[#allocation2 + $0x68] sm:$0xff] }
 0x4b2   : > { %8517 = vmatprep.mubr.f32.mxu1 %v4429_v33  ;;  %12152 = vst [vmem:[#allocation52_spill] sm:$0xff] %v11663_v13  ;;  %v4776_v33 = vld [vmem:[#allocation6 + $0x740] sm:$0xff] }
 0x4b5   : > { %8518 = vmatmul.mubr.f32.vlgmr.msra.gmra.mrb[0].mxu1 %v4430_v47  ;;  %v4777_v47 = vld [vmem:[#allocation6 + $0x748] sm:$0xff] }
 0x4b6   : > { %8520 = vmatprep.mubr.f32.mxu1 %v11657_v37  ;;  %9424 = vmatpush3.bf16.msra.mxu1 %v9421_v4  ;;  %v11669_v4 = vld [vmem:[#allocation2 + $0x88] sm:$0xff]  ;;  %v9437_v17 = vpack.c.bf16 %v4777_v47, %v4776_v33  ;;  %v11682_v33 = vld [vmem:[#allocation2 + $0xd0] sm:$0xff] }
 0x4b7   : > { %9426 = vmatprep.subr.bf16.mxu1 %v9425_v43  ;;  %12154 = vst [vmem:[#allocation54_spill] sm:$0xff] %v11669_v4  ;;  %v4782_v47 = vld [vmem:[#allocation6 + $0x770] sm:$0xff] }
 0x4b9   : > { %8521 = vmatmul.mubr.f32.gmra.mrb[2].mxu1 %v11660_v24  ;;  %v4778_v24 = vld [vmem:[#allocation6 + $0x750] sm:$0xff] }
 0x4ba   : > { %8523 = vmatprep.mubr.f32.mxu1 %v11663_v13  ;;  %9428 = vmatpush3.bf16.msra.mxu1 %v9425_v43  ;;  %v4779_v13 = vld [vmem:[#allocation6 + $0x758] sm:$0xff]  ;;  %v11678_v43 = vld [vmem:[#allocation2 + $0xb0] sm:$0xff] }
 0x4bb   : > { %9430 = vmatprep.subr.bf16.mxu1 %v9429_v21  ;;  %v9441_v0 = vpack.c.bf16 %v4779_v13, %v4778_v24  ;;  %v5074_v13 = vld [vmem:[#allocation6 + $0x780] sm:$0xff] }
 0x4bd   : > { %8524 = vmatmul.mubr.f32.gmra.mrb[4].mxu1 %v11666_v10  ;;  %v4780_v10 = vld [vmem:[#allocation6 + $0x760] sm:$0xff] }
 0x4be   : > { %8526 = vmatprep.mubr.f32.mxu1 %v11669_v4  ;;  %9432 = vmatpush3.bf16.msra.mxu1 %v9429_v21  ;;  %v4781_v4 = vld [vmem:[#allocation6 + $0x768] sm:$0xff] }
 0x4bf   : > { %9434 = vmatprep.subr.bf16.mxu1 %v9433_v30  ;;  %v9445_v21 = vpack.c.bf16 %v4781_v4, %v4780_v10  ;;  %v5084_v4 = vld [vmem:[#allocation6 + $0x7d0] sm:$0xff] }
 0x4c1   : > { %8527 = vmatmul.mubr.f32.gmra.mrb[6].mxu1 %v11672_v45  ;;  %v4783_v45 = vld [vmem:[#allocation6 + $0x778] sm:$0xff] }
 0x4c2   : > { %8529 = vmatprep.mubr.f32.mxu1 %v11675_v58  ;;  %9436 = vmatpush3.bf16.msra.mxu1 %v9433_v30  ;;  %v9449_v24 = vpack.c.bf16 %v4783_v45, %v4782_v47  ;;  %v5075_v30 = vld [vmem:[#allocation6 + $0x788] sm:$0xff]  ;;  %v5086_v47 = vld [vmem:[#allocation6 + $0x7e0] sm:$0xff] }
 0x4c3   : > { %9438 = vmatprep.subr.bf16.mxu1 %v9437_v17  ;;  %v12165_v45 = vld [vmem:[#allocation29_spill] sm:$0xff] }
 0x4c5   : > { %8530 = vmatmul.mubr.f32.gmra.mrb[8].mxu1 %v11678_v43 }
 0x4c6   : > { %8532 = vmatprep.mubr.f32.mxu1 %v11334_v39  ;;  %9440 = vmatpush3.bf16.msra.mxu1 %v9437_v17  ;;  %v9453_v39 = vpack.c.bf16 %v5075_v30, %v5074_v13  ;;  %v5085_v17 = vld [vmem:[#allocation6 + $0x7d8] sm:$0xff]  ;;  %v5088_v30 = vld [vmem:[#allocation6 + $0x7f0] sm:$0xff] }
 0x4c7   : > { %9442 = vmatprep.subr.bf16.mxu1 %v9441_v0 }
 0x4c9   : > { %8533 = vmatmul.mubr.f32.gmra.mrb[10].mxu1 %v11682_v33 }
 0x4ca   : > { %8535 = vmatprep.mubr.f32.mxu1 %v11342_v61  ;;  %9444 = vmatpush3.bf16.msra.mxu1 %v9441_v0  ;;  %v5076_v61 = vld [vmem:[#allocation6 + $0x790] sm:$0xff] }
 0x4cb   : > { %9446 = vmatprep.subr.bf16.mxu1 %v9445_v21  ;;  %v12166_v0 = vld [vmem:[#allocation30_spill] sm:$0xff] }
 0x4cd   : > { %8536 = vmatmul.mubr.f32.gmra.mrb[12].mxu1 %v11340_v36  ;;  %v12156_v36 = vmax.f32 %v11430_v29, 0.0  ;;  %v12163_v29 = vld [vmem:[#allocation27_spill] sm:$0xff] }
 0x4ce   : > { %8538 = vmatprep.mubr.f32.mxu1 %v11352_v7  ;;  %9448 = vmatpush3.bf16.msra.mxu1 %v9445_v21  ;;  %v12157_v7 = vld [vmem:[#allocation20_spill] sm:$0xff]  ;;  %v9473_v21 = vpack.c.bf16 %v5085_v17, %v5084_v4  ;;  %v5382_v4 = vld [vmem:[#allocation6 + $0x810] sm:$0xff]  ;;  %v5383_v17 = vld [vmem:[#allocation6 + $0x818] sm:$0xff] }
 0x4cf   : > { %9450 = vmatprep.subr.bf16.mxu1 %v9449_v24 }
 0x4d1   : > { %8539 = vmatmul.mubr.f32.gmra.mrb[14].mxu1 %v11349_v49  ;;  %v5077_v49 = vld [vmem:[#allocation6 + $0x798] sm:$0xff] }
 0x4d2   : > { %8541 = vmatprep.mubr.f32.mxu1 %v11362_v35  ;;  %9452 = vmatpush3.bf16.msra.mxu1 %v9449_v24  ;;  %v9457_v35 = vpack.c.bf16 %v5077_v49, %v5076_v61  ;;  %v5087_v24 = vld [vmem:[#allocation6 + $0x7e8] sm:$0xff]  ;;  %v5380_v49 = vld [vmem:[#allocation6 + $0x800] sm:$0xff] }
 0x4d3   : > { %9454 = vmatprep.subr.bf16.mxu1 %v9453_v39  ;;  %v9477_v13 = vpack.c.bf16 %v5087_v24, %v5086_v47  ;;  %v5386_v24 = vld [vmem:[#allocation6 + $0x830] sm:$0xff] }
 0x4d5   : > { %8542 = vmatmul.mubr.f32.gmra.mrb[16].mxu1 %v11359_v52  ;;  %v12158_v52 = vmax.f32 %v12157_v7, 0.0  ;;  %v5381_v7 = vld [vmem:[#allocation6 + $0x808] sm:$0xff] }
 0x4d6   : > { %8544 = vmatprep.mubr.f32.mxu1 %v11372_v60  ;;  %v5079_v60 = vld [vmem:[#allocation6 + $0x7a8] sm:$0xff] }
 0x4d9   : > { %8545 = vmatmul.mubr.f32.gmra.mrb[18].mxu1 %v11369_v59  ;;  %v5078_v59 = vld [vmem:[#allocation6 + $0x7a0] sm:$0xff] }
 0x4da   : > { %8547 = vmatprep.mubr.f32.mxu1 %v11382_v12  ;;  %v12160_v12 = vld [vmem:[#allocation24_spill] sm:$0xff] }
 0x4dd   : > { %8548 = vmatmul.mubr.f32.gmra.mrb[20].mxu1 %v11379_v9  ;;  %v12159_v9 = vld [vmem:[#allocation23_spill] sm:$0xff] }
 0x4de   : > { %8550 = vmatprep.mubr.f32.mxu1 %v11392_v51  ;;  %v5080_v51 = vld [vmem:[#allocation6 + $0x7b0] sm:$0xff] }
 0x4e1   : > { %8551 = vmatmul.mubr.f32.gmra.mrb[22].mxu1 %v11389_v55  ;;  %v9461_v55 = vpack.c.bf16 %v5079_v60, %v5078_v59  ;;  %v12171_v59 = vld [vmem:[#allocation35_spill] sm:$0xff]  ;;  %v12173_v60 = vld [vmem:[#allocation37_spill] sm:$0xff] }
 0x4e2   : > { %8553 = vmatprep.mubr.f32.mxu1 %v11402_v42  ;;  %v12161_v42 = vld [vmem:[#allocation25_spill] sm:$0xff] }
 0x4e5   : > { %8554 = vmatmul.mubr.f32.gmra.mrb[24].mxu1 %v11399_v50  ;;  %v5081_v50 = vld [vmem:[#allocation6 + $0x7b8] sm:$0xff] }
 0x4e6   : > { %8556 = vmatprep.mubr.f32.mxu1 %v11412_v16  ;;  %v9465_v16 = vpack.c.bf16 %v5081_v50, %v5080_v51  ;;  %v12177_v51 = vld [vmem:[#allocation41_spill] sm:$0xff]  ;;  %v12178_v50 = vld [vmem:[#allocation42_spill] sm:$0xff] }
 0x4e9   : > { %8557 = vmatmul.mubr.f32.gmra.mrb[26].mxu1 %v11409_v15  ;;  %v12162_v15 = vld [vmem:[#allocation26_spill] sm:$0xff] }
 0x4ea   : > { %8559 = vmatprep.mubr.f32.mxu1 %v11422_v38  ;;  %v5083_v38 = vld [vmem:[#allocation6 + $0x7c8] sm:$0xff] }
 0x4ed   : > { %8560 = vmatmul.mubr.f32.gmra.mrb[28].mxu1 %v11419_v20  ;;  %v5082_v20 = vld [vmem:[#allocation6 + $0x7c0] sm:$0xff] }
 0x4ee   : > { %8562 = vmatprep.mubr.f32.mxu1 %v12156_v36  ;;  %v9469_v10 = vpack.c.bf16 %v5083_v38, %v5082_v20  ;;  %v12167_v36 = vld [vmem:[#allocation31_spill] sm:$0xff]  ;;  %v12182_v20 = vld [vmem:[#allocation46_spill] sm:$0xff] }
 0x4ef   : > { %v12183_v38 = vld [vmem:[#allocation47_spill] sm:$0xff] }
 0x4f1   : > { %8563 = vmatmul.mubr.f32.gmra.mrb[30].mxu1 %v12158_v52  ;;  %v12168_v52 = vld [vmem:[#allocation32_spill] sm:$0xff] }
 0x4f2   : > { %8597 = vmatprep.mubr.f32.mxu1 %v11531_v14  ;;  %v12164_v14 = vld [vmem:[#allocation28_spill] sm:$0xff] }
 0x4f5   : > { %8598 = vmatmul.mubr.f32.vlgmr.msra.gmra.mrb[0].mxu1 %v12159_v9  ;;  %v12174_v9 = vld [vmem:[#allocation38_spill] sm:$0xff] }
 0x4f6   : > { %8600 = vmatprep.mubr.f32.mxu1 %v12160_v12  ;;  %9456 = vmatpush3.bf16.msra.mxu1 %v9453_v39  ;;  %v5089_v39 = vld [vmem:[#allocation6 + $0x7f8] sm:$0xff] }
 0x4f7   : > { %9458 = vmatprep.subr.bf16.mxu1 %v9457_v35  ;;  %v9481_v61 = vpack.c.bf16 %v5089_v39, %v5088_v30  ;;  %v12175_v12 = vld [vmem:[#allocation39_spill] sm:$0xff]  ;;  %v5389_v39 = vld [vmem:[#allocation6 + $0x848] sm:$0xff] }
 0x4f9   : > { %8601 = vmatmul.mubr.f32.gmra.mrb[2].mxu1 %v12161_v42  ;;  %v12179_v42 = vld [vmem:[#allocation43_spill] sm:$0xff] }
 0x4fa   : > { %8603 = vmatprep.mubr.f32.mxu1 %v12162_v15  ;;  %9460 = vmatpush3.bf16.msra.mxu1 %v9457_v35  ;;  %v12169_v35 = vld [vmem:[#allocation33_spill] sm:$0xff]  ;;  %v12180_v15 = vld [vmem:[#allocation44_spill] sm:$0xff] }
 0x4fb   : > { %9462 = vmatprep.subr.bf16.mxu1 %v9461_v55 }
 0x4fd   : > { %8604 = vmatmul.mubr.f32.gmra.mrb[4].mxu1 %v12163_v29  ;;  %v12184_v29 = vld [vmem:[#allocation48_spill] sm:$0xff] }
 0x4fe   : > { %8606 = vmatprep.mubr.f32.mxu1 %v12164_v14  ;;  %9464 = vmatpush3.bf16.msra.mxu1 %v9461_v55  ;;  %v12176_v55 = vld [vmem:[#allocation40_spill] sm:$0xff] }
 0x4ff   : > { %9466 = vmatprep.subr.bf16.mxu1 %v9465_v16  ;;  %v11737_v14 = vld [vmem:[#allocation2 + $0x209] sm:$0xff] }
 0x501   : > { %8607 = vmatmul.mubr.f32.gmra.mrb[6].mxu1 %v12165_v45  ;;  %v9489_v45 = vpack.c.bf16 %v5383_v17, %v5382_v4  ;;  %v5361_v4 = vld [vmem:[#allocation2 + $0x128] sm:$0xff] }
 0x502   : > { %8609 = vmatprep.mubr.f32.mxu1 %v12166_v0  ;;  %9468 = vmatpush3.bf16.msra.mxu1 %v9465_v16  ;;  %v12181_v16 = vld [vmem:[#allocation45_spill] sm:$0xff]  ;;  %v5384_v0 = vld [vmem:[#allocation6 + $0x820] sm:$0xff] }
 0x503   : > { %9470 = vmatprep.subr.bf16.mxu1 %v9469_v10  ;;  %v5363_v17 = vld [vmem:[#allocation2 + $0x148] sm:$0xff] }
 0x505   : > { %8610 = vmatmul.mubr.f32.gmra.mrb[8].mxu1 %v11558_v46  ;;  %v9485_v46 = vpack.c.bf16 %v5381_v7, %v5380_v49  ;;  %v5395_v49 = vld [vmem:[#allocation6 + $0x878] sm:$0xff]  ;;  %v5687_v7 = vld [vmem:[#allocation6 + $0x888] sm:$0xff] }
 0x506   : > { %8612 = vmatprep.mubr.f32.mxu1 %v11561_v26  ;;  %9472 = vmatpush3.bf16.msra.mxu1 %v9469_v10  ;;  %v12170_v26 = vld [vmem:[#allocation34_spill] sm:$0xff] }
 0x507   : > { %9474 = vmatprep.subr.bf16.mxu1 %v9473_v21  ;;  %v11740_v10 = vld [vmem:[#allocation2 + $0x211] sm:$0xff] }
 0x509   : > { %8613 = vmatmul.mubr.f32.gmra.mrb[10].mxu1 %v11564_v1  ;;  %v12172_v1 = vld [vmem:[#allocation36_spill] sm:$0xff] }
 0x50a   : > { %8615 = vmatprep.mubr.f32.mxu1 %v12167_v36  ;;  %9476 = vmatpush3.bf16.msra.mxu1 %v9473_v21  ;;  %v5385_v21 = vld [vmem:[#allocation6 + $0x828] sm:$0xff]  ;;  %v5391_v36 = vld [vmem:[#allocation6 + $0x858] sm:$0xff] }
 0x50b   : > { %9478 = vmatprep.subr.bf16.mxu1 %v9477_v13  ;;  %v9493_v47 = vpack.c.bf16 %v5385_v21, %v5384_v0  ;;  %v5365_v0 = vld [vmem:[#allocation2 + $0x168] sm:$0xff]  ;;  %v5366_v21 = vld [vmem:[#allocation2 + $0x170] sm:$0xff] }
 0x50d   : > { %8616 = vmatmul.mubr.f32.gmra.mrb[12].mxu1 %v12168_v52  ;;  %v12191_v52 = vld [vmem:[#allocation53_spill] sm:$0xff] }
 0x50e   : > { %8618 = vmatprep.mubr.f32.mxu1 %v12169_v35  ;;  %9480 = vmatpush3.bf16.msra.mxu1 %v9477_v13  ;;  %v5387_v13 = vld [vmem:[#allocation6 + $0x838] sm:$0xff] }
 0x50f   : > { %9482 = vmatprep.subr.bf16.mxu1 %v9481_v61  ;;  %v9497_v30 = vpack.c.bf16 %v5387_v13, %v5386_v24  ;;  %v12192_v35 = vld [vmem:[#allocation54_spill] sm:$0xff]  ;;  %v5369_v13 = vld [vmem:[#allocation2 + $0x1a8] sm:$0xff] }
 0x510   : > { %v5368_v24 = vld [vmem:[#allocation2 + $0x190] sm:$0xff] }
 0x511   : > { %8619 = vmatmul.mubr.f32.gmra.mrb[14].mxu1 %v12170_v26  ;;  %v5695_v26 = vld [vmem:[#allocation6 + $0x8c8] sm:$0xff] }
 0x512   : > { %8621 = vmatprep.mubr.f32.mxu1 %v12171_v59  ;;  %9484 = vmatpush3.bf16.msra.mxu1 %v9481_v61  ;;  %v5393_v61 = vld [vmem:[#allocation6 + $0x868] sm:$0xff]  ;;  %v12193_v59 = vld [vmem:[#allocation55_spill] sm:$0xff] }
 0x513   : > { %9486 = vmatprep.subr.bf16.mxu1 %v9485_v46 }
 0x515   : > { %8622 = vmatmul.mubr.f32.gmra.mrb[16].mxu1 %v12172_v1 }
 0x516   : > { %8624 = vmatprep.mubr.f32.mxu1 %v12173_v60  ;;  %v5696_v60 = vld [vmem:[#allocation6 + $0x8d0] sm:$0xff] }
 0x519   : > { %8625 = vmatmul.mubr.f32.gmra.mrb[18].mxu1 %v12174_v9  ;;  %v5697_v9 = vld [vmem:[#allocation6 + $0x8d8] sm:$0xff] }
 0x51a   : > { %8627 = vmatprep.mubr.f32.mxu1 %v12175_v12  ;;  %v5355_v12 = vld [vmem:[#allocation2 + $0xc8] sm:$0xff] }
 0x51d   : > { %8628 = vmatmul.mubr.f32.gmra.mrb[20].mxu1 %v12176_v55  ;;  %v9537_v55 = vpack.c.bf16 %v5697_v9, %v5696_v60  ;;  %v6239_v60 = vld [vmem:[#allocation12 + $0x40] sm:$0xff]  ;;  %v11784_v9 = vld [vmem:[#allocation8 + $0x1] ss:$0 sm:$0xff] }
 0x51e   : > { %8630 = vmatprep.mubr.f32.mxu1 %v12177_v51  ;;  %v5698_v51 = vld [vmem:[#allocation6 + $0x8e0] sm:$0xff] }
 0x521   : > { %8631 = vmatmul.mubr.f32.gmra.mrb[22].mxu1 %v12178_v50  ;;  %v5699_v50 = vld [vmem:[#allocation6 + $0x8e8] sm:$0xff] }
 0x522   : > { %8633 = vmatprep.mubr.f32.mxu1 %v12179_v42  ;;  %v5357_v42 = vld [vmem:[#allocation2 + $0xe8] sm:$0xff] }
 0x525   : > { %8634 = vmatmul.mubr.f32.gmra.mrb[24].mxu1 %v12180_v15  ;;  %v5358_v15 = vld [vmem:[#allocation2 + $0xf0] sm:$0xff] }
 0x526   : > { %8636 = vmatprep.mubr.f32.mxu1 %v12181_v16  ;;  %v5700_v16 = vld [vmem:[#allocation6 + $0x8f0] sm:$0xff] }
 0x529   : > { %8637 = vmatmul.mubr.f32.gmra.mrb[26].mxu1 %v12182_v20  ;;  %v5701_v20 = vld [vmem:[#allocation6 + $0x8f8] sm:$0xff] }
 0x52a   : > { %8639 = vmatprep.mubr.f32.mxu1 %v12183_v38  ;;  %v5359_v38 = vld [vmem:[#allocation2 + $0x108] sm:$0xff] }
 0x52d   : > { %8640 = vmatmul.mubr.f32.gmra.mrb[28].mxu1 %v12184_v29  ;;  %v5360_v29 = vld [vmem:[#allocation2 + $0x110] sm:$0xff] }
 0x52e   : > { %8642 = vmatprep.mubr.f32.mxu1 %v11737_v14 }
 0x531   : > { %8643 = vmatmul.mubr.f32.gmra.mrb[30].mxu1 %v11740_v10 }
 0x532   : > { %8677 = vmatprep.mubr.f32.mxu1 %v11447_v19  ;;  %v5388_v19 = vld [vmem:[#allocation6 + $0x840] sm:$0xff] }
 0x535   : > { %8678 = vmatmul.mubr.f32.vlgmr.msra.gmra.mrb[0].mxu1 %v11450_v41  ;;  %v9501_v41 = vpack.c.bf16 %v5389_v39, %v5388_v19  ;;  %v5371_v19 = vld [vmem:[#allocation2 + $0x1c8] sm:$0xff]  ;;  %v5372_v39 = vld [vmem:[#allocation2 + $0x1d0] sm:$0xff] }
 0x536   : > { %8680 = vmatprep.mubr.f32.mxu1 %v11453_v2  ;;  %9488 = vmatpush3.bf16.msra.mxu1 %v9485_v46  ;;  %v5390_v2 = vld [vmem:[#allocation6 + $0x850] sm:$0xff] }
 0x537   : > { %9490 = vmatprep.subr.bf16.mxu1 %v9489_v45 }
 0x539   : > { %8681 = vmatmul.mubr.f32.gmra.mrb[2].mxu1 %v11456_v63  ;;  %v9505_v63 = vpack.c.bf16 %v5391_v36, %v5390_v2  ;;  %v5374_v2 = vld [vmem:[#allocation2 + $0x1f0] sm:$0xff]  ;;  %v5375_v36 = vld [vmem:[#allocation2 + $0x208] sm:$0xff] }
 0x53a   : > { %8683 = vmatprep.mubr.f32.mxu1 %v11459_v6  ;;  %9492 = vmatpush3.bf16.msra.mxu1 %v9489_v45  ;;  %v5392_v6 = vld [vmem:[#allocation6 + $0x860] sm:$0xff]  ;;  %v5364_v45 = vld [vmem:[#allocation2 + $0x150] sm:$0xff] }
 0x53b   : > { %9494 = vmatprep.subr.bf16.mxu1 %v9493_v47 }
 0x53d   : > { %8684 = vmatmul.mubr.f32.gmra.mrb[4].mxu1 %v11462_v34  ;;  %v9509_v34 = vpack.c.bf16 %v5393_v61, %v5392_v6  ;;  %v10232_v6 = vld [vmem:[#allocation2 + $0x8] sm:$0xff] }
 0x53e   : > { %8686 = vmatprep.mubr.f32.mxu1 %v11465_v44  ;;  %9496 = vmatpush3.bf16.msra.mxu1 %v9493_v47  ;;  %v5394_v44 = vld [vmem:[#allocation6 + $0x870] sm:$0xff]  ;;  %v5367_v47 = vld [vmem:[#allocation2 + $0x188] sm:$0xff] }
 0x53f   : > { %9498 = vmatprep.subr.bf16.mxu1 %v9497_v30  ;;  %v5653_v61 = vld [vmem:[#allocation2 + $0x49] sm:$0xff] }
 0x541   : > { %8687 = vmatmul.mubr.f32.gmra.mrb[6].mxu1 %v11468_v40  ;;  %v9513_v40 = vpack.c.bf16 %v5395_v49, %v5394_v44  ;;  %v5655_v44 = vld [vmem:[#allocation2 + $0x69] sm:$0xff]  ;;  %v5656_v49 = vld [vmem:[#allocation2 + $0x71] sm:$0xff] }
 0x542   : > { %8689 = vmatprep.mubr.f32.mxu1 %v11471_v11  ;;  %9500 = vmatpush3.bf16.msra.mxu1 %v9497_v30  ;;  %v5686_v11 = vld [vmem:[#allocation6 + $0x880] sm:$0xff]  ;;  %v5370_v30 = vld [vmem:[#allocation2 + $0x1b0] sm:$0xff] }
 0x543   : > { %9502 = vmatprep.subr.bf16.mxu1 %v9501_v41 }
 0x545   : > { %8690 = vmatmul.mubr.f32.gmra.mrb[8].mxu1 %v11474_v56  ;;  %v9517_v56 = vpack.c.bf16 %v5687_v7, %v5686_v11  ;;  %v5658_v11 = vld [vmem:[#allocation2 + $0x91] sm:$0xff]  ;;  %v5659_v7 = vld [vmem:[#allocation2 + $0xa9] sm:$0xff] }
 0x546   : > { %8692 = vmatprep.mubr.f32.mxu1 %v11477_v18  ;;  %9504 = vmatpush3.bf16.msra.mxu1 %v9501_v41  ;;  %v12185_v18 = vld [vmem:[#allocation21_spill] sm:$0xff] }
 0x547   : > { %9506 = vmatprep.subr.bf16.mxu1 %v9505_v63  ;;  %v5373_v41 = vld [vmem:[#allocation2 + $0x1e8] sm:$0xff] }
 0x549   : > { %8693 = vmatmul.mubr.f32.gmra.mrb[10].mxu1 %v11480_v22  ;;  %v12186_v22 = vld [vmem:[#allocation22_spill] sm:$0xff] }
 0x54a   : > { %8695 = vmatprep.mubr.f32.mxu1 %v11483_v27  ;;  %9508 = vmatpush3.bf16.msra.mxu1 %v9505_v63  ;;  %v12187_v27 = vld [vmem:[#allocation49_spill] sm:$0xff] }
 0x54b   : > { %9510 = vmatprep.subr.bf16.mxu1 %v9509_v34  ;;  %v5376_v63 = vld [vmem:[#allocation2 + $0x210] sm:$0xff] }
 0x54d   : > { %8696 = vmatmul.mubr.f32.gmra.mrb[12].mxu1 %v11486_v28  ;;  %v5071_v28 = vld [vmem:[#allocation2 + $0x227] sm:$0xff] }
 0x54e   : > { %8698 = vmatprep.mubr.f32.mxu1 %v11489_v31  ;;  %9512 = vmatpush3.bf16.msra.mxu1 %v9509_v34  ;;  %v12188_v31 = vld [vmem:[#allocation50_spill] sm:$0xff] }
 0x54f   : > { %9514 = vmatprep.subr.bf16.mxu1 %v9513_v40  ;;  %v5654_v34 = vld [vmem:[#allocation2 + $0x51] sm:$0xff] }
 0x551   : > { %8699 = vmatmul.mubr.f32.gmra.mrb[14].mxu1 %v11492_v32  ;;  %v5072_v32 = vld [vmem:[#allocation2 + $0x22f] sm:$0xff] }
 0x552   : > { %8701 = vmatprep.mubr.f32.mxu1 %v11495_v57  ;;  %9516 = vmatpush3.bf16.msra.mxu1 %v9513_v40  ;;  %v5688_v57 = vld [vmem:[#allocation6 + $0x890] sm:$0xff] }
 0x553   : > { %9518 = vmatprep.subr.bf16.mxu1 %v9517_v56  ;;  %v5657_v40 = vld [vmem:[#allocation2 + $0x89] sm:$0xff] }
 0x555   : > { %8702 = vmatmul.mubr.f32.gmra.mrb[16].mxu1 %v11498_v25  ;;  %v5689_v25 = vld [vmem:[#allocation6 + $0x898] sm:$0xff] }
 0x556   : > { %8704 = vmatprep.mubr.f32.mxu1 %v11501_v5  ;;  %v9521_v5 = vpack.c.bf16 %v5689_v25, %v5688_v57  ;;  %v5667_v57 = vld [vmem:[#allocation2 + $0x129] sm:$0xff]  ;;  %v5668_v25 = vld [vmem:[#allocation2 + $0x131] sm:$0xff] }
 0x559   : > { %8705 = vmatmul.mubr.f32.gmra.mrb[18].mxu1 %v11504_v62  ;;  %v5690_v62 = vld [vmem:[#allocation6 + $0x8a0] sm:$0xff] }
 0x55a   : > { %8707 = vmatprep.mubr.f32.mxu1 %v11507_v3  ;;  %v5691_v3 = vld [vmem:[#allocation6 + $0x8a8] sm:$0xff] }
 0x55d   : > { %8708 = vmatmul.mubr.f32.gmra.mrb[20].mxu1 %v11510_v8  ;;  %v12189_v8 = vld [vmem:[#allocation51_spill] sm:$0xff] }
 0x55e   : > { %8710 = vmatprep.mubr.f32.mxu1 %v11513_v48  ;;  %v12190_v48 = vld [vmem:[#allocation52_spill] sm:$0xff] }
 0x561   : > { %8711 = vmatmul.mubr.f32.gmra.mrb[22].mxu1 %v11516_v23  ;;  %v9525_v23 = vpack.c.bf16 %v5691_v3, %v5690_v62  ;;  %v5670_v62 = vld [vmem:[#allocation2 + $0x151] sm:$0xff]  ;;  %v5671_v3 = vld [vmem:[#allocation2 + $0x169] sm:$0xff] }
 0x562   : > { %8713 = vmatprep.mubr.f32.mxu1 %v11519_v53  ;;  %v5692_v53 = vld [vmem:[#allocation6 + $0x8b0] sm:$0xff] }
 0x565   : > { %8714 = vmatmul.mubr.f32.gmra.mrb[24].mxu1 %v11522_v54  ;;  %v5693_v54 = vld [vmem:[#allocation6 + $0x8b8] sm:$0xff] }
 0x566   : > { %8716 = vmatprep.mubr.f32.mxu1 %v12185_v18  ;;  %v9529_v46 = vpack.c.bf16 %v5693_v54, %v5692_v53  ;;  %v5661_v18 = vld [vmem:[#allocation2 + $0xc9] sm:$0xff]  ;;  %v5676_v54 = vld [vmem:[#allocation2 + $0x1b1] sm:$0xff] }
 0x567   : > { %v5675_v53 = vld [vmem:[#allocation2 + $0x1a9] sm:$0xff] }
 0x569   : > { %8717 = vmatmul.mubr.f32.gmra.mrb[26].mxu1 %v12186_v22  ;;  %v5662_v22 = vld [vmem:[#allocation2 + $0xd1] sm:$0xff] }
 0x56a   : > { %8719 = vmatprep.mubr.f32.mxu1 %v12187_v27  ;;  %v5663_v27 = vld [vmem:[#allocation2 + $0xe9] sm:$0xff] }
 0x56d   : > { %8720 = vmatmul.mubr.f32.gmra.mrb[28].mxu1 %v12188_v31  ;;  %v5665_v31 = vld [vmem:[#allocation2 + $0x109] sm:$0xff] }
 0x56e   : > { %8722 = vmatprep.mubr.f32.mxu1 %v5071_v28  ;;  %v5664_v28 = vld [vmem:[#allocation2 + $0xf1] sm:$0xff] }
 0x571   : > { %8723 = vmatmul.mubr.f32.gmra.mrb[30].mxu1 %v5072_v32  ;;  %v5666_v32 = vld [vmem:[#allocation2 + $0x111] sm:$0xff] }
 0x572   : > { %8757 = vmatprep.mubr.f32.mxu1 %v11657_v37  ;;  %v5694_v37 = vld [vmem:[#allocation6 + $0x8c0] sm:$0xff] }
 0x573   : > { %v9533_v1 = vpack.c.bf16 %v5695_v26, %v5694_v37  ;;  %v5680_v37 = vld [vmem:[#allocation2 + $0x1f1] sm:$0xff]  ;;  %v5683_v26 = vld [vmem:[#allocation2 + $0x229] sm:$0xff] }
 0x575   : > { %8758 = vmatmul.mubr.f32.vlgmr.msra.gmra.mrb[0].mxu1 %v12189_v8  ;;  %v5672_v8 = vld [vmem:[#allocation2 + $0x171] sm:$0xff] }
 0x576   : > { %8760 = vmatprep.mubr.f32.mxu1 %v12190_v48  ;;  %9520 = vmatpush3.bf16.msra.mxu1 %v9517_v56  ;;  %v5660_v56 = vld [vmem:[#allocation2 + $0xb1] sm:$0xff]  ;;  %v5673_v48 = vld [vmem:[#allocation2 + $0x189] sm:$0xff] }
 0x577   : > { %9522 = vmatprep.subr.bf16.mxu1 %v9521_v5 }
 0x579   : > { %8761 = vmatmul.mubr.f32.gmra.mrb[2].mxu1 %v12191_v52  ;;  %v5677_v52 = vld [vmem:[#allocation2 + $0x1c9] sm:$0xff] }
 0x57a   : > { %8763 = vmatprep.mubr.f32.mxu1 %v12192_v35  ;;  %9524 = vmatpush3.bf16.msra.mxu1 %v9521_v5  ;;  %v5669_v5 = vld [vmem:[#allocation2 + $0x149] sm:$0xff]  ;;  %v5678_v35 = vld [vmem:[#allocation2 + $0x1d1] sm:$0xff] }
 0x57b   : > { %9526 = vmatprep.subr.bf16.mxu1 %v9525_v23 }
 0x57d   : > { %8764 = vmatmul.mubr.f32.gmra.mrb[4].mxu1 %v12193_v59  ;;  %v5684_v59 = vld [vmem:[#allocation2 + $0x231] sm:$0xff] }
 0x57e   : > { %8766 = vmatprep.mubr.f32.mxu1 %v11675_v58  ;;  %9528 = vmatpush3.bf16.msra.mxu1 %v9525_v23  ;;  %v9541_v58 = vpack.c.bf16 %v5699_v50, %v5698_v51  ;;  %v5674_v23 = vld [vmem:[#allocation2 + $0x191] sm:$0xff] }
 0x57f   : > { %9530 = vmatprep.subr.bf16.mxu1 %v9529_v46 }
 0x581   : > { %8767 = vmatmul.mubr.f32.gmra.mrb[6].mxu1 %v11678_v43  ;;  %v9545_v43 = vpack.c.bf16 %v5701_v20, %v5700_v16 }
 0x582   : > { %8769 = vmatprep.mubr.f32.mxu1 %v5355_v12  ;;  %9532 = vmatpush3.bf16.msra.mxu1 %v9529_v46  ;;  %v5679_v46 = vld [vmem:[#allocation2 + $0x1e9] sm:$0xff] }
 0x583   : > { %9534 = vmatprep.subr.bf16.mxu1 %v9533_v1 }
 0x585   : > { %8770 = vmatmul.mubr.f32.gmra.mrb[8].mxu1 %v11682_v33  ;;  %v5362_v33 = vld [vmem:[#allocation2 + $0x130] sm:$0xff] }
 0x586   : > { %8772 = vmatprep.mubr.f32.mxu1 %v5357_v42  ;;  %9536 = vmatpush3.bf16.msra.mxu1 %v9533_v1  ;;  %v6125_v1 = vld [vmem:[#allocation12] sm:$0xff] }
 0x587   : > { %9538 = vmatprep.subr.bf16.mxu1 %v9537_v55  ;;  %8917 = vmatprep.mubr.f32.mxu0 %v6125_v1 }
 0x589   : > { %8773 = vmatmul.mubr.f32.gmra.mrb[10].mxu1 %v5358_v15 }
 0x58a   : > { %8775 = vmatprep.mubr.f32.mxu1 %v5359_v38  ;;  %9540 = vmatpush3.bf16.msra.mxu1 %v9537_v55 }
 0x58b   : > { %9542 = vmatprep.subr.bf16.mxu1 %v9541_v58 }
 0x58d   : > { %8776 = vmatmul.mubr.f32.gmra.mrb[12].mxu1 %v5360_v29  ;;  %v11793_v29 = vld [vmem:[#allocation11] ss:$0 sm:$0xff] }
 0x58e   : > { %8778 = vmatprep.mubr.f32.mxu1 %v5361_v4  ;;  %9544 = vmatpush3.bf16.msra.mxu1 %v9541_v58 }
 0x58f   : > { %9546 = vmatprep.subr.bf16.mxu1 %v9545_v43 }
 0x591   : > { %8779 = vmatmul.mubr.f32.gmra.mrb[14].mxu1 %v5362_v33 }
 0x592   : > { %8781 = vmatprep.mubr.f32.mxu1 %v5363_v17  ;;  %9548 = vmatpush3.bf16.msra.mxu1 %v9545_v43 }
 0x595   : > { %8782 = vmatmul.mubr.f32.gmra.mrb[16].mxu1 %v5364_v45 }
 0x596   : > { %8784 = vmatprep.mubr.f32.mxu1 %v5365_v0 }
 0x599   : > { %8785 = vmatmul.mubr.f32.gmra.mrb[18].mxu1 %v5366_v21 }
 0x59a   : > { %8787 = vmatprep.mubr.f32.mxu1 %v5367_v47 }
 0x59d   : > { %8788 = vmatmul.mubr.f32.gmra.mrb[20].mxu1 %v5368_v24 }
 0x59e   : > { %8790 = vmatprep.mubr.f32.mxu1 %v5369_v13 }
 0x5a1   : > { %8791 = vmatmul.mubr.f32.gmra.mrb[22].mxu1 %v5370_v30 }
 0x5a2   : > { %8793 = vmatprep.mubr.f32.mxu1 %v5371_v19 }
 0x5a5   : > { %8794 = vmatmul.mubr.f32.gmra.mrb[24].mxu1 %v5372_v39 }
 0x5a6   : > { %8796 = vmatprep.mubr.f32.mxu1 %v5373_v41 }
 0x5a9   : > { %8797 = vmatmul.mubr.f32.gmra.mrb[26].mxu1 %v5374_v2 }
 0x5aa   : > { %8799 = vmatprep.mubr.f32.mxu1 %v5375_v36 }
 0x5ad   : > { %8800 = vmatmul.mubr.f32.gmra.mrb[28].mxu1 %v5376_v63 }
 0x5ae   : > { %8802 = vmatprep.mubr.f32.mxu1 %v10232_v6 }
 0x5b1   : > { %8803 = vmatmul.mubr.f32.gmra.mrb[30].mxu1 %v10232_v6 }
 0x5b2   : > { %8837 = vmatprep.mubr.f32.mxu1 %v5653_v61 }
 0x5b5   : > { %8838 = vmatmul.mubr.f32.vlgmr.msra.gmra.mrb[0].mxu1 %v5654_v34 }
 0x5b6   : > { %8840 = vmatprep.mubr.f32.mxu1 %v5655_v44 }
 0x5b9   : > { %8841 = vmatmul.mubr.f32.gmra.mrb[2].mxu1 %v5656_v49 }
 0x5ba   : > { %8843 = vmatprep.mubr.f32.mxu1 %v5657_v40 }
 0x5bd   : > { %8844 = vmatmul.mubr.f32.gmra.mrb[4].mxu1 %v5658_v11 }
 0x5be   : > { %8846 = vmatprep.mubr.f32.mxu1 %v5659_v7 }
 0x5c1   : > { %8847 = vmatmul.mubr.f32.gmra.mrb[6].mxu1 %v5660_v56 }
 0x5c2   : > { %8849 = vmatprep.mubr.f32.mxu1 %v5661_v18 }
 0x5c5   : > { %8850 = vmatmul.mubr.f32.gmra.mrb[8].mxu1 %v5662_v22 }
 0x5c6   : > { %8852 = vmatprep.mubr.f32.mxu1 %v5663_v27 }
 0x5c9   : > { %8853 = vmatmul.mubr.f32.gmra.mrb[10].mxu1 %v5664_v28 }
 0x5ca   : > { %8855 = vmatprep.mubr.f32.mxu1 %v5665_v31 }
 0x5cd   : > { %8856 = vmatmul.mubr.f32.gmra.mrb[12].mxu1 %v5666_v32 }
 0x5ce   : > { %8858 = vmatprep.mubr.f32.mxu1 %v5667_v57 }
 0x5d1   : > { %8859 = vmatmul.mubr.f32.gmra.mrb[14].mxu1 %v5668_v25 }
 0x5d2   : > { %8861 = vmatprep.mubr.f32.mxu1 %v5669_v5 }
 0x5d5   : > { %8862 = vmatmul.mubr.f32.gmra.mrb[16].mxu1 %v5670_v62 }
 0x5d6   : > { %8864 = vmatprep.mubr.f32.mxu1 %v5671_v3 }
 0x5d9   : > { %8865 = vmatmul.mubr.f32.gmra.mrb[18].mxu1 %v5672_v8 }
 0x5da   : > { %8867 = vmatprep.mubr.f32.mxu1 %v5673_v48 }
 0x5dd   : > { %8868 = vmatmul.mubr.f32.gmra.mrb[20].mxu1 %v5674_v23 }
 0x5de   : > { %8870 = vmatprep.mubr.f32.mxu1 %v5675_v53 }
 0x5e1   : > { %8871 = vmatmul.mubr.f32.gmra.mrb[22].mxu1 %v5676_v54 }
 0x5e2   : > { %8873 = vmatprep.mubr.f32.mxu1 %v5677_v52 }
 0x5e5   : > { %8874 = vmatmul.mubr.f32.gmra.mrb[24].mxu1 %v5678_v35 }
 0x5e6   : > { %8876 = vmatprep.mubr.f32.mxu1 %v5679_v46 }
 0x5e9   : > { %8877 = vmatmul.mubr.f32.gmra.mrb[26].mxu1 %v5680_v37 }
 0x5ea   : > { %8879 = vmatprep.mubr.f32.mxu1 %v11737_v14  ;;  %v11788_v14 = vld [vmem:[#allocation9] ss:$0 sm:$0xff] }
 0x5ed   : > { %8880 = vmatmul.mubr.f32.gmra.mrb[28].mxu1 %v11740_v10 }
 0x5ee   : > { %8882 = vmatprep.mubr.f32.mxu1 %v5683_v26 }
 0x5f1   : > { %8883 = vmatmul.mubr.f32.gmra.mrb[30].mxu1 %v5684_v59 }
 0x5f2   : > { %8961 = vmatprep.mubr.f32.mxu1 %v6239_v60 }
 0x688   : > { %v8839_v12 = vpop.f32.mrb[0].mxu1 }
 0x689   : > { %v5968_v55 = vadd.f32 %v8839_v12, %v11784_v9  ;;  %v5768_v51 = vpop.f32.mrb[1].mxu1 }
 0x68a   : > { %v5967_v50 = vadd.f32 %v11784_v9, %v5768_v51 }
 0x68b   : > { %v6000_v42 = vmax.f32 %v5968_v55, 0.0 }
 0x68c   : > { %v5999_v58 = vmax.f32 %v5967_v50, 0.0  ;;  %v8842_v10 = vpop.f32.mrb[2].mxu1 }
 0x68d   : > { %v5970_v15 = vadd.f32 %v8842_v10, %v11784_v9  ;;  %v5778_v16 = vpop.f32.mrb[3].mxu1  ;;  %v6039_v38 = vmul.f32 %v11788_v14, %v6000_v42 }
 0x68e   : > { %v5969_v20 = vadd.f32 %v11784_v9, %v5778_v16  ;;  %v6038_v4 = vmul.f32 %v11788_v14, %v5999_v58 }
 0x68f   : > { %v6002_v43 = vmax.f32 %v5970_v15, 0.0  ;;  %v6078_v13 = vadd.f32 %v11793_v29, %v6039_v38 }
 0x690   : > { %v6001_v33 = vmax.f32 %v5969_v20, 0.0  ;;  %v8845_v17 = vpop.f32.mrb[4].mxu1  ;;  %v6077_v39 = vadd.f32 %v11793_v29, %v6038_v4 }
 0x691   : > { %v6041_v45 = vmul.f32 %v11788_v14, %v6002_v43  ;;  %v5972_v0 = vadd.f32 %v8845_v17, %v11784_v9  ;;  %v5788_v21 = vpop.f32.mrb[5].mxu1 }
 0x692   : > { %v6040_v47 = vmul.f32 %v11788_v14, %v6001_v33  ;;  %v5971_v24 = vadd.f32 %v11784_v9, %v5788_v21 }
 0x693   : > { %v6080_v30 = vadd.f32 %v11793_v29, %v6041_v45  ;;  %v6004_v19 = vmax.f32 %v5972_v0, 0.0 }
 0x694   : > { %v6079_v41 = vadd.f32 %v11793_v29, %v6040_v47  ;;  %v6003_v2 = vmax.f32 %v5971_v24, 0.0  ;;  %v8848_v36 = vpop.f32.mrb[6].mxu1 }
 0x695   : > { %v6110_v63 = vmax.f32 %v6078_v13, %v6080_v30  ;;  %v5974_v6 = vadd.f32 %v8848_v36, %v11784_v9  ;;  %v5798_v61 = vpop.f32.mrb[7].mxu1  ;;  %v6043_v49 = vmul.f32 %v11788_v14, %v6004_v19 }
 0x696   : > { %v6109_v34 = vmax.f32 %v6077_v39, %v6079_v41  ;;  %v5973_v44 = vadd.f32 %v11784_v9, %v5798_v61  ;;  %v6042_v11 = vmul.f32 %v11788_v14, %v6003_v2 }
 0x697   : > { %v6006_v40 = vmax.f32 %v5974_v6, 0.0  ;;  %v6082_v57 = vadd.f32 %v11793_v29, %v6043_v49 }
 0x698   : > { %v6005_v7 = vmax.f32 %v5973_v44, 0.0  ;;  %v8851_v56 = vpop.f32.mrb[8].mxu1  ;;  %v9549_v18 = vpack.c.bf16 %v6110_v63, %v6109_v34  ;;  %v6081_v62 = vadd.f32 %v11793_v29, %v6042_v11 }
 0x699   : > { %v6045_v22 = vmul.f32 %v11788_v14, %v6006_v40  ;;  %v5976_v27 = vadd.f32 %v8851_v56, %v11784_v9  ;;  %v5808_v28 = vpop.f32.mrb[9].mxu1 }
 0x69a   : > { %v6044_v31 = vmul.f32 %v11788_v14, %v6005_v7  ;;  %v5975_v32 = vadd.f32 %v11784_v9, %v5808_v28  ;;  %9550 = vmatprep.subr.bf16.mxu0 %v9549_v18  ;;  %9582 = vmatprep.subr.bf16.mxu1 %v9549_v18 }
 0x69b   : > { %v6084_v25 = vadd.f32 %v11793_v29, %v6045_v22  ;;  %v6008_v5 = vmax.f32 %v5976_v27, 0.0  ;;  %9552 = vmatpush3.bf16.msra.mxu0 %v9549_v18  ;;  %9584 = vmatpush3.bf16.msra.mxu1 %v9549_v18 }
 0x69c   : > { %v6083_v3 = vadd.f32 %v11793_v29, %v6044_v31  ;;  %v6007_v8 = vmax.f32 %v5975_v32, 0.0  ;;  %v8854_v48 = vpop.f32.mrb[10].mxu1 }
 0x69d   : > { %v6112_v23 = vmax.f32 %v6082_v57, %v6084_v25  ;;  %v5978_v53 = vadd.f32 %v8854_v48, %v11784_v9  ;;  %v5818_v54 = vpop.f32.mrb[11].mxu1  ;;  %v6047_v46 = vmul.f32 %v11788_v14, %v6008_v5 }
 0x69e   : > { %v6111_v52 = vmax.f32 %v6081_v62, %v6083_v3  ;;  %v5977_v35 = vadd.f32 %v11784_v9, %v5818_v54  ;;  %v6046_v26 = vmul.f32 %v11788_v14, %v6007_v8 }
 0x69f   : > { %v6010_v37 = vmax.f32 %v5978_v53, 0.0  ;;  %v6086_v58 = vadd.f32 %v11793_v29, %v6047_v46 }
 0x6a0   : > { %v6009_v59 = vmax.f32 %v5977_v35, 0.0  ;;  %v8857_v1 = vpop.f32.mrb[12].mxu1  ;;  %v9553_v60 = vpack.c.bf16 %v6112_v23, %v6111_v52  ;;  %v6085_v16 = vadd.f32 %v11793_v29, %v6046_v26 }
 0x6a1   : > { %v6049_v12 = vmul.f32 %v11788_v14, %v6010_v37  ;;  %v5980_v55 = vadd.f32 %v8857_v1, %v11784_v9  ;;  %v5828_v51 = vpop.f32.mrb[13].mxu1 }
 0x6a2   : > { %v6048_v50 = vmul.f32 %v11788_v14, %v6009_v59  ;;  %v5979_v42 = vadd.f32 %v11784_v9, %v5828_v51  ;;  %9554 = vmatprep.subr.bf16.mxu0 %v9553_v60  ;;  %9586 = vmatprep.subr.bf16.mxu1 %v9553_v60 }
 0x6a3   : > { %v6088_v10 = vadd.f32 %v11793_v29, %v6049_v12  ;;  %v6012_v15 = vmax.f32 %v5980_v55, 0.0  ;;  %9556 = vmatpush3.bf16.msra.mxu0 %v9553_v60  ;;  %9588 = vmatpush3.bf16.msra.mxu1 %v9553_v60 }
 0x6a4   : > { %v6087_v20 = vadd.f32 %v11793_v29, %v6048_v50  ;;  %v6011_v38 = vmax.f32 %v5979_v42, 0.0  ;;  %v8860_v43 = vpop.f32.mrb[14].mxu1 }
 0x6a5   : > { %v6114_v4 = vmax.f32 %v6086_v58, %v6088_v10  ;;  %v5982_v33 = vadd.f32 %v8860_v43, %v11784_v9  ;;  %v5838_v17 = vpop.f32.mrb[15].mxu1  ;;  %v6051_v21 = vmul.f32 %v11788_v14, %v6012_v15 }
 0x6a6   : > { %v6113_v45 = vmax.f32 %v6085_v16, %v6087_v20  ;;  %v5981_v0 = vadd.f32 %v11784_v9, %v5838_v17  ;;  %v6050_v24 = vmul.f32 %v11788_v14, %v6011_v38 }
 0x6a7   : > { %v6014_v47 = vmax.f32 %v5982_v33, 0.0  ;;  %v6090_v6 = vadd.f32 %v11793_v29, %v6051_v21 }
 0x6a8   : > { %v6013_v13 = vmax.f32 %v5981_v0, 0.0  ;;  %v8863_v30 = vpop.f32.mrb[16].mxu1  ;;  %v9557_v19 = vpack.c.bf16 %v6114_v4, %v6113_v45  ;;  %v6089_v44 = vadd.f32 %v11793_v29, %v6050_v24 }
 0x6a9   : > { %v6053_v39 = vmul.f32 %v11788_v14, %v6014_v47  ;;  %v5984_v41 = vadd.f32 %v8863_v30, %v11784_v9  ;;  %v5848_v2 = vpop.f32.mrb[17].mxu1 }
 0x6aa   : > { %v6052_v36 = vmul.f32 %v11788_v14, %v6013_v13  ;;  %v5983_v63 = vadd.f32 %v11784_v9, %v5848_v2  ;;  %9558 = vmatprep.subr.bf16.mxu0 %v9557_v19  ;;  %9590 = vmatprep.subr.bf16.mxu1 %v9557_v19 }
 0x6ab   : > { %v6092_v61 = vadd.f32 %v11793_v29, %v6053_v39  ;;  %v6016_v34 = vmax.f32 %v5984_v41, 0.0  ;;  %9560 = vmatpush3.bf16.msra.mxu0 %v9557_v19  ;;  %9592 = vmatpush3.bf16.msra.mxu1 %v9557_v19 }
 0x6ac   : > { %v6091_v49 = vadd.f32 %v11793_v29, %v6052_v36  ;;  %v6015_v40 = vmax.f32 %v5983_v63, 0.0  ;;  %v8866_v11 = vpop.f32.mrb[18].mxu1 }
 0x6ad   : > { %v6116_v7 = vmax.f32 %v6090_v6, %v6092_v61  ;;  %v5986_v56 = vadd.f32 %v8866_v11, %v11784_v9  ;;  %v5858_v18 = vpop.f32.mrb[19].mxu1  ;;  %v6055_v28 = vmul.f32 %v11788_v14, %v6016_v34 }
 0x6ae   : > { %v6115_v22 = vmax.f32 %v6089_v44, %v6091_v49  ;;  %v5985_v27 = vadd.f32 %v11784_v9, %v5858_v18  ;;  %v6054_v32 = vmul.f32 %v11788_v14, %v6015_v40 }
 0x6af   : > { %v6018_v31 = vmax.f32 %v5986_v56, 0.0  ;;  %v6094_v53 = vadd.f32 %v11793_v29, %v6055_v28 }
 0x6b0   : > { %v6017_v57 = vmax.f32 %v5985_v27, 0.0  ;;  %v8869_v25 = vpop.f32.mrb[20].mxu1  ;;  %v9561_v5 = vpack.c.bf16 %v6116_v7, %v6115_v22  ;;  %v6093_v35 = vadd.f32 %v11793_v29, %v6054_v32 }
 0x6b1   : > { %v6057_v62 = vmul.f32 %v11788_v14, %v6018_v31  ;;  %v5988_v3 = vadd.f32 %v8869_v25, %v11784_v9  ;;  %v5868_v8 = vpop.f32.mrb[21].mxu1 }
 0x6b2   : > { %v6056_v48 = vmul.f32 %v11788_v14, %v6017_v57  ;;  %v5987_v23 = vadd.f32 %v11784_v9, %v5868_v8  ;;  %9562 = vmatprep.subr.bf16.mxu0 %v9561_v5  ;;  %9594 = vmatprep.subr.bf16.mxu1 %v9561_v5 }
 0x6b3   : > { %v6096_v54 = vadd.f32 %v11793_v29, %v6057_v62  ;;  %v6020_v52 = vmax.f32 %v5988_v3, 0.0  ;;  %9564 = vmatpush3.bf16.msra.mxu0 %v9561_v5  ;;  %9596 = vmatpush3.bf16.msra.mxu1 %v9561_v5 }
 0x6b4   : > { %v6095_v46 = vadd.f32 %v11793_v29, %v6056_v48  ;;  %v6019_v37 = vmax.f32 %v5987_v23, 0.0  ;;  %v8872_v26 = vpop.f32.mrb[22].mxu1 }
 0x6b5   : > { %v6118_v59 = vmax.f32 %v6094_v53, %v6096_v54  ;;  %v5990_v1 = vadd.f32 %v8872_v26, %v11784_v9  ;;  %v5878_v60 = vpop.f32.mrb[23].mxu1  ;;  %v6059_v51 = vmul.f32 %v11788_v14, %v6020_v52 }
 0x6b6   : > { %v6117_v12 = vmax.f32 %v6093_v35, %v6095_v46  ;;  %v5989_v55 = vadd.f32 %v11784_v9, %v5878_v60  ;;  %v6058_v42 = vmul.f32 %v11788_v14, %v6019_v37 }
 0x6b7   : > { %v6022_v50 = vmax.f32 %v5990_v1, 0.0  ;;  %v6098_v33 = vadd.f32 %v11793_v29, %v6059_v51  ;;  %v6241_v51 = vld [vmem:[#allocation12 + $0x50] sm:$0xff] }
 0x6b8   : > { %v6021_v58 = vmax.f32 %v5989_v55, 0.0  ;;  %v8875_v10 = vpop.f32.mrb[24].mxu1  ;;  %v9565_v15 = vpack.c.bf16 %v6118_v59, %v6117_v12  ;;  %v6097_v0 = vadd.f32 %v11793_v29, %v6058_v42  ;;  %v6240_v12 = vld [vmem:[#allocation12 + $0x48] sm:$0xff]  ;;  %v6127_v55 = vld [vmem:[#allocation12 + $0x10] sm:$0xff]  ;;  %v6242_v42 = vld [vmem:[#allocation12 + $0x58] sm:$0xff] }
 0x6b9   : > { %v6061_v16 = vmul.f32 %v11788_v14, %v6022_v50  ;;  %v5992_v20 = vadd.f32 %v8875_v10, %v11784_v9  ;;  %v5888_v38 = vpop.f32.mrb[25].mxu1  ;;  %v6128_v50 = vld [vmem:[#allocation12 + $0x18] sm:$0xff]  ;;  %v6243_v10 = vld [vmem:[#allocation12 + $0x60] sm:$0xff] }
 0x6ba   : > { %v6060_v43 = vmul.f32 %v11788_v14, %v6021_v58  ;;  %v5991_v4 = vadd.f32 %v11784_v9, %v5888_v38  ;;  %9566 = vmatprep.subr.bf16.mxu0 %v9565_v15  ;;  %9598 = vmatprep.subr.bf16.mxu1 %v9565_v15  ;;  %v6129_v58 = vld [vmem:[#allocation12 + $0x20] sm:$0xff]  ;;  %v6132_v38 = vld [vmem:[#allocation12 + $0x38] sm:$0xff] }
 0x6bb   : > { %v6100_v17 = vadd.f32 %v11793_v29, %v6061_v16  ;;  %v6024_v45 = vmax.f32 %v5992_v20, 0.0  ;;  %9568 = vmatpush3.bf16.msra.mxu0 %v9565_v15  ;;  %9600 = vmatpush3.bf16.msra.mxu1 %v9565_v15  ;;  %v6244_v15 = vld [vmem:[#allocation12 + $0x68] sm:$0xff]  ;;  %v6131_v16 = vld [vmem:[#allocation12 + $0x30] sm:$0xff] }
 0x6bc   : > { %v6099_v21 = vadd.f32 %v11793_v29, %v6060_v43  ;;  %v6023_v47 = vmax.f32 %v5991_v4, 0.0  ;;  %v8878_v24 = vpop.f32.mrb[26].mxu1  ;;  %v6245_v20 = vld [vmem:[#allocation12 + $0x70] sm:$0xff]  ;;  %v6246_v43 = vld [vmem:[#allocation12 + $0x78] sm:$0xff] }
 0x6bd   : > { %v6120_v13 = vmax.f32 %v6098_v33, %v6100_v17  ;;  %v5994_v30 = vadd.f32 %v8878_v24, %v11784_v9  ;;  %v5898_v19 = vpop.f32.mrb[27].mxu1  ;;  %v6063_v2 = vmul.f32 %v11788_v14, %v6024_v45 }
 0x6be   : > { %v6119_v39 = vmax.f32 %v6097_v0, %v6099_v21  ;;  %v5993_v41 = vadd.f32 %v11784_v9, %v5898_v19  ;;  %v6062_v63 = vmul.f32 %v11788_v14, %v6023_v47 }
 0x6bf   : > { %v6026_v36 = vmax.f32 %v5994_v30, 0.0  ;;  %v6102_v56 = vadd.f32 %v11793_v29, %v6063_v2 }
 0x6c0   : > { %v6025_v6 = vmax.f32 %v5993_v41, 0.0  ;;  %v8881_v61 = vpop.f32.mrb[28].mxu1  ;;  %v9569_v34 = vpack.c.bf16 %v6120_v13, %v6119_v39  ;;  %v6101_v27 = vadd.f32 %v11793_v29, %v6062_v63 }
 0x6c1   : > { %v6065_v44 = vmul.f32 %v11788_v14, %v6026_v36  ;;  %v5996_v49 = vadd.f32 %v8881_v61, %v11784_v9  ;;  %v5908_v40 = vpop.f32.mrb[29].mxu1 }
 0x6c2   : > { %v6064_v11 = vmul.f32 %v11788_v14, %v6025_v6  ;;  %v5995_v7 = vadd.f32 %v11784_v9, %v5908_v40  ;;  %9570 = vmatprep.subr.bf16.mxu0 %v9569_v34  ;;  %9602 = vmatprep.subr.bf16.mxu1 %v9569_v34 }
 0x6c3   : > { %v6104_v18 = vadd.f32 %v11793_v29, %v6065_v44  ;;  %v6028_v22 = vmax.f32 %v5996_v49, 0.0  ;;  %9572 = vmatpush3.bf16.msra.mxu0 %v9569_v34  ;;  %9604 = vmatpush3.bf16.msra.mxu1 %v9569_v34 }
 0x6c4   : > { %v6103_v28 = vadd.f32 %v11793_v29, %v6064_v11  ;;  %v6027_v31 = vmax.f32 %v5995_v7, 0.0  ;;  %v8884_v32 = vpop.f32.mrb[30].mxu1 }
 0x6c5   : > { %v6122_v57 = vmax.f32 %v6102_v56, %v6104_v18  ;;  %v5998_v25 = vadd.f32 %v8884_v32, %v11784_v9  ;;  %v5918_v5 = vpop.f32.mrb[31].mxu1  ;;  %v6067_v8 = vmul.f32 %v11788_v14, %v6028_v22 }
 0x6c6   : > { %v6121_v62 = vmax.f32 %v6101_v27, %v6103_v28  ;;  %v5997_v3 = vadd.f32 %v11784_v9, %v5918_v5  ;;  %v6066_v23 = vmul.f32 %v11788_v14, %v6027_v31 }
 0x6c7   : > { %v6030_v48 = vmax.f32 %v5998_v25, 0.0  ;;  %v6106_v46 = vadd.f32 %v11793_v29, %v6067_v8 }
 0x6c8   : > { %v6029_v53 = vmax.f32 %v5997_v3, 0.0  ;;  %v9573_v54 = vpack.c.bf16 %v6122_v57, %v6121_v62  ;;  %v6105_v9 = vadd.f32 %v11793_v29, %v6066_v23 }
 0x6c9   : > { %v6069_v52 = vmul.f32 %v11788_v14, %v6030_v48 }
 0x6ca   : > { %v6068_v35 = vmul.f32 %v11788_v14, %v6029_v53  ;;  %9574 = vmatprep.subr.bf16.mxu0 %v9573_v54  ;;  %9606 = vmatprep.subr.bf16.mxu1 %v9573_v54  ;;  %v6126_v14 = vld [vmem:[#allocation12 + $0x8] sm:$0xff] }
 0x6cb   : > { %v6108_v37 = vadd.f32 %v11793_v29, %v6069_v52  ;;  %9576 = vmatpush3.bf16.msra.mxu0 %v9573_v54  ;;  %9608 = vmatpush3.bf16.msra.mxu1 %v9573_v54 }
 0x6cc   : > { %v6107_v26 = vadd.f32 %v11793_v29, %v6068_v35  ;;  %v6130_v29 = vld [vmem:[#allocation12 + $0x28] sm:$0xff] }
 0x6cd   : > { %v6124_v59 = vmax.f32 %v6106_v46, %v6108_v37 }
 0x6ce   : > { %v6123_v1 = vmax.f32 %v6105_v9, %v6107_v26 }
 0x6d0   : > { %v9577_v60 = vpack.c.bf16 %v6124_v59, %v6123_v1 }
 0x6d2   : > { %9578 = vmatprep.subr.bf16.mxu0 %v9577_v60  ;;  %9610 = vmatprep.subr.bf16.mxu1 %v9577_v60 }
 0x6d3   : > { %9580 = vmatpush3.bf16.msra.mxu0 %v9577_v60  ;;  %9612 = vmatpush3.bf16.msra.mxu1 %v9577_v60 }
 0x6d6   : > { %8918 = vmatmul.mubr.f32.vlgmr.msra.gmra.mrb[32].mxu0 %v6126_v14  ;;  %8962 = vmatmul.mubr.f32.vlgmr.msra.gmra.mrb[32].mxu1 %v6240_v12 }
 0x6d7   : > { %8920 = vmatprep.mubr.f32.mxu0 %v6127_v55  ;;  %8964 = vmatprep.mubr.f32.mxu1 %v6241_v51 }
 0x6da   : > { %8921 = vmatmul.mubr.f32.gmra.mrb[34].mxu0 %v6128_v50  ;;  %8965 = vmatmul.mubr.f32.gmra.mrb[34].mxu1 %v6242_v42 }
 0x6db   : > { %8923 = vmatprep.mubr.f32.mxu0 %v6129_v58  ;;  %8967 = vmatprep.mubr.f32.mxu1 %v6243_v10 }
 0x6de   : > { %8924 = vmatmul.mubr.f32.gmra.mrb[36].mxu0 %v6130_v29  ;;  %8968 = vmatmul.mubr.f32.gmra.mrb[36].mxu1 %v6244_v15 }
 0x6df   : > { %8926 = vmatprep.mubr.f32.mxu0 %v6131_v16  ;;  %8970 = vmatprep.mubr.f32.mxu1 %v6245_v20 }
 0x6e2   : > { %8927 = vmatmul.mubr.f32.gmra.mrb[38].mxu0 %v6132_v38  ;;  %8971 = vmatmul.mubr.f32.gmra.mrb[38].mxu1 %v6246_v43 }
 0x7a9   : > { %v8919_v4 = vpop.f32.mrb[32].mxu0  ;;  %v8963_v33 = vpop.f32.mrb[32].mxu1 }
 0x7aa   : > { %v6353_v17 = vmax.f32 %v8919_v4, %v8963_v33  ;;  %v6199_v45 = vpop.f32.mrb[33].mxu0  ;;  %v6313_v0 = vpop.f32.mrb[33].mxu1 }
 0x7ab   : > { %v6352_v21 = vmax.f32 %v6199_v45, %v6313_v0 }
 0x7ac   : > { %6361 = vst [vmem:[%s338_s29 + $0x8] sm:$0xff] %v6353_v17 }
 0x7ad   : > { %6360 = vst [vmem:[%s338_s29] sm:$0xff] %v6352_v21  ;;  %v8922_v47 = vpop.f32.mrb[34].mxu0  ;;  %v8966_v24 = vpop.f32.mrb[34].mxu1 }
 0x7ae   : > { %v6355_v13 = vmax.f32 %v8922_v47, %v8966_v24  ;;  %v6209_v30 = vpop.f32.mrb[35].mxu0  ;;  %v6323_v19 = vpop.f32.mrb[35].mxu1 }
 0x7af   : > { %v6354_v39 = vmax.f32 %v6209_v30, %v6323_v19 }
 0x7b0   : > { %6363 = vst [vmem:[%s338_s29 + $0x18] sm:$0xff] %v6355_v13 }
 0x7b1   : > { %6362 = vst [vmem:[%s338_s29 + $0x10] sm:$0xff] %v6354_v39  ;;  %v8925_v41 = vpop.f32.mrb[36].mxu0  ;;  %v8969_v2 = vpop.f32.mrb[36].mxu1 }
 0x7b2   : > { %v6357_v36 = vmax.f32 %v8925_v41, %v8969_v2  ;;  %v6219_v63 = vpop.f32.mrb[37].mxu0  ;;  %v6333_v6 = vpop.f32.mrb[37].mxu1 }
 0x7b3   : > { %v6356_v61 = vmax.f32 %v6219_v63, %v6333_v6 }
 0x7b4   : > { %6365 = vst [vmem:[%s338_s29 + $0x28] sm:$0xff] %v6357_v36 }
 0x7b5   : > { %6364 = vst [vmem:[%s338_s29 + $0x20] sm:$0xff] %v6356_v61  ;;  %v8928_v34 = vpop.f32.mrb[38].mxu0  ;;  %v8972_v44 = vpop.f32.mrb[38].mxu1 }
 0x7b6   : > { %v6359_v49 = vmax.f32 %v8928_v34, %v8972_v44  ;;  %v6229_v40 = vpop.f32.mrb[39].mxu0  ;;  %v6343_v11 = vpop.f32.mrb[39].mxu1 }
 0x7b7   : > { %v6358_v7 = vmax.f32 %v6229_v40, %v6343_v11 }
 0x7b8   : > { %6367 = vst [vmem:[%s338_s29 + $0x38] sm:$0xff] %v6359_v49 }
 0x7b9   : > { %6366 = vst [vmem:[%s338_s29 + $0x30] sm:$0xff] %v6358_v7 }
 0x7ba   : > { %10416 = shalt.err (!%p10413_p8)
}
 0x7bb   : > { %s10417_s11 = scalar_lea.hbm %s11893_s7, 1024  ;;  %s10421_s28 = scalar_lea.hbm %s11943_s6, 2048 }
 0x7bc   : > { %p10418_p6 = scmp.ne.s32.totalorder %s11893_s7, %s10417_s11  ;;  %p10422_p0 = scmp.lt.u32.totalorder %s11893_s7, %s11943_s6 }
 0x7bd   : > { %p10423_p5 = scmp.lt.u32.totalorder %s10421_s28, %s10417_s11  ;;  %p10425_p7 = scmp.lt.u32.totalorder %s10417_s11, %s11893_s7 }
 0x7be   : > { %p10419_p10 = pnand %p10418_p6, %p12194_p4 }
 0x7bf   : > { %p10424_p9 = por %p10423_p5, %p10422_p0 }
 0x7c0   : > { %p10420_p11 = pneg %p10419_p10 }
 0x7c1   : > { %p10426_p12 = por %p10425_p7, %p10424_p9 }
 0x7c3   : > { %p10427_p13 = pnand %p10426_p12, %p10420_p11 }
 0x7c5   : > { %10430 = shalt.err (!%p10427_p13)
}
 0x7c6   : > { %s10495_s13 = smov 128   ;;  %s10496_s9 = smov 8  }
 0x7c7   : > { %10147 = dma.vmem_to_hbm [thread:$0]  (%p12194_p4), %s11888_s14, 1024, %s11893_s7, %s6369_s27, %s10495_s13, %s10495_s13, %s10496_s9  }
 0x7c8 PF: > { %s6397_s16 = sand.u32 1, %s10469_s21   ;;  %p12195_p1 = scmp.ne.s32.totalorder %s12035_s18, 0 }
 0x7c9   : > { %p12196_p3 = scmp.ge.s32.totalorder %s10481_s24, 2  ;;  %s6398_s25 = scalar_lea.sflag [#allocation5], %s6397_s16 }
 0x7cb   : > { %p10170_p2 = pnand %p12196_p3, %p12195_p1 }
 0x7cd   : > { %10464 = dma.done.wait (!%p10170_p2), %s6398_s25, 1024  }
 0x7ce   : > { %10466 = vsyncadd (!%p10170_p2), %s6398_s25, 4294966272  ;;  %p22_p8 = scmp.ge.s32.totalorder %s10697_s15, 4   ;;  %s12197_s21 = smov %s10473_s22 }
 0x7cf   : > { %s12198_s22 = smov %s10477_s23  ;;  %s12199_s23 = smov %s10709_s17 }
 0x7d0   : > { %s12200_s24 = smov %s10697_s15  ;;  %24 = sbr.rel (!%p22_p8) target bundleno = 8 (0x8), region = 130 }
 0x7d7   :  { %6403 = vsyncpa [#allocation4], 1 }
 0x7d8   :  { %6405 = vsyncpa [#allocation4 + $0x1], 1 }
 0x7d9   :  { %6406 = vsyncpa [#allocation7], 1 }
 0x7da   :  { %6407 = vsyncpa [#allocation10], 1 }
 0x7db   :  { %6408 = vsyncpa [#allocation13], 1 }
 0x7dc   :  { %6409 = vsyncpa [#allocation5], 1 }
 0x7dd   :  { %6411 = vsyncpa [#allocation5 + $0x1], 1 }

</bundles_post_ra>
